<compile_context>
chip_gen: v7x
topology: tpu7x:2x2x1
jax: 0.10.0
libtpu: 0.0.40
codegen_flags: <defaults>
</compile_context>

<pallas_src>
import functools

import jax
import jax.numpy as jnp
from jax.experimental import pallas as pl
from jax.experimental.pallas import tpu as pltpu

# Logical layer widths of the PyTorch deep_mlp.
_DIMS = (28 * 28, 520, 320, 240, 10)
# Storage widths used by the kernel: layer-1 contraction dim stays at 784 so the
# raw f32 input can be consumed directly; every layer OUTPUT dim is padded up to
# a 128-lane multiple.
_W_IN = (784, 640, 384, 256)
_W_OUT = (640, 384, 256, 128)


def _round_up(n, m):
    return ((n + m - 1) // m) * m


def _cdiv(a, b):
    return (a + b - 1) // b


def deep_mlp_kernel(x_ref,
                    w1_ref, b1_ref, w2_ref, b2_ref,
                    w3_ref, b3_ref, w4_ref, b4_ref,
                    o_ref, *, chunk):
    """Fused 4-layer MLP: y = relu(relu(relu(relu(x@W1+b1)@W2+b2)@W3+b3)@W4+b4).

    The batch tile is processed in `chunk`-row pieces (two independent chains
    when chunk == tb // 2) so the scheduler can overlap one chain's VPU epilogue
    (bias + ReLU + bf16 cast) with the other chain's MXU pushes.
    """
    layers = ((w1_ref, b1_ref), (w2_ref, b2_ref),
              (w3_ref, b3_ref), (w4_ref, b4_ref))
    tb = o_ref.shape[0]
    for r0 in range(0, tb, chunk):            # static unroll -> independent chains
        rows = pl.ds(r0, chunk)
        h = x_ref[rows, :].astype(jnp.bfloat16)          # f32 -> bf16 on the VPU
        for li, (w_ref, b_ref) in enumerate(layers):
            acc = jnp.dot(h, w_ref[...], preferred_element_type=jnp.float32)
            # ReLU after EVERY layer, including fc4 — matches the PyTorch module.
            acc = jnp.maximum(acc + b_ref[...], 0.0)
            h = acc.astype(jnp.bfloat16) if li < len(layers) - 1 else acc
        o_ref[rows, :] = h.astype(o_ref.dtype)            # lane-dense (chunk, 128)


def pack_params(params):
    """Pad/cast weights & biases ONCE (hoisted out of the per-call path).

    Weights -> bf16, zero-padded to (_W_IN[i], _W_OUT[i]); biases stay f32,
    zero-padded to (1, _W_OUT[i]).  Zero padding preserves the math exactly:
    padded output columns get bias 0 and relu(0) = 0, which then hit zero rows
    of the next layer's weight.
    """
    packed = []
    for li, (w, b) in enumerate(params):
        di, do = _DIMS[li], _DIMS[li + 1]
        pi, po = _W_IN[li], _W_OUT[li]
        w = jnp.asarray(w, jnp.float32)
        b = jnp.asarray(b, jnp.float32).reshape(1, do)
        wp = jnp.zeros((pi, po), jnp.bfloat16).at[:di, :do].set(
            w.astype(jnp.bfloat16))
        bp = jnp.zeros((1, po), jnp.float32).at[:, :do].set(b)
        packed.append((wp, bp))
    return packed


def _choose_batch_tiling(B, max_tile):
    """Pick (batch_tile, n_tiles).

    * tiles are multiples of 16 when split-able (so the in-kernel half-chunks
      stay sublane aligned), otherwise multiples of 8,
    * >= 2 grid steps for batches >= 32 rows so v7x's two TensorCores both run,
    * tile count re-derived so every tile contains at least one valid row
      (no nearly-empty trailing tile, no fully out-of-range block).
    """
    Br = _round_up(B, 8)
    if Br < 32:
        return Br, 1
    n_tiles = max(2, _cdiv(Br, max_tile))
    tb = _round_up(_cdiv(Br, n_tiles), 16)
    n_tiles = _cdiv(Br, tb)
    return tb, n_tiles


def _make_specs(tb, single_buffer_weights):
    const = lambda i: (0, 0)

    def const_spec(shape):
        if single_buffer_weights:
            # Block never changes across grid steps -> don't double-buffer it.
            return pl.BlockSpec(shape, const, pipeline_mode=pl.Buffered(1))
        return pl.BlockSpec(shape, const)

    in_specs = [pl.BlockSpec((tb, _DIMS[0]), lambda i: (i, 0))]   # x: f32, pipelined
    for di, do in zip(_W_IN, _W_OUT):
        in_specs.append(const_spec((di, do)))     # weight, VMEM-resident
        in_specs.append(const_spec((1, do)))      # bias,   VMEM-resident
    out_spec = pl.BlockSpec((tb, _W_OUT[-1]), lambda i: (i, 0))
    return in_specs, out_spec


def deep_mlp_forward(x, packed_params, *, batch_tile=1024):
    """Forward pass.  `packed_params` must come from pack_params (call it once)."""
    assert x.ndim == 2 and x.shape[1] == _DIMS[0]
    B = x.shape[0]
    x = x.astype(jnp.float32)

    tb, n_tiles = _choose_batch_tiling(B, batch_tile)
    chunk = tb // 2 if (tb >= 16 and tb % 16 == 0) else tb
    kernel = functools.partial(deep_mlp_kernel, chunk=chunk)

    flat = [a for wb in packed_params for a in wb]
    flops = 2 * n_tiles * tb * sum(a * b for a, b in zip(_W_IN, _W_OUT))
    bytes_accessed = int(
        B * _DIMS[0] * 4
        + sum(int(a.size) * a.dtype.itemsize for a in flat)
        + B * _W_OUT[-1] * 4)

    def run(single_buffer_weights):
        in_specs, out_spec = _make_specs(tb, single_buffer_weights)
        return pl.pallas_call(
            kernel,
            out_shape=jax.ShapeDtypeStruct((B, _W_OUT[-1]), jnp.float32),
            grid=(n_tiles,),
            in_specs=in_specs,
            out_specs=out_spec,
            compiler_params=pltpu.CompilerParams(
                dimension_semantics=("parallel",),
                vmem_limit_bytes=48 * 1024 * 1024),
            cost_estimate=pl.CostEstimate(
                flops=flops, transcendentals=0, bytes_accessed=bytes_accessed),
        )(x, *flat)

    try:
        out = run(True)       # weights/biases single-buffered (constant blocks)
    except Exception:         # pipeline_mode / pl.Buffered unsupported -> default
        out = run(False)
    return out[:, :_DIMS[-1]]


def init_linear(key, fan_in, fan_out):
    """Deterministic init mimicking PyTorch nn.Linear defaults (uniform +/-1/sqrt(fan_in)).
    Weight returned as (fan_in, fan_out) = transpose of the PyTorch layout."""
    kw, kb = jax.random.split(key)
    bound = 1.0 / jnp.sqrt(jnp.float32(fan_in))
    w = jax.random.uniform(kw, (fan_in, fan_out), jnp.float32, -bound, bound)
    b = jax.random.uniform(kb, (1, fan_out), jnp.float32, -bound, bound)
    return w, b


def reference_forward(x, params):
    """Pure-JAX reference mirroring the kernel's bf16 storage of x, weights and
    inter-layer activations (f32 accumulation / bias / ReLU)."""
    h = x.astype(jnp.bfloat16).astype(jnp.float32)
    n = len(params)
    for idx, (w, b) in enumerate(params):
        wq = w.astype(jnp.bfloat16).astype(jnp.float32)
        h = jnp.dot(h, wq, precision=jax.lax.Precision.HIGHEST) + b
        h = jnp.maximum(h, 0.0)
        if idx < n - 1:
            h = h.astype(jnp.bfloat16).astype(jnp.float32)
    return h


if __name__ == "__main__":
    key = jax.random.PRNGKey(0)
    kx, k1, k2, k3, k4 = jax.random.split(key, 5)

    params = (
        init_linear(k1, 28 * 28, 520),
        init_linear(k2, 520, 320),
        init_linear(k3, 320, 240),
        init_linear(k4, 240, 10),
    )
    packed = pack_params(params)   # pad/cast ONCE; reused by every forward call

    # Small single-tile case.
    B = 8
    x = jax.random.normal(kx, (B, 28 * 28), jnp.float32)
    out = jax.block_until_ready(deep_mlp_forward(x, packed))
    ref = reference_forward(x, params)
    assert out.shape == (B, 10)
    assert jnp.allclose(out, ref, atol=1e-2, rtol=1e-2), "mismatch vs reference (B=8)"

    # Multi-tile case: 2 parallel grid steps + ragged last tile + in-kernel split.
    B2 = 40
    x2 = jax.random.normal(kx, (B2, 28 * 28), jnp.float32)
    out2 = jax.block_until_ready(deep_mlp_forward(x2, packed))
    ref2 = reference_forward(x2, params)
    assert out2.shape == (B2, 10)
    assert jnp.allclose(out2, ref2, atol=1e-2, rtol=1e-2), "mismatch vs reference (B=40)"

    print("KERNEL_OK")
</pallas_src>

<mosaic_0001>
module attributes {stable_mosaic.version = 11 : i64} {
  func.func @deep_mlp_kernel(%arg0: i32, %arg1: memref<8x784xf32, #tpu.memory_space<vmem>>, %arg2: memref<784x640xbf16, #tpu.memory_space<vmem>>, %arg3: memref<1x640xf32, #tpu.memory_space<vmem>>, %arg4: memref<640x384xbf16, #tpu.memory_space<vmem>>, %arg5: memref<1x384xf32, #tpu.memory_space<vmem>>, %arg6: memref<384x256xbf16, #tpu.memory_space<vmem>>, %arg7: memref<1x256xf32, #tpu.memory_space<vmem>>, %arg8: memref<256x128xbf16, #tpu.memory_space<vmem>>, %arg9: memref<1x128xf32, #tpu.memory_space<vmem>>, %arg10: memref<8x128xf32, #tpu.memory_space<vmem>>) attributes {dimension_semantics = [#tpu.dimension_semantics<parallel>], iteration_bounds = array<i64: 1>, scalar_prefetch = 0 : i64, scratch_operands = 0 : i64, tpu.core_type = #tpu.core_type<tc>, window_params = [{transform_indices = @transform_0, window_bounds = array<i64: 8, 784>}, {pipeline_mode = #tpu.pipeline_mode<synchronous>, transform_indices = @transform_1, window_bounds = array<i64: 784, 640>}, {pipeline_mode = #tpu.pipeline_mode<synchronous>, transform_indices = @transform_2, window_bounds = array<i64: 1, 640>}, {pipeline_mode = #tpu.pipeline_mode<synchronous>, transform_indices = @transform_3, window_bounds = array<i64: 640, 384>}, {pipeline_mode = #tpu.pipeline_mode<synchronous>, transform_indices = @transform_4, window_bounds = array<i64: 1, 384>}, {pipeline_mode = #tpu.pipeline_mode<synchronous>, transform_indices = @transform_5, window_bounds = array<i64: 384, 256>}, {pipeline_mode = #tpu.pipeline_mode<synchronous>, transform_indices = @transform_6, window_bounds = array<i64: 1, 256>}, {pipeline_mode = #tpu.pipeline_mode<synchronous>, transform_indices = @transform_7, window_bounds = array<i64: 256, 128>}, {pipeline_mode = #tpu.pipeline_mode<synchronous>, transform_indices = @transform_8, window_bounds = array<i64: 1, 128>}, {transform_indices = @transform_9, window_bounds = array<i64: 8, 128>}]} {
    %c0 = arith.constant 0 : index
    %c0_0 = arith.constant 0 : index
    %0 = vector.load %arg1[%c0, %c0_0] : memref<8x784xf32, #tpu.memory_space<vmem>>, vector<8x784xf32>
    %1 = arith.truncf %0 : vector<8x784xf32> to vector<8x784xbf16>
    %c0_1 = arith.constant 0 : index
    %c0_2 = arith.constant 0 : index
    %2 = vector.load %arg2[%c0_1, %c0_2] : memref<784x640xbf16, #tpu.memory_space<vmem>>, vector<784x640xbf16>
    %cst = arith.constant dense<0.000000e+00> : vector<8x640xf32>
    %3 = tpu.matmul %1, %2, %cst {dimension_numbers = #tpu.dot_dimension_numbers<[1], [0], [0], [1], [0, 0, 1, 1], [], []>} : vector<8x784xbf16>, vector<784x640xbf16>, vector<8x640xf32> -> vector<8x640xf32>
    %c0_3 = arith.constant 0 : index
    %c0_4 = arith.constant 0 : index
    %4 = vector.load %arg3[%c0_3, %c0_4] : memref<1x640xf32, #tpu.memory_space<vmem>>, vector<1x640xf32>
    %5 = vector.broadcast %4 : vector<1x640xf32> to vector<8x640xf32>
    %6 = arith.addf %3, %5 : vector<8x640xf32>
    %cst_5 = arith.constant 0.000000e+00 : f32
    %7 = vector.broadcast %cst_5 : f32 to vector<8x640xf32>
    %8 = arith.maximumf %6, %7 : vector<8x640xf32>
    %9 = arith.truncf %8 : vector<8x640xf32> to vector<8x640xbf16>
    %c0_6 = arith.constant 0 : index
    %c0_7 = arith.constant 0 : index
    %10 = vector.load %arg4[%c0_6, %c0_7] : memref<640x384xbf16, #tpu.memory_space<vmem>>, vector<640x384xbf16>
    %cst_8 = arith.constant dense<0.000000e+00> : vector<8x384xf32>
    %11 = tpu.matmul %9, %10, %cst_8 {dimension_numbers = #tpu.dot_dimension_numbers<[1], [0], [0], [1], [0, 0, 1, 1], [], []>} : vector<8x640xbf16>, vector<640x384xbf16>, vector<8x384xf32> -> vector<8x384xf32>
    %c0_9 = arith.constant 0 : index
    %c0_10 = arith.constant 0 : index
    %12 = vector.load %arg5[%c0_9, %c0_10] : memref<1x384xf32, #tpu.memory_space<vmem>>, vector<1x384xf32>
    %13 = vector.broadcast %12 : vector<1x384xf32> to vector<8x384xf32>
    %14 = arith.addf %11, %13 : vector<8x384xf32>
    %cst_11 = arith.constant 0.000000e+00 : f32
    %15 = vector.broadcast %cst_11 : f32 to vector<8x384xf32>
    %16 = arith.maximumf %14, %15 : vector<8x384xf32>
    %17 = arith.truncf %16 : vector<8x384xf32> to vector<8x384xbf16>
    %c0_12 = arith.constant 0 : index
    %c0_13 = arith.constant 0 : index
    %18 = vector.load %arg6[%c0_12, %c0_13] : memref<384x256xbf16, #tpu.memory_space<vmem>>, vector<384x256xbf16>
    %cst_14 = arith.constant dense<0.000000e+00> : vector<8x256xf32>
    %19 = tpu.matmul %17, %18, %cst_14 {dimension_numbers = #tpu.dot_dimension_numbers<[1], [0], [0], [1], [0, 0, 1, 1], [], []>} : vector<8x384xbf16>, vector<384x256xbf16>, vector<8x256xf32> -> vector<8x256xf32>
    %c0_15 = arith.constant 0 : index
    %c0_16 = arith.constant 0 : index
    %20 = vector.load %arg7[%c0_15, %c0_16] : memref<1x256xf32, #tpu.memory_space<vmem>>, vector<1x256xf32>
    %21 = vector.broadcast %20 : vector<1x256xf32> to vector<8x256xf32>
    %22 = arith.addf %19, %21 : vector<8x256xf32>
    %cst_17 = arith.constant 0.000000e+00 : f32
    %23 = vector.broadcast %cst_17 : f32 to vector<8x256xf32>
    %24 = arith.maximumf %22, %23 : vector<8x256xf32>
    %25 = arith.truncf %24 : vector<8x256xf32> to vector<8x256xbf16>
    %c0_18 = arith.constant 0 : index
    %c0_19 = arith.constant 0 : index
    %26 = vector.load %arg8[%c0_18, %c0_19] : memref<256x128xbf16, #tpu.memory_space<vmem>>, vector<256x128xbf16>
    %cst_20 = arith.constant dense<0.000000e+00> : vector<8x128xf32>
    %27 = tpu.matmul %25, %26, %cst_20 {dimension_numbers = #tpu.dot_dimension_numbers<[1], [0], [0], [1], [0, 0, 1, 1], [], []>} : vector<8x256xbf16>, vector<256x128xbf16>, vector<8x128xf32> -> vector<8x128xf32>
    %c0_21 = arith.constant 0 : index
    %c0_22 = arith.constant 0 : index
    %28 = vector.load %arg9[%c0_21, %c0_22] : memref<1x128xf32, #tpu.memory_space<vmem>>, vector<1x128xf32>
    %29 = vector.broadcast %28 : vector<1x128xf32> to vector<8x128xf32>
    %30 = arith.addf %27, %29 : vector<8x128xf32>
    %cst_23 = arith.constant 0.000000e+00 : f32
    %31 = vector.broadcast %cst_23 : f32 to vector<8x128xf32>
    %32 = arith.maximumf %30, %31 : vector<8x128xf32>
    %c0_24 = arith.constant 0 : index
    %c0_25 = arith.constant 0 : index
    %33 = vector.load %arg10[%c0_24, %c0_25] : memref<8x128xf32, #tpu.memory_space<vmem>>, vector<8x128xf32>
    tpu.vector_store %arg10[%c0_24, %c0_25], %32 {strides = array<i32>} : memref<8x128xf32, #tpu.memory_space<vmem>>, vector<8x128xf32>,
    return
  }
  func.func @transform_0(%arg0: i32) -> (i32, i32) {
    %c0_i32 = arith.constant 0 : i32
    %c0_i32_0 = arith.constant 0 : i32
    return %arg0, %c0_i32 : i32, i32
  }
  func.func @transform_1(%arg0: i32) -> (i32, i32) {
    %c0_i32 = arith.constant 0 : i32
    %c0_i32_0 = arith.constant 0 : i32
    %c0_i32_1 = arith.constant 0 : i32
    return %c0_i32, %c0_i32_0 : i32, i32
  }
  func.func @transform_2(%arg0: i32) -> (i32, i32) {
    %c0_i32 = arith.constant 0 : i32
    %c0_i32_0 = arith.constant 0 : i32
    %c0_i32_1 = arith.constant 0 : i32
    return %c0_i32, %c0_i32_0 : i32, i32
  }
  func.func @transform_3(%arg0: i32) -> (i32, i32) {
    %c0_i32 = arith.constant 0 : i32
    %c0_i32_0 = arith.constant 0 : i32
    %c0_i32_1 = arith.constant 0 : i32
    return %c0_i32, %c0_i32_0 : i32, i32
  }
  func.func @transform_4(%arg0: i32) -> (i32, i32) {
    %c0_i32 = arith.constant 0 : i32
    %c0_i32_0 = arith.constant 0 : i32
    %c0_i32_1 = arith.constant 0 : i32
    return %c0_i32, %c0_i32_0 : i32, i32
  }
  func.func @transform_5(%arg0: i32) -> (i32, i32) {
    %c0_i32 = arith.constant 0 : i32
    %c0_i32_0 = arith.constant 0 : i32
    %c0_i32_1 = arith.constant 0 : i32
    return %c0_i32, %c0_i32_0 : i32, i32
  }
  func.func @transform_6(%arg0: i32) -> (i32, i32) {
    %c0_i32 = arith.constant 0 : i32
    %c0_i32_0 = arith.constant 0 : i32
    %c0_i32_1 = arith.constant 0 : i32
    return %c0_i32, %c0_i32_0 : i32, i32
  }
  func.func @transform_7(%arg0: i32) -> (i32, i32) {
    %c0_i32 = arith.constant 0 : i32
    %c0_i32_0 = arith.constant 0 : i32
    %c0_i32_1 = arith.constant 0 : i32
    return %c0_i32, %c0_i32_0 : i32, i32
  }
  func.func @transform_8(%arg0: i32) -> (i32, i32) {
    %c0_i32 = arith.constant 0 : i32
    %c0_i32_0 = arith.constant 0 : i32
    %c0_i32_1 = arith.constant 0 : i32
    return %c0_i32, %c0_i32_0 : i32, i32
  }
  func.func @transform_9(%arg0: i32) -> (i32, i32) {
    %c0_i32 = arith.constant 0 : i32
    %c0_i32_0 = arith.constant 0 : i32
    return %arg0, %c0_i32 : i32, i32
  }
}

module attributes {stable_mosaic.version = 11 : i64} {
  func.func @deep_mlp_kernel(%arg0: i32, %arg1: memref<8x784xf32, #tpu.memory_space<vmem>>, %arg2: memref<784x640xbf16, #tpu.memory_space<vmem>>, %arg3: memref<1x640xf32, #tpu.memory_space<vmem>>, %arg4: memref<640x384xbf16, #tpu.memory_space<vmem>>, %arg5: memref<1x384xf32, #tpu.memory_space<vmem>>, %arg6: memref<384x256xbf16, #tpu.memory_space<vmem>>, %arg7: memref<1x256xf32, #tpu.memory_space<vmem>>, %arg8: memref<256x128xbf16, #tpu.memory_space<vmem>>, %arg9: memref<1x128xf32, #tpu.memory_space<vmem>>, %arg10: memref<8x128xf32, #tpu.memory_space<vmem>>) attributes {dimension_semantics = [#tpu.dimension_semantics<parallel>], iteration_bounds = array<i64: 1>, scalar_prefetch = 0 : i64, scratch_operands = 0 : i64, tpu.core_type = #tpu.core_type<tc>, window_params = [{transform_indices = @transform_0, window_bounds = array<i64: 8, 784>}, {pipeline_mode = #tpu.pipeline_mode<synchronous>, transform_indices = @transform_1, window_bounds = array<i64: 784, 640>}, {pipeline_mode = #tpu.pipeline_mode<synchronous>, transform_indices = @transform_2, window_bounds = array<i64: 1, 640>}, {pipeline_mode = #tpu.pipeline_mode<synchronous>, transform_indices = @transform_3, window_bounds = array<i64: 640, 384>}, {pipeline_mode = #tpu.pipeline_mode<synchronous>, transform_indices = @transform_4, window_bounds = array<i64: 1, 384>}, {pipeline_mode = #tpu.pipeline_mode<synchronous>, transform_indices = @transform_5, window_bounds = array<i64: 384, 256>}, {pipeline_mode = #tpu.pipeline_mode<synchronous>, transform_indices = @transform_6, window_bounds = array<i64: 1, 256>}, {pipeline_mode = #tpu.pipeline_mode<synchronous>, transform_indices = @transform_7, window_bounds = array<i64: 256, 128>}, {pipeline_mode = #tpu.pipeline_mode<synchronous>, transform_indices = @transform_8, window_bounds = array<i64: 1, 128>}, {transform_indices = @transform_9, window_bounds = array<i64: 8, 128>}]} {
    %c0 = arith.constant 0 : index
    %c0_0 = arith.constant 0 : index
    %0 = vector.load %arg1[%c0, %c0_0] : memref<8x784xf32, #tpu.memory_space<vmem>>, vector<8x784xf32>
    %1 = arith.truncf %0 : vector<8x784xf32> to vector<8x784xbf16>
    %c0_1 = arith.constant 0 : index
    %c0_2 = arith.constant 0 : index
    %2 = vector.load %arg2[%c0_1, %c0_2] : memref<784x640xbf16, #tpu.memory_space<vmem>>, vector<784x640xbf16>
    %cst = arith.constant dense<0.000000e+00> : vector<8x640xf32>
    %3 = tpu.matmul %1, %2, %cst {dimension_numbers = #tpu.dot_dimension_numbers<[1], [0], [0], [1], [0, 0, 1, 1], [], []>} : vector<8x784xbf16>, vector<784x640xbf16>, vector<8x640xf32> -> vector<8x640xf32>
    %c0_3 = arith.constant 0 : index
    %c0_4 = arith.constant 0 : index
    %4 = vector.load %arg3[%c0_3, %c0_4] : memref<1x640xf32, #tpu.memory_space<vmem>>, vector<1x640xf32>
    %5 = vector.broadcast %4 : vector<1x640xf32> to vector<8x640xf32>
    %6 = arith.addf %3, %5 : vector<8x640xf32>
    %cst_5 = arith.constant 0.000000e+00 : f32
    %7 = vector.broadcast %cst_5 : f32 to vector<8x640xf32>
    %8 = arith.maximumf %6, %7 : vector<8x640xf32>
    %9 = arith.truncf %8 : vector<8x640xf32> to vector<8x640xbf16>
    %c0_6 = arith.constant 0 : index
    %c0_7 = arith.constant 0 : index
    %10 = vector.load %arg4[%c0_6, %c0_7] : memref<640x384xbf16, #tpu.memory_space<vmem>>, vector<640x384xbf16>
    %cst_8 = arith.constant dense<0.000000e+00> : vector<8x384xf32>
    %11 = tpu.matmul %9, %10, %cst_8 {dimension_numbers = #tpu.dot_dimension_numbers<[1], [0], [0], [1], [0, 0, 1, 1], [], []>} : vector<8x640xbf16>, vector<640x384xbf16>, vector<8x384xf32> -> vector<8x384xf32>
    %c0_9 = arith.constant 0 : index
    %c0_10 = arith.constant 0 : index
    %12 = vector.load %arg5[%c0_9, %c0_10] : memref<1x384xf32, #tpu.memory_space<vmem>>, vector<1x384xf32>
    %13 = vector.broadcast %12 : vector<1x384xf32> to vector<8x384xf32>
    %14 = arith.addf %11, %13 : vector<8x384xf32>
    %cst_11 = arith.constant 0.000000e+00 : f32
    %15 = vector.broadcast %cst_11 : f32 to vector<8x384xf32>
    %16 = arith.maximumf %14, %15 : vector<8x384xf32>
    %17 = arith.truncf %16 : vector<8x384xf32> to vector<8x384xbf16>
    %c0_12 = arith.constant 0 : index
    %c0_13 = arith.constant 0 : index
    %18 = vector.load %arg6[%c0_12, %c0_13] : memref<384x256xbf16, #tpu.memory_space<vmem>>, vector<384x256xbf16>
    %cst_14 = arith.constant dense<0.000000e+00> : vector<8x256xf32>
    %19 = tpu.matmul %17, %18, %cst_14 {dimension_numbers = #tpu.dot_dimension_numbers<[1], [0], [0], [1], [0, 0, 1, 1], [], []>} : vector<8x384xbf16>, vector<384x256xbf16>, vector<8x256xf32> -> vector<8x256xf32>
    %c0_15 = arith.constant 0 : index
    %c0_16 = arith.constant 0 : index
    %20 = vector.load %arg7[%c0_15, %c0_16] : memref<1x256xf32, #tpu.memory_space<vmem>>, vector<1x256xf32>
    %21 = vector.broadcast %20 : vector<1x256xf32> to vector<8x256xf32>
    %22 = arith.addf %19, %21 : vector<8x256xf32>
    %cst_17 = arith.constant 0.000000e+00 : f32
    %23 = vector.broadcast %cst_17 : f32 to vector<8x256xf32>
    %24 = arith.maximumf %22, %23 : vector<8x256xf32>
    %25 = arith.truncf %24 : vector<8x256xf32> to vector<8x256xbf16>
    %c0_18 = arith.constant 0 : index
    %c0_19 = arith.constant 0 : index
    %26 = vector.load %arg8[%c0_18, %c0_19] : memref<256x128xbf16, #tpu.memory_space<vmem>>, vector<256x128xbf16>
    %cst_20 = arith.constant dense<0.000000e+00> : vector<8x128xf32>
    %27 = tpu.matmul %25, %26, %cst_20 {dimension_numbers = #tpu.dot_dimension_numbers<[1], [0], [0], [1], [0, 0, 1, 1], [], []>} : vector<8x256xbf16>, vector<256x128xbf16>, vector<8x128xf32> -> vector<8x128xf32>
    %c0_21 = arith.constant 0 : index
    %c0_22 = arith.constant 0 : index
    %28 = vector.load %arg9[%c0_21, %c0_22] : memref<1x128xf32, #tpu.memory_space<vmem>>, vector<1x128xf32>
    %29 = vector.broadcast %28 : vector<1x128xf32> to vector<8x128xf32>
    %30 = arith.addf %27, %29 : vector<8x128xf32>
    %cst_23 = arith.constant 0.000000e+00 : f32
    %31 = vector.broadcast %cst_23 : f32 to vector<8x128xf32>
    %32 = arith.maximumf %30, %31 : vector<8x128xf32>
    %c0_24 = arith.constant 0 : index
    %c0_25 = arith.constant 0 : index
    %33 = vector.load %arg10[%c0_24, %c0_25] : memref<8x128xf32, #tpu.memory_space<vmem>>, vector<8x128xf32>
    tpu.vector_store %arg10[%c0_24, %c0_25], %32 {strides = array<i32>} : memref<8x128xf32, #tpu.memory_space<vmem>>, vector<8x128xf32>,
    return
  }
  func.func @transform_0(%arg0: i32) -> (i32, i32) {
    %c0_i32 = arith.constant 0 : i32
    %c0_i32_0 = arith.constant 0 : i32
    return %arg0, %c0_i32 : i32, i32
  }
  func.func @transform_1(%arg0: i32) -> (i32, i32) {
    %c0_i32 = arith.constant 0 : i32
    %c0_i32_0 = arith.constant 0 : i32
    %c0_i32_1 = arith.constant 0 : i32
    return %c0_i32, %c0_i32_0 : i32, i32
  }
  func.func @transform_2(%arg0: i32) -> (i32, i32) {
    %c0_i32 = arith.constant 0 : i32
    %c0_i32_0 = arith.constant 0 : i32
    %c0_i32_1 = arith.constant 0 : i32
    return %c0_i32, %c0_i32_0 : i32, i32
  }
  func.func @transform_3(%arg0: i32) -> (i32, i32) {
    %c0_i32 = arith.constant 0 : i32
    %c0_i32_0 = arith.constant 0 : i32
    %c0_i32_1 = arith.constant 0 : i32
    return %c0_i32, %c0_i32_0 : i32, i32
  }
  func.func @transform_4(%arg0: i32) -> (i32, i32) {
    %c0_i32 = arith.constant 0 : i32
    %c0_i32_0 = arith.constant 0 : i32
    %c0_i32_1 = arith.constant 0 : i32
    return %c0_i32, %c0_i32_0 : i32, i32
  }
  func.func @transform_5(%arg0: i32) -> (i32, i32) {
    %c0_i32 = arith.constant 0 : i32
    %c0_i32_0 = arith.constant 0 : i32
    %c0_i32_1 = arith.constant 0 : i32
    return %c0_i32, %c0_i32_0 : i32, i32
  }
  func.func @transform_6(%arg0: i32) -> (i32, i32) {
    %c0_i32 = arith.constant 0 : i32
    %c0_i32_0 = arith.constant 0 : i32
    %c0_i32_1 = arith.constant 0 : i32
    return %c0_i32, %c0_i32_0 : i32, i32
  }
  func.func @transform_7(%arg0: i32) -> (i32, i32) {
    %c0_i32 = arith.constant 0 : i32
    %c0_i32_0 = arith.constant 0 : i32
    %c0_i32_1 = arith.constant 0 : i32
    return %c0_i32, %c0_i32_0 : i32, i32
  }
  func.func @transform_8(%arg0: i32) -> (i32, i32) {
    %c0_i32 = arith.constant 0 : i32
    %c0_i32_0 = arith.constant 0 : i32
    %c0_i32_1 = arith.constant 0 : i32
    return %c0_i32, %c0_i32_0 : i32, i32
  }
  func.func @transform_9(%arg0: i32) -> (i32, i32) {
    %c0_i32 = arith.constant 0 : i32
    %c0_i32_0 = arith.constant 0 : i32
    return %arg0, %c0_i32 : i32, i32
  }
}

</mosaic_0001>

<bundles_post_ra>
// kernel: tpu_custom_call.1
= control target key start
LH: loop header
LB: loop body
LE: loop exit
PB: predicated region body
PF: predicated region fallthrough
CT: control target
= control target key end

     0   :  { %14 = vsyncpa [#allocation3], 0  ;;  %s5500_s0 = inlined_call_operand.hbm [shape: f32[8,784], index: 0, kind: input, shape index: {}]   ;;  %s5501_s1 = inlined_call_operand.hbm [shape: bf16[784,640], index: 1, kind: input, shape index: {}]   ;;  %s5502_s2 = inlined_call_operand.vmem [shape: f32[1,640], index: 2, kind: input, shape index: {}]   ;;  %s5503_s3 = inlined_call_operand.hbm [shape: bf16[640,384], index: 3, kind: input, shape index: {}]   ;;  %s5504_s4 = inlined_call_operand.vmem [shape: f32[1,384], index: 4, kind: input, shape index: {}]   ;;  %s5505_s5 = inlined_call_operand.hbm [shape: bf16[384,256], index: 5, kind: input, shape index: {}]   ;;  %s5506_s6 = inlined_call_operand.vmem [shape: f32[1,256], index: 6, kind: input, shape index: {}]   ;;  %s5507_s7 = inlined_call_operand.hbm [shape: bf16[256,128], index: 7, kind: input, shape index: {}]   ;;  %s5508_s8 = inlined_call_operand.vmem [shape: f32[1,128], index: 8, kind: input, shape index: {}]   ;;  %s5509_s9 = inlined_call_operand.hbm [shape: f32[8,128], index: 9, kind: output, shape index: {}]  }
   0x1   :  { %15 = vsyncpa [#allocation6], 0 }
   0x2   :  { %16 = vsyncpa [#allocation9], 0 }
   0x3   :  { %17 = vsyncpa [#allocation4], 0  ;;  %s5249_s30 = smov [#allocation5]   ;;  %s5109_s13 = scalar_lea.hbm %s5501_s1, 31360 }
   0x4   :  { %s33_s10 = sshll.u32 %s5249_s30, 4  ;;  %p5110_p0 = scmp.ne.s32.totalorder %s5501_s1, %s5109_s13  ;;  %s34_s10 = int_to_ptr.vmem [resolvable:$true] %s33_s10 }
   0x5   :  { %p5113_p1 = scmp.lt.u32.totalorder %s5109_s13, %s5501_s1 }
   0x7   :  { %p5115_p2 = pnand %p5113_p1, %p5110_p0 }
   0x9   :  { %5118 = shalt.err (!%p5115_p2)
}
   0xa   :  { %s5119_s18 = scalar_lea.vmem %s34_s10, 31360  ;;  %p5124_p4 = scmp.lt.s32.totalorder %s34_s10, %s34_s10 }
   0xb   :  { %p5120_p3 = scmp.ne.s32.totalorder %s34_s10, %s5119_s18  ;;  %p5125_p5 = scmp.lt.s32.totalorder %s5119_s18, %s5119_s18 }
   0xd   :  { %p5126_p6 = por %p5125_p5, %p5124_p4 }
   0xf   :  { %p5127_p7 = pnand %p5126_p6, %p5120_p3 }
  0x11   :  { %5130 = shalt.err (!%p5127_p7)
}
  0x12   :  { %s5250_s19 = smov 320   ;;  %s5251_s20 = smov 20  }
  0x13   :  { %39 = dma.hbm_to_vmem [thread:$0]  %s5501_s1, 31360, %s34_s10, [#allocation6], %s5250_s19, %s5250_s19, %s5251_s20  }
  0x14   :  { %s5252_s23 = smov [#allocation8]   ;;  %s5131_s27 = scalar_lea.hbm %s5505_s5, 6144 }
  0x15   :  { %s61_s24 = sshll.u32 %s5252_s23, 4  ;;  %p5132_p8 = scmp.ne.s32.totalorder %s5505_s5, %s5131_s27  ;;  %s62_s24 = int_to_ptr.vmem [resolvable:$true] %s61_s24 }
  0x16   :  { %p5135_p9 = scmp.lt.u32.totalorder %s5131_s27, %s5505_s5 }
  0x18   :  { %p5137_p10 = pnand %p5135_p9, %p5132_p8 }
  0x1a   :  { %5140 = shalt.err (!%p5137_p10)
}
  0x1b   :  { %s5141_s12 = scalar_lea.vmem %s62_s24, 6144  ;;  %p5146_p12 = scmp.lt.s32.totalorder %s62_s24, %s62_s24 }
  0x1c   :  { %p5142_p11 = scmp.ne.s32.totalorder %s62_s24, %s5141_s12  ;;  %p5147_p13 = scmp.lt.s32.totalorder %s5141_s12, %s5141_s12 }
  0x1e   :  { %p5148_p0 = por %p5147_p13, %p5146_p12 }
  0x20   :  { %p5149_p1 = pnand %p5148_p0, %p5142_p11 }
  0x22   :  { %5152 = shalt.err (!%p5149_p1)
}
  0x23   :  { %s5253_s1 = smov 128   ;;  %s5254_s10 = smov 8  }
  0x24   :  { %67 = dma.hbm_to_vmem [thread:$0]  %s5505_s5, 6144, %s62_s24, [#allocation9], %s5253_s1, %s5253_s1, %s5254_s10  }
  0x25   :  { %s5255_s15 = smov [#allocation2]   ;;  %s5256_s17 = smov [#allocation7]  }
  0x26   :  { %s24_s16 = sshll.u32 %s5255_s15, 4  ;;  %s47_s18 = sshll.u32 %s5256_s17, 4  ;;  %s25_s16 = int_to_ptr.vmem [resolvable:$true] %s24_s16  ;;  %s5340_s18 = int_to_ptr.vmem [resolvable:$true] %s47_s18 }
  0x27   :  { %s5153_s21 = scalar_lea.hbm %s5500_s0, 896 }
  0x28   :  { %p5154_p2 = scmp.ne.s32.totalorder %s5500_s0, %s5153_s21  ;;  %p5157_p3 = scmp.lt.u32.totalorder %s5153_s21, %s5500_s0 }
  0x2a   :  { %p5159_p4 = pnand %p5157_p3, %p5154_p2 }
  0x2c   :  { %5162 = shalt.err (!%p5159_p4)
}
  0x2d   :  { %s5163_s5 = scalar_lea.vmem %s25_s16, 896  ;;  %p5168_p6 = scmp.lt.s32.totalorder %s25_s16, %s25_s16 }
  0x2e   :  { %p5164_p5 = scmp.ne.s32.totalorder %s25_s16, %s5163_s5  ;;  %p5169_p7 = scmp.lt.s32.totalorder %s5163_s5, %s5163_s5 }
  0x30   :  { %p5170_p8 = por %p5169_p7, %p5168_p6 }
  0x32   :  { %p5171_p9 = pnand %p5170_p8, %p5164_p5 }
  0x34   :  { %5174 = shalt.err (!%p5171_p9)
}
  0x35   :  { %27 = dma.hbm_to_vmem [thread:$0]  %s5500_s0, 896, %s25_s16, [#allocation3]  }
  0x36   :  { %s5175_s30 = scalar_lea.hbm %s5503_s3, 15360 }
  0x37   :  { %p5176_p10 = scmp.ne.s32.totalorder %s5503_s3, %s5175_s30  ;;  %p5179_p11 = scmp.lt.u32.totalorder %s5175_s30, %s5503_s3 }
  0x39   :  { %p5181_p12 = pnand %p5179_p11, %p5176_p10 }
  0x3b   :  { %5184 = shalt.err (!%p5181_p12)
}
  0x3c   :  { %s5185_s13 = scalar_lea.vmem %s5340_s18, 15360  ;;  %p5190_p0 = scmp.lt.s32.totalorder %s5340_s18, %s5340_s18 }
  0x3d   :  { %p5186_p13 = scmp.ne.s32.totalorder %s5340_s18, %s5185_s13  ;;  %p5191_p1 = scmp.lt.s32.totalorder %s5185_s13, %s5185_s13 }
  0x3f   :  { %p5192_p2 = por %p5191_p1, %p5190_p0 }
  0x41   :  { %p5193_p3 = pnand %p5192_p2, %p5186_p13 }
  0x43   :  { %5196 = shalt.err (!%p5193_p3)
}
  0x44   :  { %s5257_s0 = smov 192   ;;  %s5258_s14 = smov 12  }
  0x45   :  { %53 = dma.hbm_to_vmem [thread:$0]  %s5503_s3, 15360, %s5340_s18, [#allocation6], %s5257_s0, %s5257_s0, %s5258_s14  }
  0x46   :  { %s5259_s17 = smov [#allocation10]   ;;  %s5197_s22 = scalar_lea.hbm %s5507_s7, 2048 }
  0x47   :  { %s75_s19 = sshll.u32 %s5259_s17, 4  ;;  %p5198_p4 = scmp.ne.s32.totalorder %s5507_s7, %s5197_s22  ;;  %s76_s19 = int_to_ptr.vmem [resolvable:$true] %s75_s19 }
  0x48   :  { %p5201_p5 = scmp.lt.u32.totalorder %s5197_s22, %s5507_s7 }
  0x4a   :  { %p5203_p6 = pnand %p5201_p5, %p5198_p4 }
  0x4c   :  { %5206 = shalt.err (!%p5203_p6)
}
  0x4d   :  { %s5207_s24 = scalar_lea.vmem %s76_s19, 2048  ;;  %p5212_p8 = scmp.lt.s32.totalorder %s76_s19, %s76_s19 }
  0x4e   :  { %p5208_p7 = scmp.ne.s32.totalorder %s76_s19, %s5207_s24  ;;  %p5213_p9 = scmp.lt.s32.totalorder %s5207_s24, %s5207_s24 }
  0x50   :  { %p5214_p10 = por %p5213_p9, %p5212_p8 }
  0x52   :  { %p5215_p11 = pnand %p5214_p10, %p5208_p7 }
  0x54   :  { %5218 = shalt.err (!%p5215_p11)
}
  0x55   :  { %s5260_s3 = smov 64   ;;  %s5261_s18 = smov 4  }
  0x56   :  { %81 = dma.hbm_to_vmem [thread:$0]  %s5507_s7, 2048, %s76_s19, [#allocation9], %s5260_s3, %s5260_s3, %s5261_s18  }
  0x57   :  { %5241 = dma.done.wait [#allocation3], 896  }
  0x58   :  { %5242 = vsyncadd [#allocation3], 4294966400 }
  0x59   :  { %5243 = dma.done.wait [#allocation6], 46720  }
  0x5a   :  { %5244 = vsyncadd [#allocation6], 4294920576 }
  0x5b   :  { %5245 = dma.done.wait [#allocation9], 8192  }
  0x5c   :  { %5246 = vsyncadd [#allocation9], 4294959104  ;;  %v5262_v0 = vmov 0   ;;  %v4518_v1 = vld [vmem:[#allocation5 + $0x4] ss:$20 sps:$4 sm:$0xff]   ;;  %vm1709_vm0 = vcmask 130048  }
  0x5d   :  { %1868 = vmatprep.mubr.bf16.mxu1 %v5262_v0  ;;  %v4520_v2 = vld [vmem:[#allocation5 + $0x784] ss:$20 sps:$4 sm:$0xff]   ;;  %1713 = vmatprep.subr.bf16.mxu0 %v4518_v1  ;;  %v4522_v3 = vld [vmem:[#allocation5] ss:$20 sps:$4 sm:$0xff]   ;;  %v4526_v6 = vld [vmem:[#allocation5 + $0x8] ss:$20 sps:$4 sm:$0xff]  }
  0x5e   :  { %v4523_v4 = vld [vmem:[#allocation5 + $0x780] ss:$20 sps:$4 sm:$0xff]   ;;  %1836 = vmatprep.subr.bf16.mxu1 %v4520_v2  ;;  %1714 = vmatpush1.bf16.msra.mxu0 %v4522_v3  ;;  %v4529_v8 = vld [vmem:[#allocation5 + $0x28] ss:$20 sps:$4 sm:$0xff]   ;;  %v4532_v12 = vld [vmem:[#allocation5 + $0x30] ss:$20 sps:$4 sm:$0xff]  }
  0x5f   :  { %v4524_v5 = vld [vmem:[#allocation5 + $0x2c] ss:$20 sps:$4 sm:$0xff]   ;;  %1837 = vmatpush1.bf16.msra.mxu1 %v4523_v4  ;;  %v106_v9 = vld [vmem:[#allocation2 + $0x30] sm:$0xff]  ;;  %v4530_v11 = vld [vmem:[#allocation5 + $0x54] ss:$20 sps:$4 sm:$0xff]   ;;  %vm5264_vm1 = vmmov 0  }
  0x60   :  { %v4528_v7 = vld [vmem:[#allocation5 + $0xc] ss:$20 sps:$4 sm:$0xff]   ;;  %1715 = vmatprep.subr.bf16.mxu0 %v4524_v5  ;;  %v5384_v10 = vpack.c.bf16 %v106_v9, %v106_v9  ;;  %v4534_v13 = vld [vmem:[#allocation5 + $0x34] ss:$20 sps:$4 sm:$0xff]   ;;  %v4535_v14 = vld [vmem:[#allocation5 + $0x50] ss:$20 sps:$4 sm:$0xff]  }
  0x61   :  { %1877 = vmatprep.subr.bf16.mxu1 %v4528_v7  ;;  %v4536_v15 = vld [vmem:[#allocation5 + $0x7c] ss:$20 sps:$4 sm:$0xff]   ;;  %v4541_v17 = vld [vmem:[#allocation5 + $0x78] ss:$20 sps:$4 sm:$0xff]   ;;  %v4544_v21 = vld [vmem:[#allocation5 + $0x80] ss:$20 sps:$4 sm:$0xff]  }
  0x62   :  { %1716 = vmatpush1.bf16.msra.mxu0 %v4529_v8  ;;  %4102 = vmatmul.mubr.msk.bf16.vlgmr.msra.gmra.mrb[0].mxu1 %vm1709_vm0, %v5384_v10  ;;  %v4540_v16 = vld [vmem:[#allocation5 + $0x5c] ss:$20 sps:$4 sm:$0xff]   ;;  %v4538_v18 = vld [vmem:[#allocation5 + $0x58] ss:$20 sps:$4 sm:$0xff]   ;;  %v4547_v22 = vld [vmem:[#allocation5 + $0xa0] ss:$20 sps:$4 sm:$0xff]  }
  0x63   :  { %1878 = vmatpush1.bf16.msra.mxu1 %v4526_v6  ;;  %1717 = vmatprep.subr.bf16.mxu0 %v4530_v11  ;;  %v4542_v19 = vld [vmem:[#allocation5 + $0xa4] ss:$20 sps:$4 sm:$0xff]   ;;  %v4548_v23 = vld [vmem:[#allocation5 + $0xcc] ss:$20 sps:$4 sm:$0xff]   ;;  %v4553_v25 = vld [vmem:[#allocation5 + $0xc8] ss:$20 sps:$4 sm:$0xff]  }
  0x64   :  { %1879 = vmatprep.subr.bf16.mxu1 %v4534_v13  ;;  %v4546_v20 = vld [vmem:[#allocation5 + $0x84] ss:$20 sps:$4 sm:$0xff]   ;;  %v4552_v24 = vld [vmem:[#allocation5 + $0xac] ss:$20 sps:$4 sm:$0xff]   ;;  %v4550_v26 = vld [vmem:[#allocation5 + $0xa8] ss:$20 sps:$4 sm:$0xff]  }
  0x65   :  { %v4554_v27 = vld [vmem:[#allocation5 + $0xf4] ss:$20 sps:$4 sm:$0xff]   ;;  %v4556_v29 = vld [vmem:[#allocation5 + $0xd0] ss:$20 sps:$4 sm:$0xff]   ;;  %v4565_v33 = vld [vmem:[#allocation5 + $0x118] ss:$20 sps:$4 sm:$0xff]  }
  0x66   :  { %1718 = vmatpush1.bf16.msra.mxu0 %v4535_v14  ;;  %v4558_v28 = vld [vmem:[#allocation5 + $0xd4] ss:$20 sps:$4 sm:$0xff]   ;;  %v4559_v30 = vld [vmem:[#allocation5 + $0xf0] ss:$20 sps:$4 sm:$0xff]   ;;  %v4562_v34 = vld [vmem:[#allocation5 + $0xf8] ss:$20 sps:$4 sm:$0xff]  }
  0x67   :  { %1880 = vmatpush1.bf16.msra.mxu1 %v4532_v12  ;;  %1719 = vmatprep.subr.bf16.mxu0 %v4536_v15  ;;  %v4560_v31 = vld [vmem:[#allocation5 + $0x11c] ss:$20 sps:$4 sm:$0xff]   ;;  %v4566_v35 = vld [vmem:[#allocation5 + $0x144] ss:$20 sps:$4 sm:$0xff]   ;;  %v4568_v37 = vld [vmem:[#allocation5 + $0x120] ss:$20 sps:$4 sm:$0xff]  }
  0x68   :  { %1881 = vmatprep.subr.bf16.mxu1 %v4540_v16  ;;  %v4564_v32 = vld [vmem:[#allocation5 + $0xfc] ss:$20 sps:$4 sm:$0xff]   ;;  %v4570_v36 = vld [vmem:[#allocation5 + $0x124] ss:$20 sps:$4 sm:$0xff]   ;;  %v4571_v38 = vld [vmem:[#allocation5 + $0x140] ss:$20 sps:$4 sm:$0xff]  }
  0x69   :  { %v4572_v39 = vld [vmem:[#allocation5 + $0x16c] ss:$20 sps:$4 sm:$0xff]   ;;  %v4577_v41 = vld [vmem:[#allocation5 + $0x168] ss:$20 sps:$4 sm:$0xff]   ;;  %v4580_v45 = vld [vmem:[#allocation5 + $0x170] ss:$20 sps:$4 sm:$0xff]  }
  0x6a   :  { %1720 = vmatpush1.bf16.msra.mxu0 %v4541_v17  ;;  %v4576_v40 = vld [vmem:[#allocation5 + $0x14c] ss:$20 sps:$4 sm:$0xff]   ;;  %v4574_v42 = vld [vmem:[#allocation5 + $0x148] ss:$20 sps:$4 sm:$0xff]   ;;  %v4583_v46 = vld [vmem:[#allocation5 + $0x190] ss:$20 sps:$4 sm:$0xff]  }
  0x6b   :  { %1882 = vmatpush1.bf16.msra.mxu1 %v4538_v18  ;;  %1721 = vmatprep.subr.bf16.mxu0 %v4542_v19  ;;  %v4578_v43 = vld [vmem:[#allocation5 + $0x194] ss:$20 sps:$4 sm:$0xff]   ;;  %v4584_v47 = vld [vmem:[#allocation5 + $0x1bc] ss:$20 sps:$4 sm:$0xff]   ;;  %v4589_v50 = vld [vmem:[#allocation5 + $0x1b8] ss:$20 sps:$4 sm:$0xff]  }
  0x6c   :  { %1883 = vmatprep.subr.bf16.mxu1 %v4546_v20  ;;  %v4582_v44 = vld [vmem:[#allocation5 + $0x174] ss:$20 sps:$4 sm:$0xff]   ;;  %v4588_v48 = vld [vmem:[#allocation5 + $0x19c] ss:$20 sps:$4 sm:$0xff]   ;;  %v4586_v52 = vld [vmem:[#allocation5 + $0x198] ss:$20 sps:$4 sm:$0xff]  }
  0x6d   :  { %v101_v49 = vld [vmem:[#allocation2 + $0x8] sm:$0xff]  ;;  %v4590_v53 = vld [vmem:[#allocation5 + $0x1e4] ss:$20 sps:$4 sm:$0xff]   ;;  %v4596_v57 = vld [vmem:[#allocation5 + $0x20c] ss:$20 sps:$4 sm:$0xff]  }
  0x6e   :  { %1722 = vmatpush1.bf16.msra.mxu0 %v4547_v22  ;;  %v5388_v51 = vpack.c.bf16 %v101_v49, %v101_v49  ;;  %v4594_v54 = vld [vmem:[#allocation5 + $0x1c4] ss:$20 sps:$4 sm:$0xff]   ;;  %v4592_v55 = vld [vmem:[#allocation5 + $0x1c0] ss:$20 sps:$4 sm:$0xff]   ;;  %v4598_v59 = vld [vmem:[#allocation5 + $0x1e8] ss:$20 sps:$4 sm:$0xff]  }
  0x6f   :  { %1884 = vmatpush1.bf16.msra.mxu1 %v4544_v21  ;;  %1723 = vmatprep.subr.bf16.mxu0 %v4548_v23  ;;  %v4595_v56 = vld [vmem:[#allocation5 + $0x1e0] ss:$20 sps:$4 sm:$0xff]   ;;  %v4601_v60 = vld [vmem:[#allocation5 + $0x208] ss:$20 sps:$4 sm:$0xff]   ;;  %v4604_v63 = vld [vmem:[#allocation5 + $0x210] ss:$20 sps:$4 sm:$0xff]  }
  0x70   :  { %1885 = vmatprep.subr.bf16.mxu1 %v4552_v24  ;;  %1745 = vmatprep.mubr.bf16.mxu0 %v5388_v51  ;;  %v4600_v58 = vld [vmem:[#allocation5 + $0x1ec] ss:$20 sps:$4 sm:$0xff]   ;;  %v4602_v61 = vld [vmem:[#allocation5 + $0x234] ss:$20 sps:$4 sm:$0xff]   ;;  %v4607_v1 = vld [vmem:[#allocation5 + $0x230] ss:$20 sps:$4 sm:$0xff]  }
  0x71   :  { %1909 = vmatprep.mubr.bf16.mxu1 %v5388_v51  ;;  %v4606_v62 = vld [vmem:[#allocation5 + $0x214] ss:$20 sps:$4 sm:$0xff]   ;;  %v4608_v2 = vld [vmem:[#allocation5 + $0x25c] ss:$20 sps:$4 sm:$0xff]   ;;  %v4610_v4 = vld [vmem:[#allocation5 + $0x238] ss:$20 sps:$4 sm:$0xff]  }
  0x72   :  { %1724 = vmatpush1.bf16.msra.mxu0 %v4553_v25  ;;  %v4612_v3 = vld [vmem:[#allocation5 + $0x23c] ss:$20 sps:$4 sm:$0xff]   ;;  %v4613_v5 = vld [vmem:[#allocation5 + $0x258] ss:$20 sps:$4 sm:$0xff]   ;;  %v4614_v11 = vld [vmem:[#allocation5 + $0x280] ss:$20 sps:$4 sm:$0xff]  }
  0x73   :  { %1886 = vmatpush1.bf16.msra.mxu1 %v4550_v26  ;;  %1725 = vmatprep.subr.bf16.mxu0 %v4554_v27  ;;  %v100_v6 = vld [vmem:[#allocation2] sm:$0xff]  ;;  %v4616_v7 = vld [vmem:[#allocation5 + $0x284] ss:$20 sps:$4 sm:$0xff]   ;;  %v4617_v12 = vld [vmem:[#allocation5 + $0x260] ss:$20 sps:$4 sm:$0xff]  }
  0x74   :  { %1887 = vmatprep.subr.bf16.mxu1 %v4558_v28  ;;  %v4619_v8 = vld [vmem:[#allocation5 + $0x264] ss:$20 sps:$4 sm:$0xff]   ;;  %v5392_v9 = vpack.c.bf16 %v100_v6, %v100_v6  ;;  %v4622_v13 = vld [vmem:[#allocation5 + $0x2ac] ss:$20 sps:$4 sm:$0xff]   ;;  %v4620_v15 = vld [vmem:[#allocation5 + $0x2a8] ss:$20 sps:$4 sm:$0xff]  }
  0x75   :  { %v4625_v14 = vld [vmem:[#allocation5 + $0x28c] ss:$20 sps:$4 sm:$0xff]   ;;  %v4623_v16 = vld [vmem:[#allocation5 + $0x288] ss:$20 sps:$4 sm:$0xff]   ;;  %v4626_v19 = vld [vmem:[#allocation5 + $0x2d0] ss:$20 sps:$4 sm:$0xff]  }
  0x76   :  { %1726 = vmatpush1.bf16.msra.mxu0 %v4559_v30  ;;  %v4628_v17 = vld [vmem:[#allocation5 + $0x2d4] ss:$20 sps:$4 sm:$0xff]   ;;  %v4629_v20 = vld [vmem:[#allocation5 + $0x2b0] ss:$20 sps:$4 sm:$0xff]   ;;  %v4632_v23 = vld [vmem:[#allocation5 + $0x2f8] ss:$20 sps:$4 sm:$0xff]  }
  0x77   :  { %1888 = vmatpush1.bf16.msra.mxu1 %v4556_v29  ;;  %1727 = vmatprep.subr.bf16.mxu0 %v4560_v31  ;;  %v4631_v18 = vld [vmem:[#allocation5 + $0x2b4] ss:$20 sps:$4 sm:$0xff]   ;;  %v4634_v21 = vld [vmem:[#allocation5 + $0x2fc] ss:$20 sps:$4 sm:$0xff]   ;;  %v4635_v24 = vld [vmem:[#allocation5 + $0x2d8] ss:$20 sps:$4 sm:$0xff]  }
  0x78   :  { %1889 = vmatprep.subr.bf16.mxu1 %v4564_v32  ;;  %v4637_v22 = vld [vmem:[#allocation5 + $0x2dc] ss:$20 sps:$4 sm:$0xff]   ;;  %v4640_v25 = vld [vmem:[#allocation5 + $0x324] ss:$20 sps:$4 sm:$0xff]   ;;  %v4638_v27 = vld [vmem:[#allocation5 + $0x320] ss:$20 sps:$4 sm:$0xff]  }
  0x79   :  { %v4643_v26 = vld [vmem:[#allocation5 + $0x304] ss:$20 sps:$4 sm:$0xff]   ;;  %v4641_v28 = vld [vmem:[#allocation5 + $0x300] ss:$20 sps:$4 sm:$0xff]   ;;  %v4644_v31 = vld [vmem:[#allocation5 + $0x348] ss:$20 sps:$4 sm:$0xff]  }
  0x7a   :  { %1728 = vmatpush1.bf16.msra.mxu0 %v4565_v33  ;;  %v4646_v29 = vld [vmem:[#allocation5 + $0x34c] ss:$20 sps:$4 sm:$0xff]   ;;  %v4647_v32 = vld [vmem:[#allocation5 + $0x328] ss:$20 sps:$4 sm:$0xff]  }
  0x7b   :  { %1890 = vmatpush1.bf16.msra.mxu1 %v4562_v34  ;;  %1729 = vmatprep.subr.bf16.mxu0 %v4566_v35  ;;  %v4649_v30 = vld [vmem:[#allocation5 + $0x32c] ss:$20 sps:$4 sm:$0xff]   ;;  %v4652_v33 = vld [vmem:[#allocation5 + $0x374] ss:$20 sps:$4 sm:$0xff]  }
  0x7c   :  { %1891 = vmatprep.subr.bf16.mxu1 %v4570_v36  ;;  %v4655_v34 = vld [vmem:[#allocation5 + $0x354] ss:$20 sps:$4 sm:$0xff]   ;;  %v103_v35 = vld [vmem:[#allocation2 + $0x18] sm:$0xff] }
  0x7d   :  { %v5396_v36 = vpack.c.bf16 %v103_v35, %v103_v35  ;;  %v4668_v49 = vld [vmem:[#allocation5 + $0x3e8] ss:$20 sps:$4 sm:$0xff]   ;;  %v4736_v35 = vld [vmem:[#allocation5 + $0x5a4] ss:$20 sps:$4 sm:$0xff]  }
  0x7e   :  { %1730 = vmatpush1.bf16.msra.mxu0 %v4571_v38  ;;  %v4653_v38 = vld [vmem:[#allocation5 + $0x350] ss:$20 sps:$4 sm:$0xff]   ;;  %v4703_v6 = vld [vmem:[#allocation5 + $0x494] ss:$20 sps:$4 sm:$0xff]  }
  0x7f   :  { %1892 = vmatpush1.bf16.msra.mxu1 %v4568_v37  ;;  %1731 = vmatprep.subr.bf16.mxu0 %v4572_v39  ;;  %v4650_v37 = vld [vmem:[#allocation5 + $0x370] ss:$20 sps:$4 sm:$0xff]  }
  0x80   :  { %1893 = vmatprep.subr.bf16.mxu1 %v4576_v40  ;;  %v4658_v39 = vld [vmem:[#allocation5 + $0x39c] ss:$20 sps:$4 sm:$0xff]  }
  0x81   :  { %v4661_v40 = vld [vmem:[#allocation5 + $0x37c] ss:$20 sps:$4 sm:$0xff]  }
  0x82   :  { %1732 = vmatpush1.bf16.msra.mxu0 %v4577_v41  ;;  %v4656_v41 = vld [vmem:[#allocation5 + $0x398] ss:$20 sps:$4 sm:$0xff]  }
  0x83   :  { %1894 = vmatpush1.bf16.msra.mxu1 %v4574_v42  ;;  %1733 = vmatprep.subr.bf16.mxu0 %v4578_v43  ;;  %v4659_v42 = vld [vmem:[#allocation5 + $0x378] ss:$20 sps:$4 sm:$0xff]  }
  0x84   :  { %1895 = vmatprep.subr.bf16.mxu1 %v4582_v44  ;;  %v4664_v43 = vld [vmem:[#allocation5 + $0x3c4] ss:$20 sps:$4 sm:$0xff]  }
  0x85   :  { %v4667_v44 = vld [vmem:[#allocation5 + $0x3a4] ss:$20 sps:$4 sm:$0xff]  }
  0x86   :  { %1734 = vmatpush1.bf16.msra.mxu0 %v4583_v46  ;;  %v4665_v46 = vld [vmem:[#allocation5 + $0x3a0] ss:$20 sps:$4 sm:$0xff]  }
  0x87   :  { %1896 = vmatpush1.bf16.msra.mxu1 %v4580_v45  ;;  %1735 = vmatprep.subr.bf16.mxu0 %v4584_v47  ;;  %v4662_v45 = vld [vmem:[#allocation5 + $0x3c0] ss:$20 sps:$4 sm:$0xff]  }
  0x88   :  { %1897 = vmatprep.subr.bf16.mxu1 %v4588_v48  ;;  %v4670_v47 = vld [vmem:[#allocation5 + $0x3ec] ss:$20 sps:$4 sm:$0xff]  }
  0x89   :  { %v4673_v48 = vld [vmem:[#allocation5 + $0x3cc] ss:$20 sps:$4 sm:$0xff]  }
  0x8a   :  { %1736 = vmatpush1.bf16.msra.mxu0 %v4589_v50  ;;  %v4671_v50 = vld [vmem:[#allocation5 + $0x3c8] ss:$20 sps:$4 sm:$0xff]  }
  0x8b   :  { %1898 = vmatpush1.bf16.msra.mxu1 %v4586_v52  ;;  %1737 = vmatprep.subr.bf16.mxu0 %v4590_v53  ;;  %v4676_v52 = vld [vmem:[#allocation5 + $0x414] ss:$20 sps:$4 sm:$0xff]  }
  0x8c   :  { %1899 = vmatprep.subr.bf16.mxu1 %v4594_v54  ;;  %v4679_v53 = vld [vmem:[#allocation5 + $0x3f4] ss:$20 sps:$4 sm:$0xff]   ;;  %v4674_v54 = vld [vmem:[#allocation5 + $0x410] ss:$20 sps:$4 sm:$0xff]  }
  0x8e   :  { %1738 = vmatpush1.bf16.msra.mxu0 %v4595_v56  ;;  %v4682_v56 = vld [vmem:[#allocation5 + $0x43c] ss:$20 sps:$4 sm:$0xff]  }
  0x8f   :  { %1900 = vmatpush1.bf16.msra.mxu1 %v4592_v55  ;;  %1739 = vmatprep.subr.bf16.mxu0 %v4596_v57  ;;  %v4677_v55 = vld [vmem:[#allocation5 + $0x3f0] ss:$20 sps:$4 sm:$0xff]  }
  0x90   :  { %1901 = vmatprep.subr.bf16.mxu1 %v4600_v58  ;;  %v4685_v57 = vld [vmem:[#allocation5 + $0x41c] ss:$20 sps:$4 sm:$0xff]   ;;  %v4680_v58 = vld [vmem:[#allocation5 + $0x438] ss:$20 sps:$4 sm:$0xff]  }
  0x92   :  { %1740 = vmatpush1.bf16.msra.mxu0 %v4601_v60  ;;  %v4688_v60 = vld [vmem:[#allocation5 + $0x464] ss:$20 sps:$4 sm:$0xff]  }
  0x93   :  { %1902 = vmatpush1.bf16.msra.mxu1 %v4598_v59  ;;  %1741 = vmatprep.subr.bf16.mxu0 %v4602_v61  ;;  %v4683_v59 = vld [vmem:[#allocation5 + $0x418] ss:$20 sps:$4 sm:$0xff]  }
  0x94   :  { %1903 = vmatprep.subr.bf16.mxu1 %v4606_v62  ;;  %v4691_v61 = vld [vmem:[#allocation5 + $0x444] ss:$20 sps:$4 sm:$0xff]   ;;  %v4686_v62 = vld [vmem:[#allocation5 + $0x460] ss:$20 sps:$4 sm:$0xff]  }
  0x96   :  { %1742 = vmatpush1.bf16.msra.mxu0 %v4607_v1  ;;  %v4694_v1 = vld [vmem:[#allocation5 + $0x48c] ss:$20 sps:$4 sm:$0xff]  }
  0x97   :  { %1904 = vmatpush1.bf16.msra.mxu1 %v4604_v63  ;;  %1743 = vmatprep.subr.bf16.mxu0 %v4608_v2  ;;  %v4689_v63 = vld [vmem:[#allocation5 + $0x440] ss:$20 sps:$4 sm:$0xff]  }
  0x98   :  { %1905 = vmatprep.subr.bf16.mxu1 %v4612_v3  ;;  %v4697_v2 = vld [vmem:[#allocation5 + $0x46c] ss:$20 sps:$4 sm:$0xff]   ;;  %v4692_v3 = vld [vmem:[#allocation5 + $0x488] ss:$20 sps:$4 sm:$0xff]  }
  0x9a   :  { %1744 = vmatpush1.bf16.msra.mxu0 %v4613_v5  ;;  %v4700_v5 = vld [vmem:[#allocation5 + $0x4b4] ss:$20 sps:$4 sm:$0xff]  }
  0x9b   :  { %1906 = vmatpush1.bf16.msra.mxu1 %v4610_v4  ;;  %1754 = vmatprep.subr.bf16.mxu0 %v4616_v7  ;;  %v4695_v4 = vld [vmem:[#allocation5 + $0x468] ss:$20 sps:$4 sm:$0xff]   ;;  %v4698_v7 = vld [vmem:[#allocation5 + $0x4b0] ss:$20 sps:$4 sm:$0xff]  }
  0x9c   :  { %1907 = vmatprep.subr.bf16.mxu1 %v4619_v8  ;;  %v4701_v8 = vld [vmem:[#allocation5 + $0x490] ss:$20 sps:$4 sm:$0xff]  }
  0x9d   :  { %1746 = vmatmul.mubr.bf16.vlgmr.msra.gmra.mrb[0].mxu0 %v5392_v9 }
  0x9e   :  { %1755 = vmatpush1.bf16.msra.mxu0 %v4614_v11  ;;  %1786 = vmatprep.mubr.bf16.mxu0 %v5396_v36  ;;  %v4706_v11 = vld [vmem:[#allocation5 + $0x4dc] ss:$20 sps:$4 sm:$0xff]  }
  0x9f   :  { %1908 = vmatpush1.bf16.msra.mxu1 %v4617_v12  ;;  %1756 = vmatprep.subr.bf16.mxu0 %v4622_v13  ;;  %v4709_v12 = vld [vmem:[#allocation5 + $0x4bc] ss:$20 sps:$4 sm:$0xff]   ;;  %v4704_v13 = vld [vmem:[#allocation5 + $0x4d8] ss:$20 sps:$4 sm:$0xff]  }
  0xa0   :  { %1918 = vmatprep.subr.bf16.mxu1 %v4625_v14  ;;  %v102_v14 = vld [vmem:[#allocation2 + $0x10] sm:$0xff] }
  0xa2   :  { %1757 = vmatpush1.bf16.msra.mxu0 %v4620_v15  ;;  %1910 = vmatmul.mubr.bf16.vlgmr.msra.gmra.mrb[4].mxu1 %v5392_v9  ;;  %v4707_v15 = vld [vmem:[#allocation5 + $0x4b8] ss:$20 sps:$4 sm:$0xff]  }
  0xa3   :  { %1919 = vmatpush1.bf16.msra.mxu1 %v4623_v16  ;;  %1758 = vmatprep.subr.bf16.mxu0 %v4628_v17  ;;  %v4712_v16 = vld [vmem:[#allocation5 + $0x504] ss:$20 sps:$4 sm:$0xff]  }
  0xa4   :  { %1920 = vmatprep.subr.bf16.mxu1 %v4631_v18  ;;  %1950 = vmatprep.mubr.bf16.mxu1 %v5396_v36  ;;  %v4715_v17 = vld [vmem:[#allocation5 + $0x4e4] ss:$20 sps:$4 sm:$0xff]   ;;  %v5400_v18 = vpack.c.bf16 %v102_v14, %v102_v14  ;;  %v4788_v14 = vld [vmem:[#allocation5 + $0x708] ss:$20 sps:$4 sm:$0xff]  }
  0xa6   :  { %1759 = vmatpush1.bf16.msra.mxu0 %v4626_v19  ;;  %v4710_v19 = vld [vmem:[#allocation5 + $0x500] ss:$20 sps:$4 sm:$0xff]  }
  0xa7   :  { %1921 = vmatpush1.bf16.msra.mxu1 %v4629_v20  ;;  %1760 = vmatprep.subr.bf16.mxu0 %v4634_v21  ;;  %v4713_v20 = vld [vmem:[#allocation5 + $0x4e0] ss:$20 sps:$4 sm:$0xff]  }
  0xa8   :  { %1922 = vmatprep.subr.bf16.mxu1 %v4637_v22  ;;  %v4718_v21 = vld [vmem:[#allocation5 + $0x52c] ss:$20 sps:$4 sm:$0xff]   ;;  %v105_v22 = vld [vmem:[#allocation2 + $0x28] sm:$0xff] }
  0xaa   :  { %1761 = vmatpush1.bf16.msra.mxu0 %v4632_v23  ;;  %v4721_v23 = vld [vmem:[#allocation5 + $0x50c] ss:$20 sps:$4 sm:$0xff]  }
  0xab   :  { %1923 = vmatpush1.bf16.msra.mxu1 %v4635_v24  ;;  %1762 = vmatprep.subr.bf16.mxu0 %v4640_v25  ;;  %v5402_v24 = vpack.c.bf16 %v105_v22, %v105_v22  ;;  %v4716_v25 = vld [vmem:[#allocation5 + $0x528] ss:$20 sps:$4 sm:$0xff]  }
  0xac   :  { %1924 = vmatprep.subr.bf16.mxu1 %v4643_v26  ;;  %v4719_v26 = vld [vmem:[#allocation5 + $0x508] ss:$20 sps:$4 sm:$0xff]  }
  0xad   :  { %v4805_v22 = vld [vmem:[#allocation5 + $0x73c] ss:$20 sps:$4 sm:$0xff]  }
  0xae   :  { %1763 = vmatpush1.bf16.msra.mxu0 %v4638_v27  ;;  %v4724_v27 = vld [vmem:[#allocation5 + $0x554] ss:$20 sps:$4 sm:$0xff]  }
  0xaf   :  { %1925 = vmatpush1.bf16.msra.mxu1 %v4641_v28  ;;  %1764 = vmatprep.subr.bf16.mxu0 %v4646_v29  ;;  %v4727_v28 = vld [vmem:[#allocation5 + $0x534] ss:$20 sps:$4 sm:$0xff]   ;;  %v4722_v29 = vld [vmem:[#allocation5 + $0x550] ss:$20 sps:$4 sm:$0xff]  }
  0xb0   :  { %1926 = vmatprep.subr.bf16.mxu1 %v4649_v30  ;;  %v4725_v30 = vld [vmem:[#allocation5 + $0x530] ss:$20 sps:$4 sm:$0xff]  }
  0xb2   :  { %1765 = vmatpush1.bf16.msra.mxu0 %v4644_v31  ;;  %v4730_v31 = vld [vmem:[#allocation5 + $0x57c] ss:$20 sps:$4 sm:$0xff]  }
  0xb3   :  { %1927 = vmatpush1.bf16.msra.mxu1 %v4647_v32  ;;  %1766 = vmatprep.subr.bf16.mxu0 %v4652_v33  ;;  %v4733_v32 = vld [vmem:[#allocation5 + $0x55c] ss:$20 sps:$4 sm:$0xff]   ;;  %v4728_v33 = vld [vmem:[#allocation5 + $0x578] ss:$20 sps:$4 sm:$0xff]  }
  0xb4   :  { %1928 = vmatprep.subr.bf16.mxu1 %v4655_v34  ;;  %v4731_v34 = vld [vmem:[#allocation5 + $0x558] ss:$20 sps:$4 sm:$0xff]  }
  0xb6   :  { %1767 = vmatpush1.bf16.msra.mxu0 %v4650_v37  ;;  %v4739_v37 = vld [vmem:[#allocation5 + $0x584] ss:$20 sps:$4 sm:$0xff]  }
  0xb7   :  { %1929 = vmatpush1.bf16.msra.mxu1 %v4653_v38  ;;  %1768 = vmatprep.subr.bf16.mxu0 %v4658_v39  ;;  %v4734_v38 = vld [vmem:[#allocation5 + $0x5a0] ss:$20 sps:$4 sm:$0xff]  }
  0xb8   :  { %1930 = vmatprep.subr.bf16.mxu1 %v4661_v40  ;;  %v4737_v39 = vld [vmem:[#allocation5 + $0x580] ss:$20 sps:$4 sm:$0xff]  }
  0xb9   :  { %v4742_v40 = vld [vmem:[#allocation5 + $0x5cc] ss:$20 sps:$4 sm:$0xff]  }
  0xba   :  { %1769 = vmatpush1.bf16.msra.mxu0 %v4656_v41  ;;  %v4745_v41 = vld [vmem:[#allocation5 + $0x5ac] ss:$20 sps:$4 sm:$0xff]  }
  0xbb   :  { %1931 = vmatpush1.bf16.msra.mxu1 %v4659_v42  ;;  %1770 = vmatprep.subr.bf16.mxu0 %v4664_v43  ;;  %v4740_v42 = vld [vmem:[#allocation5 + $0x5c8] ss:$20 sps:$4 sm:$0xff]  }
  0xbc   :  { %1932 = vmatprep.subr.bf16.mxu1 %v4667_v44  ;;  %v4743_v43 = vld [vmem:[#allocation5 + $0x5a8] ss:$20 sps:$4 sm:$0xff]  }
  0xbd   :  { %v4748_v44 = vld [vmem:[#allocation5 + $0x5f4] ss:$20 sps:$4 sm:$0xff]  }
  0xbe   :  { %1771 = vmatpush1.bf16.msra.mxu0 %v4662_v45  ;;  %v4751_v45 = vld [vmem:[#allocation5 + $0x5d4] ss:$20 sps:$4 sm:$0xff]  }
  0xbf   :  { %1933 = vmatpush1.bf16.msra.mxu1 %v4665_v46  ;;  %1772 = vmatprep.subr.bf16.mxu0 %v4670_v47  ;;  %v4746_v46 = vld [vmem:[#allocation5 + $0x5f0] ss:$20 sps:$4 sm:$0xff]  }
  0xc0   :  { %1934 = vmatprep.subr.bf16.mxu1 %v4673_v48  ;;  %v4749_v47 = vld [vmem:[#allocation5 + $0x5d0] ss:$20 sps:$4 sm:$0xff]  }
  0xc1   :  { %v4754_v48 = vld [vmem:[#allocation5 + $0x61c] ss:$20 sps:$4 sm:$0xff]  }
  0xc2   :  { %1773 = vmatpush1.bf16.msra.mxu0 %v4668_v49  ;;  %v4757_v49 = vld [vmem:[#allocation5 + $0x5fc] ss:$20 sps:$4 sm:$0xff]  }
  0xc3   :  { %1935 = vmatpush1.bf16.msra.mxu1 %v4671_v50  ;;  %1774 = vmatprep.subr.bf16.mxu0 %v4676_v52  ;;  %v4752_v50 = vld [vmem:[#allocation5 + $0x618] ss:$20 sps:$4 sm:$0xff]  }
  0xc4   :  { %1936 = vmatprep.subr.bf16.mxu1 %v4679_v53  ;;  %v4755_v52 = vld [vmem:[#allocation5 + $0x5f8] ss:$20 sps:$4 sm:$0xff]  }
  0xc5   :  { %v4760_v53 = vld [vmem:[#allocation5 + $0x644] ss:$20 sps:$4 sm:$0xff]  }
  0xc6   :  { %1775 = vmatpush1.bf16.msra.mxu0 %v4674_v54  ;;  %v4763_v54 = vld [vmem:[#allocation5 + $0x624] ss:$20 sps:$4 sm:$0xff]  }
  0xc7   :  { %1937 = vmatpush1.bf16.msra.mxu1 %v4677_v55  ;;  %1776 = vmatprep.subr.bf16.mxu0 %v4682_v56  ;;  %v4758_v55 = vld [vmem:[#allocation5 + $0x640] ss:$20 sps:$4 sm:$0xff]  }
  0xc8   :  { %1938 = vmatprep.subr.bf16.mxu1 %v4685_v57  ;;  %v4761_v56 = vld [vmem:[#allocation5 + $0x620] ss:$20 sps:$4 sm:$0xff]  }
  0xc9   :  { %v4766_v57 = vld [vmem:[#allocation5 + $0x66c] ss:$20 sps:$4 sm:$0xff]  }
  0xca   :  { %1777 = vmatpush1.bf16.msra.mxu0 %v4680_v58  ;;  %v4769_v58 = vld [vmem:[#allocation5 + $0x64c] ss:$20 sps:$4 sm:$0xff]  }
  0xcb   :  { %1939 = vmatpush1.bf16.msra.mxu1 %v4683_v59  ;;  %1778 = vmatprep.subr.bf16.mxu0 %v4688_v60  ;;  %v4764_v59 = vld [vmem:[#allocation5 + $0x668] ss:$20 sps:$4 sm:$0xff]  }
  0xcc   :  { %1940 = vmatprep.subr.bf16.mxu1 %v4691_v61  ;;  %v4767_v60 = vld [vmem:[#allocation5 + $0x648] ss:$20 sps:$4 sm:$0xff]  }
  0xcd   :  { %v4772_v61 = vld [vmem:[#allocation5 + $0x694] ss:$20 sps:$4 sm:$0xff]  }
  0xce   :  { %1779 = vmatpush1.bf16.msra.mxu0 %v4686_v62  ;;  %v4775_v62 = vld [vmem:[#allocation5 + $0x674] ss:$20 sps:$4 sm:$0xff]  }
  0xcf   :  { %1941 = vmatpush1.bf16.msra.mxu1 %v4689_v63  ;;  %1780 = vmatprep.subr.bf16.mxu0 %v4694_v1  ;;  %v4770_v63 = vld [vmem:[#allocation5 + $0x690] ss:$20 sps:$4 sm:$0xff]  }
  0xd0   :  { %1942 = vmatprep.subr.bf16.mxu1 %v4697_v2  ;;  %v4773_v1 = vld [vmem:[#allocation5 + $0x670] ss:$20 sps:$4 sm:$0xff]  }
  0xd1   :  { %v4778_v2 = vld [vmem:[#allocation5 + $0x6bc] ss:$20 sps:$4 sm:$0xff]  }
  0xd2   :  { %1781 = vmatpush1.bf16.msra.mxu0 %v4692_v3  ;;  %v4781_v3 = vld [vmem:[#allocation5 + $0x69c] ss:$20 sps:$4 sm:$0xff]  }
  0xd3   :  { %1943 = vmatpush1.bf16.msra.mxu1 %v4695_v4  ;;  %1782 = vmatprep.subr.bf16.mxu0 %v4700_v5  ;;  %v4776_v4 = vld [vmem:[#allocation5 + $0x6b8] ss:$20 sps:$4 sm:$0xff]  }
  0xd4   :  { %1944 = vmatprep.subr.bf16.mxu1 %v4703_v6  ;;  %v4779_v5 = vld [vmem:[#allocation5 + $0x698] ss:$20 sps:$4 sm:$0xff]  }
  0xd5   :  { %v4784_v6 = vld [vmem:[#allocation5 + $0x6e4] ss:$20 sps:$4 sm:$0xff]  }
  0xd6   :  { %1783 = vmatpush1.bf16.msra.mxu0 %v4698_v7  ;;  %v4787_v7 = vld [vmem:[#allocation5 + $0x6c4] ss:$20 sps:$4 sm:$0xff]  }
  0xd7   :  { %1945 = vmatpush1.bf16.msra.mxu1 %v4701_v8  ;;  %1784 = vmatprep.subr.bf16.mxu0 %v4706_v11  ;;  %v4782_v8 = vld [vmem:[#allocation5 + $0x6e0] ss:$20 sps:$4 sm:$0xff]  }
  0xd8   :  { %1946 = vmatprep.subr.bf16.mxu1 %v4709_v12  ;;  %v4785_v11 = vld [vmem:[#allocation5 + $0x6c0] ss:$20 sps:$4 sm:$0xff]  }
  0xd9   :  { %v4790_v12 = vld [vmem:[#allocation5 + $0x70c] ss:$20 sps:$4 sm:$0xff]  }
  0xda   :  { %1785 = vmatpush1.bf16.msra.mxu0 %v4704_v13  ;;  %v4793_v13 = vld [vmem:[#allocation5 + $0x6ec] ss:$20 sps:$4 sm:$0xff]  }
  0xdb   :  { %1947 = vmatpush1.bf16.msra.mxu1 %v4707_v15  ;;  %1795 = vmatprep.subr.bf16.mxu0 %v4712_v16  ;;  %v4791_v15 = vld [vmem:[#allocation5 + $0x6e8] ss:$20 sps:$4 sm:$0xff]  }
  0xdc   :  { %1948 = vmatprep.subr.bf16.mxu1 %v4715_v17  ;;  %v4796_v16 = vld [vmem:[#allocation5 + $0x734] ss:$20 sps:$4 sm:$0xff]  }
  0xdd   :  { %1787 = vmatmul.mubr.bf16.vlgmr.msra.gmra.mrb[0].mxu0 %v5400_v18  ;;  %v4799_v17 = vld [vmem:[#allocation5 + $0x714] ss:$20 sps:$4 sm:$0xff]  }
  0xde   :  { %1796 = vmatpush1.bf16.msra.mxu0 %v4710_v19  ;;  %1827 = vmatprep.mubr.bf16.mxu0 %v5402_v24  ;;  %v4794_v19 = vld [vmem:[#allocation5 + $0x730] ss:$20 sps:$4 sm:$0xff]  }
  0xdf   :  { %1949 = vmatpush1.bf16.msra.mxu1 %v4713_v20  ;;  %1797 = vmatprep.subr.bf16.mxu0 %v4718_v21  ;;  %v4797_v20 = vld [vmem:[#allocation5 + $0x710] ss:$20 sps:$4 sm:$0xff]  }
  0xe0   :  { %1959 = vmatprep.subr.bf16.mxu1 %v4721_v23  ;;  %v4802_v21 = vld [vmem:[#allocation5 + $0x75c] ss:$20 sps:$4 sm:$0xff]   ;;  %v4800_v23 = vld [vmem:[#allocation5 + $0x758] ss:$20 sps:$4 sm:$0xff]  }
  0xe2   :  { %1798 = vmatpush1.bf16.msra.mxu0 %v4716_v25  ;;  %1951 = vmatmul.mubr.bf16.vlgmr.msra.gmra.mrb[4].mxu1 %v5400_v18  ;;  %v104_v25 = vld [vmem:[#allocation2 + $0x20] sm:$0xff] }
  0xe3   :  { %1960 = vmatpush1.bf16.msra.mxu1 %v4719_v26  ;;  %1799 = vmatprep.subr.bf16.mxu0 %v4724_v27  ;;  %v4803_v26 = vld [vmem:[#allocation5 + $0x738] ss:$20 sps:$4 sm:$0xff]   ;;  %v4809_v27 = vld [vmem:[#allocation5 + $0x150] ss:$20 sps:$4 sm:$0xff]  }
  0xe4   :  { %1961 = vmatprep.subr.bf16.mxu1 %v4727_v28  ;;  %1991 = vmatprep.mubr.bf16.mxu1 %v5402_v24  ;;  %v4808_v28 = vld [vmem:[#allocation5 + $0x764] ss:$20 sps:$4 sm:$0xff]  }
  0xe6   :  { %1800 = vmatpush1.bf16.msra.mxu0 %v4722_v29  ;;  %v5408_v29 = vpack.c.bf16 %v104_v25, %v104_v25  ;;  %v4861_v25 = vld [vmem:[#allocation7] ss:$12 sps:$4 sm:$0xff]  }
  0xe7   :  { %1962 = vmatpush1.bf16.msra.mxu1 %v4725_v30  ;;  %1801 = vmatprep.subr.bf16.mxu0 %v4730_v31  ;;  %v4810_v30 = vld [vmem:[#allocation5 + $0x10] ss:$20 sps:$4 sm:$0xff]   ;;  %v4806_v31 = vld [vmem:[#allocation5 + $0x760] ss:$20 sps:$4 sm:$0xff]  }
  0xe8   :  { %1963 = vmatprep.subr.bf16.mxu1 %v4733_v32  ;;  %v4811_v32 = vld [vmem:[#allocation5 + $0x178] ss:$20 sps:$4 sm:$0xff]  }
  0xea   :  { %1802 = vmatpush1.bf16.msra.mxu0 %v4728_v33  ;;  %v4817_v33 = vld [vmem:[#allocation5 + $0x78c] ss:$20 sps:$4 sm:$0xff]  }
  0xeb   :  { %1964 = vmatpush1.bf16.msra.mxu1 %v4731_v34  ;;  %1803 = vmatprep.subr.bf16.mxu0 %v4736_v35  ;;  %v4812_v34 = vld [vmem:[#allocation5 + $0x38] ss:$20 sps:$4 sm:$0xff]   ;;  %v4813_v35 = vld [vmem:[#allocation5 + $0x1a0] ss:$20 sps:$4 sm:$0xff]  }
  0xec   :  { %1965 = vmatprep.subr.bf16.mxu1 %v4739_v37  ;;  %v4815_v37 = vld [vmem:[#allocation5 + $0x788] ss:$20 sps:$4 sm:$0xff]  }
  0xee   :  { %1804 = vmatpush1.bf16.msra.mxu0 %v4734_v38  ;;  %v4828_v38 = vld [vmem:[#allocation5 + $0x3d0] ss:$20 sps:$4 sm:$0xff]  }
  0xef   :  { %1966 = vmatpush1.bf16.msra.mxu1 %v4737_v39  ;;  %1805 = vmatprep.subr.bf16.mxu0 %v4742_v40  ;;  %v4814_v39 = vld [vmem:[#allocation5 + $0x60] ss:$20 sps:$4 sm:$0xff]   ;;  %v4818_v40 = vld [vmem:[#allocation5 + $0x1c8] ss:$20 sps:$4 sm:$0xff]  }
  0xf0   :  { %1967 = vmatprep.subr.bf16.mxu1 %v4745_v41  ;;  %v4819_v41 = vld [vmem:[#allocation5 + $0x88] ss:$20 sps:$4 sm:$0xff]  }
  0xf2   :  { %1806 = vmatpush1.bf16.msra.mxu0 %v4740_v42  ;;  %v4820_v42 = vld [vmem:[#allocation5 + $0x1f0] ss:$20 sps:$4 sm:$0xff]  }
  0xf3   :  { %1968 = vmatpush1.bf16.msra.mxu1 %v4743_v43  ;;  %1807 = vmatprep.subr.bf16.mxu0 %v4748_v44  ;;  %v4822_v43 = vld [vmem:[#allocation5 + $0x218] ss:$20 sps:$4 sm:$0xff]   ;;  %v4829_v44 = vld [vmem:[#allocation5 + $0x290] ss:$20 sps:$4 sm:$0xff]  }
  0xf4   :  { %1969 = vmatprep.subr.bf16.mxu1 %v4751_v45  ;;  %v4823_v45 = vld [vmem:[#allocation5 + $0xd8] ss:$20 sps:$4 sm:$0xff]  }
  0xf6   :  { %1808 = vmatpush1.bf16.msra.mxu0 %v4746_v46  ;;  %v4831_v46 = vld [vmem:[#allocation5 + $0x3f8] ss:$20 sps:$4 sm:$0xff]  }
  0xf7   :  { %1970 = vmatpush1.bf16.msra.mxu1 %v4749_v47  ;;  %1809 = vmatprep.subr.bf16.mxu0 %v4754_v48  ;;  %v4824_v47 = vld [vmem:[#allocation5 + $0x240] ss:$20 sps:$4 sm:$0xff]   ;;  %v4833_v48 = vld [vmem:[#allocation5 + $0x2b8] ss:$20 sps:$4 sm:$0xff]  }
  0xf8   :  { %1971 = vmatprep.subr.bf16.mxu1 %v4757_v49  ;;  %v4835_v49 = vld [vmem:[#allocation5 + $0x420] ss:$20 sps:$4 sm:$0xff]  }
  0xfa   :  { %1810 = vmatpush1.bf16.msra.mxu0 %v4752_v50  ;;  %v4825_v50 = vld [vmem:[#allocation5 + $0x100] ss:$20 sps:$4 sm:$0xff]  }
  0xfb   :  { %1972 = vmatpush1.bf16.msra.mxu1 %v4755_v52  ;;  %1811 = vmatprep.subr.bf16.mxu0 %v4760_v53  ;;  %v4826_v52 = vld [vmem:[#allocation5 + $0x268] ss:$20 sps:$4 sm:$0xff]   ;;  %v4837_v53 = vld [vmem:[#allocation5 + $0x2e0] ss:$20 sps:$4 sm:$0xff]  }
  0xfc   :  { %1973 = vmatprep.subr.bf16.mxu1 %v4763_v54  ;;  %v4839_v54 = vld [vmem:[#allocation5 + $0x448] ss:$20 sps:$4 sm:$0xff]  }
  0xfe   :  { %1812 = vmatpush1.bf16.msra.mxu0 %v4758_v55  ;;  %v4827_v55 = vld [vmem:[#allocation5 + $0x128] ss:$20 sps:$4 sm:$0xff]  }
  0xff   :  { %1974 = vmatpush1.bf16.msra.mxu1 %v4761_v56  ;;  %1813 = vmatprep.subr.bf16.mxu0 %v4766_v57  ;;  %v4830_v56 = vld [vmem:[#allocation5 + $0x650] ss:$20 sps:$4 sm:$0xff]   ;;  %v4841_v57 = vld [vmem:[#allocation5 + $0x308] ss:$20 sps:$4 sm:$0xff]  }
 0x100   :  { %1975 = vmatprep.subr.bf16.mxu1 %v4769_v58 }
 0x102   :  { %1814 = vmatpush1.bf16.msra.mxu0 %v4764_v59  ;;  %v4843_v59 = vld [vmem:[#allocation5 + $0x470] ss:$20 sps:$4 sm:$0xff]  }
 0x103   :  { %1976 = vmatpush1.bf16.msra.mxu1 %v4767_v60  ;;  %1815 = vmatprep.subr.bf16.mxu0 %v4772_v61 }
 0x104   :  { %1977 = vmatprep.subr.bf16.mxu1 %v4775_v62 }
 0x106   :  { %1816 = vmatpush1.bf16.msra.mxu0 %v4770_v63  ;;  %v4834_v63 = vld [vmem:[#allocation5 + $0x678] ss:$20 sps:$4 sm:$0xff]  }
 0x107   :  { %1978 = vmatpush1.bf16.msra.mxu1 %v4773_v1  ;;  %1817 = vmatprep.subr.bf16.mxu0 %v4778_v2  ;;  %v4845_v1 = vld [vmem:[#allocation5 + $0x330] ss:$20 sps:$4 sm:$0xff]   ;;  %v4847_v2 = vld [vmem:[#allocation5 + $0x498] ss:$20 sps:$4 sm:$0xff]  }
 0x108   :  { %1979 = vmatprep.subr.bf16.mxu1 %v4781_v3  ;;  %v4836_v3 = vld [vmem:[#allocation5 + $0x538] ss:$20 sps:$4 sm:$0xff]  }
 0x10a   :  { %1818 = vmatpush1.bf16.msra.mxu0 %v4776_v4  ;;  %v4838_v4 = vld [vmem:[#allocation5 + $0x6a0] ss:$20 sps:$4 sm:$0xff]  }
 0x10b   :  { %1980 = vmatpush1.bf16.msra.mxu1 %v4779_v5  ;;  %1819 = vmatprep.subr.bf16.mxu0 %v4784_v6  ;;  %v4849_v5 = vld [vmem:[#allocation5 + $0x358] ss:$20 sps:$4 sm:$0xff]   ;;  %v4851_v6 = vld [vmem:[#allocation5 + $0x4c0] ss:$20 sps:$4 sm:$0xff]  }
 0x10c   :  { %1981 = vmatprep.subr.bf16.mxu1 %v4787_v7  ;;  %v4840_v7 = vld [vmem:[#allocation5 + $0x560] ss:$20 sps:$4 sm:$0xff]  }
 0x10e   :  { %1820 = vmatpush1.bf16.msra.mxu0 %v4782_v8  ;;  %v4842_v8 = vld [vmem:[#allocation5 + $0x6c8] ss:$20 sps:$4 sm:$0xff]  }
 0x10f   :  { %1982 = vmatpush1.bf16.msra.mxu1 %v4785_v11  ;;  %1821 = vmatprep.subr.bf16.mxu0 %v4790_v12  ;;  %v4853_v11 = vld [vmem:[#allocation5 + $0x380] ss:$20 sps:$4 sm:$0xff]   ;;  %v4855_v12 = vld [vmem:[#allocation5 + $0x4e8] ss:$20 sps:$4 sm:$0xff]  }
 0x110   :  { %1983 = vmatprep.subr.bf16.mxu1 %v4793_v13  ;;  %v4844_v13 = vld [vmem:[#allocation5 + $0x588] ss:$20 sps:$4 sm:$0xff]  }
 0x112   :  { %1822 = vmatpush1.bf16.msra.mxu0 %v4788_v14  ;;  %v4846_v14 = vld [vmem:[#allocation5 + $0x6f0] ss:$20 sps:$4 sm:$0xff]  }
 0x113   :  { %1984 = vmatpush1.bf16.msra.mxu1 %v4791_v15  ;;  %1823 = vmatprep.subr.bf16.mxu0 %v4796_v16  ;;  %v4848_v15 = vld [vmem:[#allocation5 + $0x5b0] ss:$20 sps:$4 sm:$0xff]  }
 0x114   :  { %1985 = vmatprep.subr.bf16.mxu1 %v4799_v17  ;;  %v4860_v16 = vld [vmem:[#allocation5 + $0x790] ss:$20 sps:$4 sm:$0xff]   ;;  %v4863_v17 = vld [vmem:[#allocation7 + $0x4] ss:$12 sps:$4 sm:$0xff]  }
 0x116   :  { %1824 = vmatpush1.bf16.msra.mxu0 %v4794_v19  ;;  %v4852_v19 = vld [vmem:[#allocation5 + $0x5d8] ss:$20 sps:$4 sm:$0xff]  }
 0x117   :  { %1986 = vmatpush1.bf16.msra.mxu1 %v4797_v20  ;;  %1825 = vmatprep.subr.bf16.mxu0 %v4802_v21  ;;  %v5263_v20 = vmov 0.0   ;;  %v4854_v21 = vld [vmem:[#allocation5 + $0x740] ss:$20 sps:$4 sm:$0xff]  }
 0x118   :  { %1987 = vmatprep.subr.bf16.mxu1 %v4805_v22  ;;  %v4856_v22 = vld [vmem:[#allocation5 + $0x600] ss:$20 sps:$4 sm:$0xff]  }
 0x11a   :  { %1826 = vmatpush1.bf16.msra.mxu0 %v4800_v23  ;;  %v4858_v23 = vld [vmem:[#allocation5 + $0x768] ss:$20 sps:$4 sm:$0xff]  }
 0x11b   :  { %1988 = vmatpush1.bf16.msra.mxu1 %v4803_v26  ;;  %4290 = vmatprep.subr.bf16.mxu0 %v4809_v27  ;;  %v4866_v26 = vld [vmem:[#allocation7 + $0x1c] ss:$12 sps:$4 sm:$0xff]   ;;  %v4859_v27 = vld [vmem:[#allocation5 + $0x628] ss:$20 sps:$4 sm:$0xff]  }
 0x11c   :  { %1989 = vmatprep.subr.bf16.mxu1 %v4808_v28  ;;  %v4864_v28 = vld [vmem:[#allocation7 + $0x18] ss:$12 sps:$4 sm:$0xff]  }
 0x11d   :  { %1828 = vmatmul.mubr.bf16.vlgmr.msra.gmra.mrb[0].mxu0 %v5408_v29 }
 0x11e   :  { %4291 = vmatpush3.bf16.msra.mxu0 %v4810_v30  ;;  %2073 = vmatprep.mubr.bf16.mxu0 %v5388_v51  ;;  %v4821_v51 = vld [vmem:[#allocation5 + $0xb0] ss:$20 sps:$4 sm:$0xff]  }
 0x11f   :  { %1990 = vmatpush1.bf16.msra.mxu1 %v4806_v31  ;;  %4292 = vmatprep.subr.bf16.mxu0 %v4811_v32  ;;  %v4888_v30 = vld [vmem:[#allocation7 + $0xc8] ss:$12 sps:$4 sm:$0xff]   ;;  %v4867_v32 = vld [vmem:[#allocation7 + $0x30] ss:$12 sps:$4 sm:$0xff]  }
 0x120   :  { %2000 = vmatprep.subr.bf16.mxu1 %v4817_v33  ;;  %v4889_v31 = vld [vmem:[#allocation7 + $0x8] ss:$12 sps:$4 sm:$0xff]   ;;  %v4893_v33 = vld [vmem:[#allocation7 + $0xe0] ss:$12 sps:$4 sm:$0xff]  }
 0x122   :  { %1992 = vmatmul.mubr.bf16.vlgmr.msra.gmra.mrb[4].mxu1 %v5408_v29  ;;  %4293 = vmatpush3.bf16.msra.mxu0 %v4812_v34  ;;  %v4872_v34 = vld [vmem:[#allocation7 + $0x4c] ss:$12 sps:$4 sm:$0xff]  }
 0x123   :  { %4294 = vmatprep.subr.bf16.mxu0 %v4813_v35  ;;  %2001 = vmatpush1.bf16.msra.mxu1 %v4815_v37  ;;  %v4894_v35 = vld [vmem:[#allocation7 + $0x20] ss:$12 sps:$4 sm:$0xff]   ;;  %v4870_v37 = vld [vmem:[#allocation7 + $0x48] ss:$12 sps:$4 sm:$0xff]  }
 0x124   :  { %2032 = vmatprep.mubr.bf16.mxu1 %v5262_v0  ;;  %4312 = vmatprep.subr.bf16.mxu1 %v4828_v38  ;;  %v4898_v38 = vld [vmem:[#allocation7 + $0xf8] ss:$12 sps:$4 sm:$0xff]  }
 0x126   :  { %4295 = vmatpush3.bf16.msra.mxu0 %v4814_v39  ;;  %v4875_v39 = vld [vmem:[#allocation7 + $0x64] ss:$12 sps:$4 sm:$0xff]  }
 0x127   :  { %4296 = vmatprep.subr.bf16.mxu0 %v4818_v40  ;;  %v4873_v40 = vld [vmem:[#allocation7 + $0x60] ss:$12 sps:$4 sm:$0xff]  }
 0x12a   :  { %4297 = vmatpush3.bf16.msra.mxu0 %v4819_v41  ;;  %v4903_v41 = vld [vmem:[#allocation7 + $0x110] ss:$12 sps:$4 sm:$0xff]  }
 0x12b   :  { %4298 = vmatprep.subr.bf16.mxu0 %v4820_v42  ;;  %v4878_v42 = vld [vmem:[#allocation7 + $0x7c] ss:$12 sps:$4 sm:$0xff]  }
 0x12e   :  { %4103 = vmatmul.mubr.msk.bf16.vlgmr.msra.gmra.mrb[4].mxu1 %vm1709_vm0, %v5384_v10  ;;  %4299 = vmatpush3.bf16.msra.mxu0 %v4821_v51  ;;  %v4904_v51 = vld [vmem:[#allocation7 + $0x50] ss:$12 sps:$4 sm:$0xff]  }
 0x12f   :  { %4300 = vmatprep.subr.bf16.mxu0 %v4822_v43  ;;  %4313 = vmatpush3.bf16.msra.mxu1 %v4829_v44  ;;  %v4876_v43 = vld [vmem:[#allocation7 + $0x78] ss:$12 sps:$4 sm:$0xff]   ;;  %v4908_v44 = vld [vmem:[#allocation7 + $0x128] ss:$12 sps:$4 sm:$0xff]  }
 0x130   :  { %4314 = vmatprep.subr.bf16.mxu1 %v4831_v46  ;;  %2113 = vmatprep.mubr.bf16.mxu1 %v5396_v36  ;;  %v4832_v36 = vld [vmem:[#allocation5 + $0x510] ss:$20 sps:$4 sm:$0xff]  }
 0x131   :  { %v4879_v46 = vld [vmem:[#allocation7 + $0x90] ss:$12 sps:$4 sm:$0xff]  }
 0x132   :  { %4301 = vmatpush3.bf16.msra.mxu0 %v4823_v45  ;;  %v4881_v45 = vld [vmem:[#allocation7 + $0x94] ss:$12 sps:$4 sm:$0xff]  }
 0x133   :  { %4302 = vmatprep.subr.bf16.mxu0 %v4824_v47  ;;  %4315 = vmatpush3.bf16.msra.mxu1 %v4833_v48  ;;  %v4913_v47 = vld [vmem:[#allocation7 + $0x140] ss:$12 sps:$4 sm:$0xff]  }
 0x134   :  { %4316 = vmatprep.subr.bf16.mxu1 %v4835_v49  ;;  %v4884_v48 = vld [vmem:[#allocation7 + $0xac] ss:$12 sps:$4 sm:$0xff]  }
 0x135   :  { %v5417_v58 = vpop.f32.mrb[0].mxu1  ;;  %v4914_v49 = vld [vmem:[#allocation7 + $0x80] ss:$12 sps:$4 sm:$0xff]  }
 0x136   :  { %4303 = vmatpush3.bf16.msra.mxu0 %v4825_v50  ;;  %v5419_v60 = vpop.f32.mrb[1].mxu1  ;;  %v4882_v50 = vld [vmem:[#allocation7 + $0xa8] ss:$12 sps:$4 sm:$0xff]  }
 0x137   :  { %4304 = vmatprep.subr.bf16.mxu0 %v4826_v52  ;;  %4317 = vmatpush3.bf16.msra.mxu1 %v4837_v53  ;;  %v1874_v61 = vpop.f32.mrb[2].mxu1  ;;  %v4887_v52 = vld [vmem:[#allocation7 + $0xc4] ss:$12 sps:$4 sm:$0xff]  }
 0x138   :  { %4318 = vmatprep.subr.bf16.mxu1 %v4839_v54  ;;  %v1875_v62 = vpop.f32.mrb[3].mxu1  ;;  %v4918_v53 = vld [vmem:[#allocation7 + $0x158] ss:$12 sps:$4 sm:$0xff]  }
 0x139   :  { %v4919_v54 = vld [vmem:[#allocation7 + $0x98] ss:$12 sps:$4 sm:$0xff]   ;;  %v4928_v62 = vld [vmem:[#allocation7 + $0x248] ss:$12 sps:$4 sm:$0xff]  }
 0x13a   :  { %4305 = vmatpush3.bf16.msra.mxu0 %v4827_v55  ;;  %v4885_v55 = vld [vmem:[#allocation7 + $0xc0] ss:$12 sps:$4 sm:$0xff]   ;;  %v4890_v61 = vld [vmem:[#allocation7 + $0xd8] ss:$12 sps:$4 sm:$0xff]  }
 0x13b   :  { %4334 = vmatprep.subr.bf16.mxu0 %v4830_v56  ;;  %4319 = vmatpush3.bf16.msra.mxu1 %v4841_v57  ;;  %v4892_v56 = vld [vmem:[#allocation7 + $0xdc] ss:$12 sps:$4 sm:$0xff]  }
 0x13c   :  { %4320 = vmatprep.subr.bf16.mxu1 %v4843_v59  ;;  %v4923_v57 = vld [vmem:[#allocation7 + $0x170] ss:$12 sps:$4 sm:$0xff]  }
 0x13d   :  { %2074 = vmatmul.mubr.bf16.vlgmr.msra.gmra.mrb[4].mxu0 %v5392_v9  ;;  %v4857_v9 = vld [vmem:[#allocation5 + $0x3a8] ss:$20 sps:$4 sm:$0xff]   ;;  %v4924_v59 = vld [vmem:[#allocation7 + $0xb0] ss:$12 sps:$4 sm:$0xff]  }
 0x13e   :  { %4335 = vmatpush3.bf16.msra.mxu0 %v4832_v36  ;;  %2153 = vmatprep.mubr.bf16.mxu0 %v5402_v24  ;;  %v4850_v24 = vld [vmem:[#allocation5 + $0x718] ss:$20 sps:$4 sm:$0xff]   ;;  %v4897_v36 = vld [vmem:[#allocation7 + $0xf4] ss:$12 sps:$4 sm:$0xff]  }
 0x13f   :  { %4336 = vmatprep.subr.bf16.mxu0 %v4834_v63  ;;  %4321 = vmatpush3.bf16.msra.mxu1 %v4845_v1  ;;  %v4895_v63 = vld [vmem:[#allocation7 + $0xf0] ss:$12 sps:$4 sm:$0xff]   ;;  %v4902_v1 = vld [vmem:[#allocation7 + $0x10c] ss:$12 sps:$4 sm:$0xff]  }
 0x140   :  { %4322 = vmatprep.subr.bf16.mxu1 %v4847_v2  ;;  %v4900_v2 = vld [vmem:[#allocation7 + $0x108] ss:$12 sps:$4 sm:$0xff]  }
 0x142   :  { %4337 = vmatpush3.bf16.msra.mxu0 %v4836_v3  ;;  %v4907_v3 = vld [vmem:[#allocation7 + $0x124] ss:$12 sps:$4 sm:$0xff]  }
 0x143   :  { %4338 = vmatprep.subr.bf16.mxu0 %v4838_v4  ;;  %4323 = vmatpush3.bf16.msra.mxu1 %v4849_v5  ;;  %v4905_v4 = vld [vmem:[#allocation7 + $0x120] ss:$12 sps:$4 sm:$0xff]   ;;  %v4912_v5 = vld [vmem:[#allocation7 + $0x13c] ss:$12 sps:$4 sm:$0xff]  }
 0x144   :  { %4324 = vmatprep.subr.bf16.mxu1 %v4851_v6  ;;  %v4910_v6 = vld [vmem:[#allocation7 + $0x138] ss:$12 sps:$4 sm:$0xff]  }
 0x146   :  { %4339 = vmatpush3.bf16.msra.mxu0 %v4840_v7  ;;  %v4917_v7 = vld [vmem:[#allocation7 + $0x154] ss:$12 sps:$4 sm:$0xff]  }
 0x147   :  { %4340 = vmatprep.subr.bf16.mxu0 %v4842_v8  ;;  %4325 = vmatpush3.bf16.msra.mxu1 %v4853_v11  ;;  %v4915_v8 = vld [vmem:[#allocation7 + $0x150] ss:$12 sps:$4 sm:$0xff]   ;;  %v4922_v11 = vld [vmem:[#allocation7 + $0x16c] ss:$12 sps:$4 sm:$0xff]  }
 0x148   :  { %4326 = vmatprep.subr.bf16.mxu1 %v4855_v12  ;;  %v4920_v12 = vld [vmem:[#allocation7 + $0x168] ss:$12 sps:$4 sm:$0xff]  }
 0x14a   :  { %4341 = vmatpush3.bf16.msra.mxu0 %v4844_v13  ;;  %v4927_v13 = vld [vmem:[#allocation7 + $0x184] ss:$12 sps:$4 sm:$0xff]  }
 0x14b   :  { %4342 = vmatprep.subr.bf16.mxu0 %v4846_v14  ;;  %4327 = vmatpush3.bf16.msra.mxu1 %v4857_v9  ;;  %v410_v14 = vlaneseq }
 0x14c   :  { %4433 = vmatprep.subr.bf16.mxu1 %v5263_v20 }
 0x14d   :  { %v5430_v9 = vshrl.u32 %v410_v14, 7 }
 0x14e   :  { %4343 = vmatpush3.bf16.msra.mxu0 %v4848_v15  ;;  %2114 = vmatmul.mubr.bf16.vlgmr.msra.gmra.mrb[8].mxu1 %v5400_v18  ;;  %v4869_v18 = vld [vmem:[#allocation7 + $0x34] ss:$12 sps:$4 sm:$0xff]  }
 0x14f   :  { %4344 = vmatprep.subr.bf16.mxu0 %v4850_v24  ;;  %4434 = vmatpush3.bf16.msra.mxu1 %v4860_v16  ;;  %v5433_v15 = vsub.s32 0, %v5430_v9  ;;  %v5438_v24 = vld [vmem:[%s5502_s2] sm:$0x1f]  ;;  %v5441_v16 = vsub.s32 1, %v5430_v9 }
 0x150   :  { %4435 = vmatprep.mubr.msk.bf16.mxu1 %vm5264_vm1, %v5263_v20  ;;  %3028 = vmatprep.subr.bf16.mxu1 %v4863_v17 }
 0x151   :  { %v413_v17 = vrot.slane %v5438_v24, %v5433_v15 }
 0x152   :  { %4345 = vmatpush3.bf16.msra.mxu0 %v4852_v19  ;;  %v417_v19 = vrot.slane %v5438_v24, %v5441_v16 }
 0x153   :  { %4346 = vmatprep.subr.bf16.mxu0 %v4854_v21 }
 0x156   :  { %4347 = vmatpush3.bf16.msra.mxu0 %v4856_v22  ;;  %4436 = vmatmul.mubr.msk.bf16.vlgmr.msra.gmra.mrb[12].mxu1 %vm1709_vm0, %v5384_v10  ;;  %v4899_v10 = vld [vmem:[#allocation7 + $0x38] ss:$12 sps:$4 sm:$0xff]  }
 0x157   :  { %4348 = vmatprep.subr.bf16.mxu0 %v4858_v23  ;;  %3029 = vmatpush1.bf16.msra.mxu1 %v4861_v25 }
 0x158   :  { %3030 = vmatprep.subr.bf16.mxu1 %v4866_v26 }
 0x15a   :  { %4349 = vmatpush3.bf16.msra.mxu0 %v4859_v27 }
 0x15b   :  { %3031 = vmatpush1.bf16.msra.mxu1 %v4864_v28  ;;  %4358 = vmatprep.subr.bf16.mxu0 %v4888_v30 }
 0x15c   :  { %3032 = vmatprep.subr.bf16.mxu1 %v4869_v18 }
 0x15d   :  { %2154 = vmatmul.mubr.bf16.vlgmr.msra.gmra.mrb[8].mxu0 %v5408_v29  ;;  %v4909_v29 = vld [vmem:[#allocation7 + $0x68] ss:$12 sps:$4 sm:$0xff]  }
 0x15e   :  { %4359 = vmatpush3.bf16.msra.mxu0 %v4889_v31 }
 0x15f   :  { %3033 = vmatpush1.bf16.msra.mxu1 %v4867_v32  ;;  %4360 = vmatprep.subr.bf16.mxu0 %v4893_v33  ;;  %v4925_v33 = vld [vmem:[#allocation7 + $0x180] ss:$12 sps:$4 sm:$0xff]  }
 0x160   :  { %3034 = vmatprep.subr.bf16.mxu1 %v4872_v34  ;;  %v4929_v34 = vld [vmem:[#allocation7 + $0x188] ss:$12 sps:$4 sm:$0xff]  }
 0x162   :  { %4361 = vmatpush3.bf16.msra.mxu0 %v4894_v35 }
 0x163   :  { %3035 = vmatpush1.bf16.msra.mxu1 %v4870_v37  ;;  %4362 = vmatprep.subr.bf16.mxu0 %v4898_v38  ;;  %v4932_v37 = vld [vmem:[#allocation7 + $0x19c] ss:$12 sps:$4 sm:$0xff]   ;;  %v4933_v38 = vld [vmem:[#allocation7 + $0x260] ss:$12 sps:$4 sm:$0xff]  }
 0x164   :  { %3036 = vmatprep.subr.bf16.mxu1 %v4875_v39  ;;  %v424_v39 = vsub.s32 3, %v5430_v9 }
 0x166   :  { %4363 = vmatpush3.bf16.msra.mxu0 %v4899_v10  ;;  %v4934_v10 = vld [vmem:[#allocation7 + $0x1a0] ss:$12 sps:$4 sm:$0xff]  }
 0x167   :  { %3037 = vmatpush1.bf16.msra.mxu1 %v4873_v40  ;;  %4364 = vmatprep.subr.bf16.mxu0 %v4903_v41  ;;  %v4938_v40 = vld [vmem:[#allocation7 + $0x278] ss:$12 sps:$4 sm:$0xff]   ;;  %v425_v41 = vrot.slane %v5438_v24, %v424_v39 }
 0x168   :  { %3038 = vmatprep.subr.bf16.mxu1 %v4878_v42  ;;  %v4935_v42 = vld [vmem:[#allocation7 + $0x1b0] ss:$12 sps:$4 sm:$0xff]  }
 0x16a   :  { %4365 = vmatpush3.bf16.msra.mxu0 %v4904_v51  ;;  %v4939_v51 = vld [vmem:[#allocation7 + $0x1b8] ss:$12 sps:$4 sm:$0xff]  }
 0x16b   :  { %3039 = vmatpush1.bf16.msra.mxu1 %v4876_v43  ;;  %4366 = vmatprep.subr.bf16.mxu0 %v4908_v44  ;;  %v4942_v44 = vld [vmem:[#allocation7 + $0x1cc] ss:$12 sps:$4 sm:$0xff]  }
 0x16c   :  { %3040 = vmatprep.subr.bf16.mxu1 %v4881_v45  ;;  %v4943_v45 = vld [vmem:[#allocation7 + $0x290] ss:$12 sps:$4 sm:$0xff]  }
 0x16e   :  { %4367 = vmatpush3.bf16.msra.mxu0 %v4909_v29 }
 0x16f   :  { %3041 = vmatpush1.bf16.msra.mxu1 %v4879_v46  ;;  %4368 = vmatprep.subr.bf16.mxu0 %v4913_v47 }
 0x170   :  { %3042 = vmatprep.subr.bf16.mxu1 %v4884_v48 }
 0x172   :  { %4369 = vmatpush3.bf16.msra.mxu0 %v4914_v49  ;;  %v4940_v49 = vld [vmem:[#allocation7 + $0x1c8] ss:$12 sps:$4 sm:$0xff]  }
 0x173   :  { %3043 = vmatpush1.bf16.msra.mxu1 %v4882_v50  ;;  %4370 = vmatprep.subr.bf16.mxu0 %v4918_v53  ;;  %v4944_v50 = vld [vmem:[#allocation7 + $0x1d0] ss:$12 sps:$4 sm:$0xff]  }
 0x174   :  { %3044 = vmatprep.subr.bf16.mxu1 %v4887_v52  ;;  %v4947_v53 = vld [vmem:[#allocation7 + $0x1e4] ss:$12 sps:$4 sm:$0xff]  }
 0x176   :  { %4371 = vmatpush3.bf16.msra.mxu0 %v4919_v54  ;;  %v4948_v54 = vld [vmem:[#allocation7 + $0x2a8] ss:$12 sps:$4 sm:$0xff]  }
 0x177   :  { %3045 = vmatpush1.bf16.msra.mxu1 %v4885_v55  ;;  %4372 = vmatprep.subr.bf16.mxu0 %v4923_v57  ;;  %v4949_v57 = vld [vmem:[#allocation7 + $0x1e8] ss:$12 sps:$4 sm:$0xff]  }
 0x178   :  { %3046 = vmatprep.subr.bf16.mxu1 %v4892_v56  ;;  %v4945_v56 = vld [vmem:[#allocation7 + $0x1e0] ss:$12 sps:$4 sm:$0xff]  }
 0x17a   :  { %4373 = vmatpush3.bf16.msra.mxu0 %v4924_v59  ;;  %v420_v59 = vsub.s32 2, %v5430_v9 }
 0x17b   :  { %3047 = vmatpush1.bf16.msra.mxu1 %v4890_v61  ;;  %4380 = vmatprep.subr.bf16.mxu0 %v4928_v62  ;;  %v4952_v61 = vld [vmem:[#allocation7 + $0x1fc] ss:$12 sps:$4 sm:$0xff]   ;;  %v4950_v62 = vld [vmem:[#allocation7 + $0x1f8] ss:$12 sps:$4 sm:$0xff]  }
 0x17c   :  { %3048 = vmatprep.subr.bf16.mxu1 %v4897_v36  ;;  %v4953_v36 = vld [vmem:[#allocation7 + $0x2c0] ss:$12 sps:$4 sm:$0xff]  }
 0x17f   :  { %3049 = vmatpush1.bf16.msra.mxu1 %v4895_v63  ;;  %v4954_v63 = vld [vmem:[#allocation7 + $0x200] ss:$12 sps:$4 sm:$0xff]  }
 0x180   :  { %3050 = vmatprep.subr.bf16.mxu1 %v4902_v1  ;;  %v421_v1 = vrot.slane %v5438_v24, %v420_v59 }
 0x183   :  { %3051 = vmatpush1.bf16.msra.mxu1 %v4900_v2  ;;  %v4957_v2 = vld [vmem:[#allocation7 + $0x214] ss:$12 sps:$4 sm:$0xff]  }
 0x184   :  { %3052 = vmatprep.subr.bf16.mxu1 %v4907_v3  ;;  %v4958_v3 = vld [vmem:[#allocation7 + $0x2d8] ss:$12 sps:$4 sm:$0xff]  }
 0x187   :  { %3053 = vmatpush1.bf16.msra.mxu1 %v4905_v4  ;;  %v4955_v4 = vld [vmem:[#allocation7 + $0x210] ss:$12 sps:$4 sm:$0xff]  }
 0x188   :  { %3054 = vmatprep.subr.bf16.mxu1 %v4912_v5  ;;  %v4959_v5 = vld [vmem:[#allocation7 + $0x218] ss:$12 sps:$4 sm:$0xff]  }
 0x18b   :  { %3055 = vmatpush1.bf16.msra.mxu1 %v4910_v6 }
 0x18c   :  { %3056 = vmatprep.subr.bf16.mxu1 %v4917_v7 }
 0x18f   :  { %3057 = vmatpush1.bf16.msra.mxu1 %v4915_v8  ;;  %v4962_v8 = vld [vmem:[#allocation7 + $0x22c] ss:$12 sps:$4 sm:$0xff]  }
 0x190   :  { %3058 = vmatprep.subr.bf16.mxu1 %v4922_v11  ;;  %v4963_v11 = vld [vmem:[#allocation7 + $0x2f0] ss:$12 sps:$4 sm:$0xff]  }
 0x193   :  { %3059 = vmatpush1.bf16.msra.mxu1 %v4920_v12 }
 0x194   :  { %3069 = vmatprep.subr.bf16.mxu1 %v4927_v13 }
 0x1f0   :  { %v1829_v21 = vpop.f32.mrb[0].mxu0 }
 0x1f1   :  { %v4459_v22 = vadd.f32 %v1829_v21, %v413_v17  ;;  %v1831_v23 = vpop.f32.mrb[1].mxu0  ;;  %v4964_v21 = vld [vmem:[#allocation7 + $0x230] ss:$12 sps:$4 sm:$0xff]  }
 0x1f2   :  { %v4461_v25 = vadd.f32 %v1831_v23, %v417_v19  ;;  %v1833_v26 = vpop.f32.mrb[2].mxu0  ;;  %v4960_v19 = vld [vmem:[#allocation7 + $0x228] ss:$12 sps:$4 sm:$0xff]   ;;  %v4967_v23 = vld [vmem:[#allocation7 + $0x244] ss:$12 sps:$4 sm:$0xff]  }
 0x1f3   :  { %v4460_v27 = vadd.f32 %v4459_v22, %v5417_v58  ;;  %v1834_v28 = vpop.f32.mrb[3].mxu0  ;;  %v4930_v58 = vld [vmem:[#allocation7 + $0x198] ss:$12 sps:$4 sm:$0xff]   ;;  %v4968_v26 = vld [vmem:[#allocation7 + $0x308] ss:$12 sps:$4 sm:$0xff]  }
 0x1f4   :  { %v4462_v30 = vadd.f32 %v4461_v25, %v5419_v60  ;;  %v4937_v60 = vld [vmem:[#allocation7 + $0x1b4] ss:$12 sps:$4 sm:$0xff]   ;;  %v4971_v28 = vld [vmem:[#allocation7 + $0x25c] ss:$12 sps:$4 sm:$0xff]  }
 0x1f5   :  { %v2201_v18 = vmax.f32 %v4460_v27, 0.0  ;;  %v4965_v25 = vld [vmem:[#allocation7 + $0x240] ss:$12 sps:$4 sm:$0xff]  }
 0x1f6   :  { %v2202_v31 = vmax.f32 %v4462_v30, 0.0  ;;  %v428_v30 = vsub.s32 4, %v5430_v9 }
 0x1f7   :  { %v2206_v35 = vpack.c.bf16 %v2201_v18, %v2201_v18  ;;  %v4969_v18 = vld [vmem:[#allocation7 + $0x258] ss:$12 sps:$4 sm:$0xff]  }
 0x1f8   :  { %v2207_v32 = vpack.c.bf16 %v2202_v31, %v2202_v31  ;;  %v4972_v31 = vld [vmem:[#allocation7 + $0x320] ss:$12 sps:$4 sm:$0xff]  }
 0x1fa   :  { %3060 = vmatprep.mubr.bf16.mxu1 %v2207_v32  ;;  %3183 = vmatprep.mubr.bf16.mxu0 %v2207_v32  ;;  %v4975_v32 = vld [vmem:[#allocation7 + $0x274] ss:$12 sps:$4 sm:$0xff]  }
 0x1fb   :  { %3061 = vmatmul.mubr.bf16.vlgmr.msra.gmra.mrb[16].mxu1 %v2206_v35  ;;  %3184 = vmatmul.mubr.bf16.vlgmr.msra.gmra.mrb[12].mxu0 %v2206_v35  ;;  %v4976_v35 = vld [vmem:[#allocation7 + $0x338] ss:$12 sps:$4 sm:$0xff]  }
 0x1fc   :  { %3070 = vmatpush1.bf16.msra.mxu1 %v4925_v33  ;;  %4381 = vmatpush3.bf16.msra.mxu0 %v4929_v34  ;;  %v429_v33 = vrot.slane %v5438_v24, %v428_v30  ;;  %v4973_v34 = vld [vmem:[#allocation7 + $0x270] ss:$12 sps:$4 sm:$0xff]   ;;  %v5023_v30 = vld [vmem:[#allocation8 + $0x4] ss:$8 sps:$4 sm:$0xff]  }
 0x1fd   :  { %3071 = vmatprep.subr.bf16.mxu1 %v4932_v37  ;;  %4382 = vmatprep.subr.bf16.mxu0 %v4933_v38  ;;  %v4979_v37 = vld [vmem:[#allocation7 + $0x28c] ss:$12 sps:$4 sm:$0xff]   ;;  %v4980_v24 = vld [vmem:[#allocation7 + $0x350] ss:$12 sps:$4 sm:$0xff]  }
 0x200   :  { %3072 = vmatpush1.bf16.msra.mxu1 %v4930_v58  ;;  %4383 = vmatpush3.bf16.msra.mxu0 %v4934_v10 }
 0x201   :  { %v2034_v43 = vpop.f32.mrb[4].mxu1  ;;  %3073 = vmatprep.subr.bf16.mxu1 %v4937_v60  ;;  %4384 = vmatprep.subr.bf16.mxu0 %v4938_v40  ;;  %v4977_v40 = vld [vmem:[#allocation7 + $0x288] ss:$12 sps:$4 sm:$0xff]  }
 0x202   :  { %v2036_v29 = vpop.f32.mrb[5].mxu1  ;;  %v4463_v7 = vadd.f32 %v2034_v43, %v421_v1  ;;  %v4981_v43 = vld [vmem:[#allocation7 + $0x2a0] ss:$12 sps:$4 sm:$0xff]   ;;  %v4993_v1 = vld [vmem:[#allocation7 + $0x2e8] ss:$12 sps:$4 sm:$0xff]  }
 0x203   :  { %v4464_v46 = vadd.f32 %v2036_v29, %v425_v41  ;;  %v2038_v47 = vpop.f32.mrb[6].mxu1 }
 0x204   :  { %v2039_v48 = vpop.f32.mrb[7].mxu1  ;;  %3074 = vmatpush1.bf16.msra.mxu1 %v4935_v42  ;;  %4385 = vmatpush3.bf16.msra.mxu0 %v4939_v51  ;;  %v2203_v22 = vmax.f32 %v4463_v7, 0.0  ;;  %v4983_v42 = vld [vmem:[#allocation7 + $0x2a4] ss:$12 sps:$4 sm:$0xff]   ;;  %v5002_v7 = vld [vmem:[#allocation7 + $0x31c] ss:$12 sps:$4 sm:$0xff]  }
 0x205   :  { %v2204_v52 = vmax.f32 %v4464_v46, 0.0  ;;  %3075 = vmatprep.subr.bf16.mxu1 %v4942_v44  ;;  %4386 = vmatprep.subr.bf16.mxu0 %v4943_v45  ;;  %v4984_v44 = vld [vmem:[#allocation7 + $0x368] ss:$12 sps:$4 sm:$0xff]   ;;  %v4985_v48 = vld [vmem:[#allocation7 + $0x2b8] ss:$12 sps:$4 sm:$0xff]  }
 0x206   :  { %v5455_v27 = vpack.c.bf16 %v2203_v22, %v2203_v22  ;;  %v4987_v45 = vld [vmem:[#allocation7 + $0x2bc] ss:$12 sps:$4 sm:$0xff]   ;;  %v5012_v22 = vld [vmem:[#allocation7 + $0x378] ss:$12 sps:$4 sm:$0xff]  }
 0x207   :  { %v2209_v55 = vpack.c.bf16 %v2204_v52, %v2204_v52  ;;  %v4991_v52 = vld [vmem:[#allocation7 + $0x2d4] ss:$12 sps:$4 sm:$0xff]  }
 0x208   :  { %3076 = vmatpush1.bf16.msra.mxu1 %v4940_v49  ;;  %4387 = vmatpush3.bf16.msra.mxu0 %v4944_v50  ;;  %v4988_v49 = vld [vmem:[#allocation7 + $0x380] ss:$12 sps:$4 sm:$0xff]  }
 0x209   :  { %3101 = vmatprep.mubr.bf16.mxu1 %v2209_v55  ;;  %3223 = vmatprep.mubr.bf16.mxu0 %v2209_v55  ;;  %v4992_v55 = vld [vmem:[#allocation7 + $0x398] ss:$12 sps:$4 sm:$0xff]  }
 0x20a   :  { %3077 = vmatprep.subr.bf16.mxu1 %v4947_v53  ;;  %4388 = vmatprep.subr.bf16.mxu0 %v4948_v54  ;;  %v4989_v54 = vld [vmem:[#allocation7 + $0x2d0] ss:$12 sps:$4 sm:$0xff]  }
 0x20c   :  { %3078 = vmatpush1.bf16.msra.mxu1 %v4945_v56  ;;  %4389 = vmatpush3.bf16.msra.mxu0 %v4949_v57  ;;  %v4995_v57 = vld [vmem:[#allocation7 + $0x2ec] ss:$12 sps:$4 sm:$0xff]  }
 0x20d   :  { %3079 = vmatprep.subr.bf16.mxu1 %v4952_v61  ;;  %4390 = vmatprep.subr.bf16.mxu0 %v4953_v36 }
 0x210   :  { %3080 = vmatpush1.bf16.msra.mxu1 %v4950_v62  ;;  %4391 = vmatpush3.bf16.msra.mxu0 %v4954_v63  ;;  %v4306_v6 = vpop.f32.mrb[4].mxu0 }
 0x211   :  { %3081 = vmatprep.subr.bf16.mxu1 %v4957_v2  ;;  %4392 = vmatprep.subr.bf16.mxu0 %v4958_v3  ;;  %v4307_v12 = vpop.f32.mrb[5].mxu0  ;;  %v4996_v2 = vld [vmem:[#allocation7 + $0x3b0] ss:$12 sps:$4 sm:$0xff]  }
 0x212   :  { %v4308_v13 = vadd.f32 %v4307_v12, %v4306_v6  ;;  %v4309_v14 = vpop.f32.mrb[6].mxu0  ;;  %v4999_v3 = vld [vmem:[#allocation7 + $0x304] ss:$12 sps:$4 sm:$0xff]   ;;  %v4997_v6 = vld [vmem:[#allocation7 + $0x300] ss:$12 sps:$4 sm:$0xff]  }
 0x213   :  { %v4310_v17 = vpop.f32.mrb[7].mxu0  ;;  %v5005_v12 = vld [vmem:[#allocation7 + $0x334] ss:$12 sps:$4 sm:$0xff]  }
 0x214   :  { %3082 = vmatpush1.bf16.msra.mxu1 %v4955_v4  ;;  %4393 = vmatpush3.bf16.msra.mxu0 %v4959_v5  ;;  %v2076_v38 = vadd.f32 %v4308_v13, %v429_v33  ;;  %v5008_v13 = vld [vmem:[#allocation7 + $0x34c] ss:$12 sps:$4 sm:$0xff]   ;;  %v5006_v14 = vld [vmem:[#allocation7 + $0x348] ss:$12 sps:$4 sm:$0xff]   ;;  %v5011_v17 = vld [vmem:[#allocation7 + $0x364] ss:$12 sps:$4 sm:$0xff]  }
 0x215   :  { %3083 = vmatprep.subr.bf16.mxu1 %v4962_v8  ;;  %4394 = vmatprep.subr.bf16.mxu0 %v4963_v11  ;;  %v5000_v11 = vld [vmem:[#allocation7 + $0x318] ss:$12 sps:$4 sm:$0xff]   ;;  %v5027_v33 = vld [vmem:[#allocation8 + $0x20] ss:$8 sps:$4 sm:$0xff]  }
 0x218   :  { %3084 = vmatpush1.bf16.msra.mxu1 %v4960_v19  ;;  %4395 = vmatpush3.bf16.msra.mxu0 %v4964_v21  ;;  %v5009_v19 = vld [vmem:[#allocation7 + $0x360] ss:$12 sps:$4 sm:$0xff]   ;;  %v5014_v21 = vld [vmem:[#allocation7 + $0x37c] ss:$12 sps:$4 sm:$0xff]  }
 0x219   :  { %3085 = vmatprep.subr.bf16.mxu1 %v4967_v23  ;;  %4439 = vmatprep.subr.bf16.mxu0 %v5263_v20  ;;  %v5017_v23 = vld [vmem:[#allocation7 + $0x394] ss:$12 sps:$4 sm:$0xff]  }
 0x21b   :  { %3224 = vmatmul.mubr.bf16.vlgmr.msra.gmra.mrb[16].mxu0 %v5455_v27 }
 0x21c   :  { %3086 = vmatpush1.bf16.msra.mxu1 %v4965_v25  ;;  %4440 = vmatpush3.bf16.msra.mxu0 %v4968_v26  ;;  %v5015_v25 = vld [vmem:[#allocation7 + $0x390] ss:$12 sps:$4 sm:$0xff]   ;;  %v5020_v26 = vld [vmem:[#allocation7 + $0x3ac] ss:$12 sps:$4 sm:$0xff]  }
 0x21d   :  { %3087 = vmatprep.subr.bf16.mxu1 %v4971_v28  ;;  %4441 = vmatprep.subr.bf16.mxu0 %v5263_v20  ;;  %v5021_v28 = vld [vmem:[#allocation8] ss:$8 sps:$4 sm:$0xff]  }
 0x21e   :  { %4455 = vmatprep.mubr.msk.bf16.mxu0 %vm5264_vm1, %v5263_v20 }
 0x220   :  { %3088 = vmatpush1.bf16.msra.mxu1 %v4969_v18  ;;  %4442 = vmatpush3.bf16.msra.mxu0 %v4972_v31  ;;  %v5026_v18 = vld [vmem:[#allocation8 + $0x14] ss:$8 sps:$4 sm:$0xff]   ;;  %v5024_v31 = vld [vmem:[#allocation8 + $0x10] ss:$8 sps:$4 sm:$0xff]  }
 0x221   :  { %3089 = vmatprep.subr.bf16.mxu1 %v4975_v32  ;;  %4443 = vmatprep.subr.bf16.mxu0 %v5263_v20  ;;  %v4328_v39 = vpop.f32.mrb[8].mxu1  ;;  %v5029_v32 = vld [vmem:[#allocation8 + $0x24] ss:$8 sps:$4 sm:$0xff]  }
 0x222   :  { %v4329_v58 = vpop.f32.mrb[9].mxu1 }
 0x223   :  { %v4330_v10 = vadd.f32 %v4329_v58, %v4328_v39  ;;  %v4331_v60 = vpop.f32.mrb[10].mxu1  ;;  %v5038_v39 = vld [vmem:[#allocation8 + $0x54] ss:$8 sps:$4 sm:$0xff]   ;;  %v5036_v58 = vld [vmem:[#allocation8 + $0x50] ss:$8 sps:$4 sm:$0xff]  }
 0x224   :  { %3090 = vmatpush1.bf16.msra.mxu1 %v4973_v34  ;;  %4444 = vmatpush3.bf16.msra.mxu0 %v4976_v35  ;;  %v4332_v41 = vpop.f32.mrb[11].mxu1  ;;  %v5032_v34 = vld [vmem:[#allocation8 + $0x34] ss:$8 sps:$4 sm:$0xff]   ;;  %v5030_v35 = vld [vmem:[#allocation8 + $0x30] ss:$8 sps:$4 sm:$0xff]  }
 0x225   :  { %3091 = vmatprep.subr.bf16.mxu1 %v4979_v37  ;;  %4445 = vmatprep.subr.bf16.mxu0 %v5263_v20  ;;  %v2116_v51 = vadd.f32 %v4330_v10, %v2076_v38  ;;  %v5035_v37 = vld [vmem:[#allocation8 + $0x44] ss:$8 sps:$4 sm:$0xff]   ;;  %v5033_v38 = vld [vmem:[#allocation8 + $0x40] ss:$8 sps:$4 sm:$0xff]  }
 0x226   :  { %v5041_v10 = vld [vmem:[#allocation8 + $0x64] ss:$8 sps:$4 sm:$0xff]   ;;  %v5039_v60 = vld [vmem:[#allocation8 + $0x60] ss:$8 sps:$4 sm:$0xff]  }
 0x227   :  { %v5045_v41 = vld [vmem:[#allocation8 + $0x80] ss:$8 sps:$4 sm:$0xff]  }
 0x228   :  { %3092 = vmatpush1.bf16.msra.mxu1 %v4977_v40  ;;  %4446 = vmatpush3.bf16.msra.mxu0 %v4980_v24  ;;  %v5044_v40 = vld [vmem:[#allocation8 + $0x74] ss:$8 sps:$4 sm:$0xff]   ;;  %v5042_v24 = vld [vmem:[#allocation8 + $0x70] ss:$8 sps:$4 sm:$0xff]  }
 0x229   :  { %3093 = vmatprep.subr.bf16.mxu1 %v4983_v42  ;;  %4447 = vmatprep.subr.bf16.mxu0 %v5263_v20  ;;  %v2195_v29 = vpop.f32.mrb[12].mxu1  ;;  %v5047_v42 = vld [vmem:[#allocation8 + $0x84] ss:$8 sps:$4 sm:$0xff]  }
 0x22a   :  { %v4437_v46 = vpop.f32.mrb[13].mxu1 }
 0x22b   :  { %v2198_v47 = vpop.f32.mrb[14].mxu1  ;;  %v5054_v46 = vld [vmem:[#allocation8 + $0xb0] ss:$8 sps:$4 sm:$0xff]  }
 0x22c   :  { %3094 = vmatpush1.bf16.msra.mxu1 %v4981_v43  ;;  %4448 = vmatpush3.bf16.msra.mxu0 %v4984_v44  ;;  %v4438_v50 = vpop.f32.mrb[15].mxu1  ;;  %v5048_v43 = vld [vmem:[#allocation8 + $0x90] ss:$8 sps:$4 sm:$0xff]   ;;  %v5053_v44 = vld [vmem:[#allocation8 + $0xa4] ss:$8 sps:$4 sm:$0xff]  }
 0x22d   :  { %3095 = vmatprep.subr.bf16.mxu1 %v4987_v45  ;;  %4449 = vmatprep.subr.bf16.mxu0 %v5263_v20  ;;  %v5051_v45 = vld [vmem:[#allocation8 + $0xa0] ss:$8 sps:$4 sm:$0xff]   ;;  %v5059_v47 = vld [vmem:[#allocation8 + $0xc4] ss:$8 sps:$4 sm:$0xff]   ;;  %v5060_v50 = vld [vmem:[#allocation8 + $0xd0] ss:$8 sps:$4 sm:$0xff]  }
 0x230   :  { %3096 = vmatpush1.bf16.msra.mxu1 %v4985_v48  ;;  %v4350_v53 = vpop.f32.mrb[8].mxu0  ;;  %4450 = vmatpush3.bf16.msra.mxu0 %v4988_v49  ;;  %v5057_v48 = vld [vmem:[#allocation8 + $0xc0] ss:$8 sps:$4 sm:$0xff]   ;;  %v5062_v49 = vld [vmem:[#allocation8 + $0xd4] ss:$8 sps:$4 sm:$0xff]  }
 0x231   :  { %v4351_v56 = vpop.f32.mrb[9].mxu0  ;;  %3097 = vmatprep.subr.bf16.mxu1 %v4991_v52  ;;  %4451 = vmatprep.subr.bf16.mxu0 %v5263_v20  ;;  %v5065_v52 = vld [vmem:[#allocation8 + $0xe4] ss:$8 sps:$4 sm:$0xff]  }
 0x232   :  { %v4352_v61 = vadd.f32 %v4351_v56, %v4350_v53  ;;  %v4353_v36 = vpop.f32.mrb[10].mxu0  ;;  %v5063_v53 = vld [vmem:[#allocation8 + $0xe0] ss:$8 sps:$4 sm:$0xff]   ;;  %v5071_v56 = vld [vmem:[#allocation8 + $0x104] ss:$8 sps:$4 sm:$0xff]  }
 0x233   :  { %v4354_v62 = vpop.f32.mrb[11].mxu0 }
 0x234   :  { %3098 = vmatpush1.bf16.msra.mxu1 %v4989_v54  ;;  %v2156_v63 = vadd.f32 %v4352_v61, %v2116_v51  ;;  %4452 = vmatpush3.bf16.msra.mxu0 %v4992_v55  ;;  %v5050_v51 = vld [vmem:[#allocation8 + $0x94] ss:$8 sps:$4 sm:$0xff]   ;;  %v5066_v55 = vld [vmem:[#allocation8 + $0xf0] ss:$8 sps:$4 sm:$0xff]  }
 0x235   :  { %3099 = vmatprep.subr.bf16.mxu1 %v4995_v57  ;;  %4453 = vmatprep.subr.bf16.mxu0 %v5263_v20  ;;  %v5003_v20 = vld [vmem:[#allocation7 + $0x330] ss:$12 sps:$4 sm:$0xff]  }
 0x236   :  { %v2196_v4 = vadd.f32 %v2195_v29, %v2156_v63  ;;  %v5056_v29 = vld [vmem:[#allocation8 + $0xb4] ss:$8 sps:$4 sm:$0xff]  }
 0x237   :  { %v5068_v54 = vld [vmem:[#allocation8 + $0xf4] ss:$8 sps:$4 sm:$0xff]  }
 0x238   :  { %v2205_v5 = vmax.f32 %v2196_v4, 0.0  ;;  %3100 = vmatpush1.bf16.msra.mxu1 %v4993_v1  ;;  %4454 = vmatpush3.bf16.msra.mxu0 %v4996_v2  ;;  %v5093_v1 = vld [vmem:[#allocation10 + $0x40] sm:$0xff]   ;;  %v5096_v4 = vld [vmem:[#allocation10 + $0x8] sm:$0xff]  }
 0x239   :  { %3110 = vmatprep.subr.bf16.mxu1 %v4999_v3  ;;  %3577 = vmatprep.subr.bf16.mxu0 %v5023_v30  ;;  %v5094_v2 = vld [vmem:[#allocation10] sm:$0xff]   ;;  %v5095_v3 = vld [vmem:[#allocation10 + $0x48] sm:$0xff]  }
 0x23a   :  { %v2210_v8 = vpack.c.bf16 %v2205_v5, %v2205_v5  ;;  %v5097_v5 = vld [vmem:[#allocation10 + $0x50] sm:$0xff]  }
 0x23b   :  { %3102 = vmatmul.mubr.bf16.vlgmr.msra.gmra.mrb[16].mxu1 %v5455_v27  ;;  %v5018_v27 = vld [vmem:[#allocation7 + $0x3a8] ss:$12 sps:$4 sm:$0xff]  }
 0x23c   :  { %3111 = vmatpush1.bf16.msra.mxu1 %v4997_v6  ;;  %4456 = vmatmul.mubr.bf16.vlgmr.msra.gmra.mrb[20].mxu0 %v2210_v8  ;;  %v5098_v6 = vld [vmem:[#allocation10 + $0x10] sm:$0xff]  }
 0x23d   :  { %3112 = vmatprep.subr.bf16.mxu1 %v5002_v7  ;;  %3142 = vmatprep.mubr.bf16.mxu1 %v5262_v0  ;;  %v5099_v7 = vld [vmem:[#allocation10 + $0x58] sm:$0xff]  }
 0x23e   :  { %3578 = vmatpush1.bf16.msra.mxu0 %v5021_v28 }
 0x23f   :  { %3579 = vmatprep.subr.bf16.mxu0 %v5026_v18 }
 0x240   :  { %3113 = vmatpush1.bf16.msra.mxu1 %v5000_v11  ;;  %v5101_v11 = vld [vmem:[#allocation10 + $0x60] sm:$0xff]  }
 0x241   :  { %3114 = vmatprep.subr.bf16.mxu1 %v5005_v12  ;;  %v5102_v12 = vld [vmem:[#allocation10 + $0x20] sm:$0xff]  }
 0x242   :  { %3580 = vmatpush1.bf16.msra.mxu0 %v5024_v31 }
 0x243   :  { %3581 = vmatprep.subr.bf16.mxu0 %v5029_v32 }
 0x244   :  { %3115 = vmatpush1.bf16.msra.mxu1 %v5003_v20  ;;  %v5103_v20 = vld [vmem:[#allocation10 + $0x68] sm:$0xff]  }
 0x245   :  { %3116 = vmatprep.subr.bf16.mxu1 %v5008_v13  ;;  %v2371_v13 = vld [vmem:[%s5504_s4] sm:$0x7] }
 0x246   :  { %3582 = vmatpush1.bf16.msra.mxu0 %v5027_v33  ;;  %v2376_v33 = vrot.slane %v2371_v13, %v5433_v15 }
 0x247   :  { %3583 = vmatprep.subr.bf16.mxu0 %v5032_v34  ;;  %v2380_v34 = vrot.slane %v2371_v13, %v5441_v16 }
 0x248   :  { %3117 = vmatpush1.bf16.msra.mxu1 %v5006_v14  ;;  %v5104_v14 = vld [vmem:[#allocation10 + $0x28] sm:$0xff]  }
 0x249   :  { %3118 = vmatprep.subr.bf16.mxu1 %v5011_v17  ;;  %v2384_v17 = vrot.slane %v2371_v13, %v420_v59  ;;  %v4273_v13 = vld [vmem:[%s5508_s8] ss:$0 sm:$0xff] }
 0x24a   :  { %3584 = vmatpush1.bf16.msra.mxu0 %v5030_v35 }
 0x24b   :  { %3585 = vmatprep.subr.bf16.mxu0 %v5035_v37 }
 0x24c   :  { %3119 = vmatpush1.bf16.msra.mxu1 %v5009_v19 }
 0x24d   :  { %3120 = vmatprep.subr.bf16.mxu1 %v5014_v21 }
 0x24e   :  { %3586 = vmatpush1.bf16.msra.mxu0 %v5033_v38 }
 0x24f   :  { %3587 = vmatprep.subr.bf16.mxu0 %v5038_v39 }
 0x250   :  { %3121 = vmatpush1.bf16.msra.mxu1 %v5012_v22 }
 0x251   :  { %3122 = vmatprep.subr.bf16.mxu1 %v5017_v23 }
 0x252   :  { %3588 = vmatpush1.bf16.msra.mxu0 %v5036_v58 }
 0x253   :  { %3589 = vmatprep.subr.bf16.mxu0 %v5041_v10 }
 0x254   :  { %3123 = vmatpush1.bf16.msra.mxu1 %v5015_v25 }
 0x255   :  { %3124 = vmatprep.subr.bf16.mxu1 %v5020_v26 }
 0x256   :  { %3590 = vmatpush1.bf16.msra.mxu0 %v5039_v60 }
 0x257   :  { %3591 = vmatprep.subr.bf16.mxu0 %v5044_v40  ;;  %v5069_v40 = vld [vmem:[#allocation8 + $0x100] ss:$8 sps:$4 sm:$0xff]  }
 0x258   :  { %3125 = vmatpush1.bf16.msra.mxu1 %v5018_v27 }
 0x259   :  { %4411 = vmatprep.subr.bf16.mxu1 %v5093_v1 }
 0x25a   :  { %3592 = vmatpush1.bf16.msra.mxu0 %v5042_v24 }
 0x25b   :  { %3143 = vmatmul.mubr.bf16.vlgmr.msra.gmra.mrb[16].mxu1 %v2210_v8  ;;  %3593 = vmatprep.subr.bf16.mxu0 %v5047_v42  ;;  %v5100_v8 = vld [vmem:[#allocation10 + $0x18] sm:$0xff]  }
 0x25c   :  { %4412 = vmatpush3.bf16.msra.mxu1 %v5094_v2  ;;  %v5072_v42 = vld [vmem:[#allocation8 + $0x110] ss:$8 sps:$4 sm:$0xff]  }
 0x25d   :  { %4413 = vmatprep.subr.bf16.mxu1 %v5095_v3 }
 0x25e   :  { %3594 = vmatpush1.bf16.msra.mxu0 %v5045_v41  ;;  %v5074_v41 = vld [vmem:[#allocation8 + $0x114] ss:$8 sps:$4 sm:$0xff]  }
 0x25f   :  { %3595 = vmatprep.subr.bf16.mxu0 %v5050_v51  ;;  %v5077_v51 = vld [vmem:[#allocation8 + $0x124] ss:$8 sps:$4 sm:$0xff]  }
 0x260   :  { %4414 = vmatpush3.bf16.msra.mxu1 %v5096_v4 }
 0x261   :  { %4415 = vmatprep.subr.bf16.mxu1 %v5097_v5 }
 0x262   :  { %3596 = vmatpush1.bf16.msra.mxu0 %v5048_v43  ;;  %v5075_v43 = vld [vmem:[#allocation8 + $0x120] ss:$8 sps:$4 sm:$0xff]  }
 0x263   :  { %3597 = vmatprep.subr.bf16.mxu0 %v5053_v44  ;;  %v5080_v44 = vld [vmem:[#allocation8 + $0x134] ss:$8 sps:$4 sm:$0xff]  }
 0x264   :  { %4416 = vmatpush3.bf16.msra.mxu1 %v5098_v6 }
 0x265   :  { %4417 = vmatprep.subr.bf16.mxu1 %v5099_v7 }
 0x266   :  { %3598 = vmatpush1.bf16.msra.mxu0 %v5051_v45  ;;  %v5078_v45 = vld [vmem:[#allocation8 + $0x130] ss:$8 sps:$4 sm:$0xff]  }
 0x267   :  { %3599 = vmatprep.subr.bf16.mxu0 %v5056_v29  ;;  %v5083_v29 = vld [vmem:[#allocation8 + $0x144] ss:$8 sps:$4 sm:$0xff]  }
 0x268   :  { %4418 = vmatpush3.bf16.msra.mxu1 %v5100_v8 }
 0x269   :  { %4419 = vmatprep.subr.bf16.mxu1 %v5101_v11 }
 0x26a   :  { %3600 = vmatpush1.bf16.msra.mxu0 %v5054_v46  ;;  %v5081_v46 = vld [vmem:[#allocation8 + $0x140] ss:$8 sps:$4 sm:$0xff]  }
 0x26b   :  { %3601 = vmatprep.subr.bf16.mxu0 %v5059_v47  ;;  %v5086_v47 = vld [vmem:[#allocation8 + $0x154] ss:$8 sps:$4 sm:$0xff]  }
 0x26c   :  { %4420 = vmatpush3.bf16.msra.mxu1 %v5102_v12 }
 0x26d   :  { %4421 = vmatprep.subr.bf16.mxu1 %v5103_v20 }
 0x26e   :  { %3602 = vmatpush1.bf16.msra.mxu0 %v5057_v48  ;;  %v5084_v48 = vld [vmem:[#allocation8 + $0x150] ss:$8 sps:$4 sm:$0xff]  }
 0x26f   :  { %3603 = vmatprep.subr.bf16.mxu0 %v5062_v49  ;;  %v5089_v49 = vld [vmem:[#allocation8 + $0x164] ss:$8 sps:$4 sm:$0xff]  }
 0x270   :  { %4422 = vmatpush3.bf16.msra.mxu1 %v5104_v14 }
 0x272   :  { %3604 = vmatpush1.bf16.msra.mxu0 %v5060_v50  ;;  %v5092_v50 = vld [vmem:[#allocation8 + $0x174] ss:$8 sps:$4 sm:$0xff]  }
 0x273   :  { %3605 = vmatprep.subr.bf16.mxu0 %v5065_v52  ;;  %v5090_v52 = vld [vmem:[#allocation8 + $0x170] ss:$8 sps:$4 sm:$0xff]  }
 0x276   :  { %3606 = vmatpush1.bf16.msra.mxu0 %v5063_v53 }
 0x277   :  { %3607 = vmatprep.subr.bf16.mxu0 %v5068_v54 }
 0x27a   :  { %3608 = vmatpush1.bf16.msra.mxu0 %v5066_v55  ;;  %v5105_v55 = vld [vmem:[#allocation10 + $0x70] sm:$0xff]  }
 0x27b   :  { %3618 = vmatprep.subr.bf16.mxu0 %v5071_v56  ;;  %v5106_v56 = vld [vmem:[#allocation10 + $0x30] sm:$0xff]   ;;  %4423 = vmatprep.subr.bf16.mxu1 %v5105_v55 }
 0x27c   :  { %4424 = vmatpush3.bf16.msra.mxu1 %v5106_v56 }
 0x2ce   :  { %v4374_v57 = vpop.f32.mrb[12].mxu0 }
 0x2cf   :  { %v4375_v61 = vpop.f32.mrb[13].mxu0 }
 0x2d0   :  { %v4376_v36 = vadd.f32 %v4375_v61, %v4374_v57  ;;  %v4377_v62 = vpop.f32.mrb[14].mxu0  ;;  %v5107_v57 = vld [vmem:[#allocation10 + $0x78] sm:$0xff]  }
 0x2d1   :  { %v4378_v63 = vpop.f32.mrb[15].mxu0  ;;  %v5108_v61 = vld [vmem:[#allocation10 + $0x38] sm:$0xff]   ;;  %4425 = vmatprep.subr.bf16.mxu1 %v5107_v57 }
 0x2d2   :  { %v3186_v22 = vadd.f32 %v4376_v36, %v2384_v17  ;;  %4426 = vmatpush3.bf16.msra.mxu1 %v5108_v61  ;;  %v3325_v36 = vld [vmem:[%s5506_s6] sm:$0x3]  ;;  %s5265_s6 = smov [#allocation11]  }
 0x2d3   :  { %v3330_v62 = vrot.slane %v3325_v36, %v5433_v15  ;;  %v3334_v63 = vrot.slane %v3325_v36, %v5441_v16  ;;  %s3846_s10 = sshll.u32 %s5265_s6, 4  ;;  %s3847_s10 = int_to_ptr.vmem [resolvable:$true] %s3846_s10 }
 0x2d4   :  { %s5219_s13 = scalar_lea.vmem %s3847_s10, 128  ;;  %p5224_p13 = scmp.lt.s32.totalorder %s3847_s10, %s3847_s10 }
 0x2d5   :  { %p5220_p12 = scmp.ne.s32.totalorder %s3847_s10, %s5219_s13  ;;  %p5225_p0 = scmp.lt.s32.totalorder %s5219_s13, %s5219_s13 }
 0x2d7   :  { %p5226_p1 = por %p5225_p0, %p5224_p13 }
 0x2d9   :  { %p5227_p2 = pnand %p5226_p1, %p5220_p12 }
 0x2ee   :  { %v4396_v19 = vpop.f32.mrb[16].mxu0 }
 0x2ef   :  { %v4397_v21 = vpop.f32.mrb[17].mxu0 }
 0x2f0   :  { %v4398_v23 = vadd.f32 %v4397_v21, %v4396_v19  ;;  %v4399_v25 = vpop.f32.mrb[18].mxu0 }
 0x2f1   :  { %v4400_v26 = vpop.f32.mrb[19].mxu0 }
 0x2f2   :  { %v3226_v27 = vadd.f32 %v4398_v23, %v3186_v22 }
 0x30f   :  { %v3265_v28 = vpop.f32.mrb[20].mxu0 }
 0x310   :  { %v3266_v30 = vadd.f32 %v3265_v28, %v3226_v27  ;;  %v4457_v18 = vpop.f32.mrb[21].mxu0 }
 0x311   :  { %v3268_v31 = vpop.f32.mrb[22].mxu0 }
 0x312   :  { %v4458_v32 = vpop.f32.mrb[23].mxu0  ;;  %v3273_v53 = vmax.f32 %v3266_v30, 0.0 }
 0x314   :  { %v3276_v54 = vpack.c.bf16 %v3273_v53, %v3273_v53 }
 0x32e   :  { %v3144_v35 = vpop.f32.mrb[16].mxu1 }
 0x32f   :  { %v4465_v9 = vadd.f32 %v3144_v35, %v2376_v33  ;;  %v3146_v59 = vpop.f32.mrb[17].mxu1 }
 0x330   :  { %v4466_v37 = vadd.f32 %v3146_v59, %v2380_v34  ;;  %v3148_v38 = vpop.f32.mrb[18].mxu1 }
 0x331   :  { %v3271_v39 = vmax.f32 %v4465_v9, 0.0  ;;  %v3149_v58 = vpop.f32.mrb[19].mxu1 }
 0x332   :  { %v3272_v10 = vmax.f32 %v4466_v37, 0.0 }
 0x333   :  { %v3274_v24 = vpack.c.bf16 %v3271_v39, %v3271_v39 }
 0x334   :  { %v3275_v60 = vpack.c.bf16 %v3272_v10, %v3272_v10 }
 0x336   :  { %3609 = vmatprep.mubr.bf16.mxu0 %v3275_v60 }
 0x337   :  { %3610 = vmatmul.mubr.bf16.vlgmr.msra.gmra.mrb[24].mxu0 %v3274_v24 }
 0x338   :  { %3619 = vmatpush1.bf16.msra.mxu0 %v5069_v40  ;;  %3650 = vmatprep.mubr.bf16.mxu0 %v5262_v0  ;;  %v5087_v0 = vld [vmem:[#allocation8 + $0x160] ss:$8 sps:$4 sm:$0xff]  }
 0x339   :  { %3620 = vmatprep.subr.bf16.mxu0 %v5074_v41 }
 0x33c   :  { %3621 = vmatpush1.bf16.msra.mxu0 %v5072_v42 }
 0x33d   :  { %3622 = vmatprep.subr.bf16.mxu0 %v5077_v51 }
 0x340   :  { %3623 = vmatpush1.bf16.msra.mxu0 %v5075_v43 }
 0x341   :  { %3624 = vmatprep.subr.bf16.mxu0 %v5080_v44 }
 0x344   :  { %3625 = vmatpush1.bf16.msra.mxu0 %v5078_v45 }
 0x345   :  { %3626 = vmatprep.subr.bf16.mxu0 %v5083_v29 }
 0x348   :  { %3627 = vmatpush1.bf16.msra.mxu0 %v5081_v46 }
 0x349   :  { %3628 = vmatprep.subr.bf16.mxu0 %v5086_v47 }
 0x34c   :  { %3629 = vmatpush1.bf16.msra.mxu0 %v5084_v48 }
 0x34d   :  { %3630 = vmatprep.subr.bf16.mxu0 %v5089_v49 }
 0x350   :  { %3631 = vmatpush1.bf16.msra.mxu0 %v5087_v0 }
 0x351   :  { %3632 = vmatprep.subr.bf16.mxu0 %v5092_v50 }
 0x354   :  { %3633 = vmatpush1.bf16.msra.mxu0 %v5090_v52 }
 0x357   :  { %3651 = vmatmul.mubr.bf16.vlgmr.msra.gmra.mrb[24].mxu0 %v3276_v54 }
 0x42a   :  { %v3652_v1 = vpop.f32.mrb[24].mxu0 }
 0x42b   :  { %v4467_v2 = vadd.f32 %v3652_v1, %v3330_v62  ;;  %v3654_v3 = vpop.f32.mrb[25].mxu0 }
 0x42c   :  { %v4468_v4 = vadd.f32 %v3654_v3, %v3334_v63  ;;  %v3656_v5 = vpop.f32.mrb[26].mxu0 }
 0x42d   :  { %v3659_v6 = vmax.f32 %v4467_v2, 0.0  ;;  %v3657_v7 = vpop.f32.mrb[27].mxu0 }
 0x42e   :  { %v3660_v8 = vmax.f32 %v4468_v4, 0.0 }
 0x42f   :  { %v3661_v12 = vpack.c.bf16 %v3659_v6, %v3659_v6 }
 0x430   :  { %v3662_v11 = vpack.c.bf16 %v3660_v8, %v3660_v8 }
 0x432   :  { %3830 = vmatprep.mubr.bf16.mxu1 %v3662_v11 }
 0x433   :  { %3831 = vmatmul.mubr.bf16.vlgmr.msra.gmra.mrb[20].mxu1 %v3661_v12 }
 0x506   :  { %v4427_v20 = vpop.f32.mrb[20].mxu1 }
 0x507   :  { %v4428_v15 = vpop.f32.mrb[21].mxu1 }
 0x508   :  { %v4429_v14 = vadd.f32 %v4428_v15, %v4427_v20  ;;  %v4430_v16 = vpop.f32.mrb[22].mxu1 }
 0x509   :  { %v4431_v17 = vpop.f32.mrb[23].mxu1 }
 0x50a   :  { %v3833_v19 = vadd.f32 %v4429_v14, %v4273_v13 }
 0x50c   :  { %v3838_v21 = vmax.f32 %v3833_v19, 0.0 }
 0x50e   :  { %3839 = vst [vmem:[#allocation11] sm:$0xff] %v3838_v21 }
 0x50f   :  { %5230 = shalt.err (!%p5227_p2)
}
 0x510   :  { %s5231_s8 = scalar_lea.hbm %s5509_s9, 128 }
 0x511   :  { %p5232_p3 = scmp.ne.s32.totalorder %s5509_s9, %s5231_s8  ;;  %p5235_p4 = scmp.lt.u32.totalorder %s5231_s8, %s5509_s9 }
 0x513   :  { %p5237_p5 = pnand %p5235_p4, %p5232_p3 }
 0x515   :  { %5240 = shalt.err (!%p5237_p5)
}
 0x516   :  { %3849 = dma.vmem_to_hbm [thread:$0]  %s3847_s10, 128, %s5509_s9, [#allocation4]  }
 0x517   :  { %5247 = dma.done.wait [#allocation4], 128  }
 0x518   :  { %5248 = vsyncadd [#allocation4], 4294967168 }
 0x519   :  { %3853 = vsyncpa [#allocation3], 1 }
 0x51a   :  { %3854 = vsyncpa [#allocation6], 1 }
 0x51b   :  { %3855 = vsyncpa [#allocation9], 1 }
 0x51c   :  { %3856 = vsyncpa [#allocation4], 1 }

// kernel: tpu_custom_call.1
= control target key start
LH: loop header
LB: loop body
LE: loop exit
PB: predicated region body
PF: predicated region fallthrough
CT: control target
= control target key end

     0   :  { %14 = vsyncpa [#allocation3], 0  ;;  %s5500_s0 = inlined_call_operand.hbm [shape: f32[8,784], index: 0, kind: input, shape index: {}]   ;;  %s5501_s1 = inlined_call_operand.hbm [shape: bf16[784,640], index: 1, kind: input, shape index: {}]   ;;  %s5502_s2 = inlined_call_operand.vmem [shape: f32[1,640], index: 2, kind: input, shape index: {}]   ;;  %s5503_s3 = inlined_call_operand.hbm [shape: bf16[640,384], index: 3, kind: input, shape index: {}]   ;;  %s5504_s4 = inlined_call_operand.vmem [shape: f32[1,384], index: 4, kind: input, shape index: {}]   ;;  %s5505_s5 = inlined_call_operand.hbm [shape: bf16[384,256], index: 5, kind: input, shape index: {}]   ;;  %s5506_s6 = inlined_call_operand.vmem [shape: f32[1,256], index: 6, kind: input, shape index: {}]   ;;  %s5507_s7 = inlined_call_operand.hbm [shape: bf16[256,128], index: 7, kind: input, shape index: {}]   ;;  %s5508_s8 = inlined_call_operand.vmem [shape: f32[1,128], index: 8, kind: input, shape index: {}]   ;;  %s5509_s9 = inlined_call_operand.hbm [shape: f32[8,128], index: 9, kind: output, shape index: {}]  }
   0x1   :  { %15 = vsyncpa [#allocation6], 0 }
   0x2   :  { %16 = vsyncpa [#allocation9], 0 }
   0x3   :  { %17 = vsyncpa [#allocation4], 0  ;;  %s5249_s30 = smov [#allocation5]   ;;  %s5109_s13 = scalar_lea.hbm %s5501_s1, 31360 }
   0x4   :  { %s33_s10 = sshll.u32 %s5249_s30, 4  ;;  %p5110_p0 = scmp.ne.s32.totalorder %s5501_s1, %s5109_s13  ;;  %s34_s10 = int_to_ptr.vmem [resolvable:$true] %s33_s10 }
   0x5   :  { %p5113_p1 = scmp.lt.u32.totalorder %s5109_s13, %s5501_s1 }
   0x7   :  { %p5115_p2 = pnand %p5113_p1, %p5110_p0 }
   0x9   :  { %5118 = shalt.err (!%p5115_p2)
}
   0xa   :  { %s5119_s18 = scalar_lea.vmem %s34_s10, 31360  ;;  %p5124_p4 = scmp.lt.s32.totalorder %s34_s10, %s34_s10 }
   0xb   :  { %p5120_p3 = scmp.ne.s32.totalorder %s34_s10, %s5119_s18  ;;  %p5125_p5 = scmp.lt.s32.totalorder %s5119_s18, %s5119_s18 }
   0xd   :  { %p5126_p6 = por %p5125_p5, %p5124_p4 }
   0xf   :  { %p5127_p7 = pnand %p5126_p6, %p5120_p3 }
  0x11   :  { %5130 = shalt.err (!%p5127_p7)
}
  0x12   :  { %s5250_s19 = smov 320   ;;  %s5251_s20 = smov 20  }
  0x13   :  { %39 = dma.hbm_to_vmem [thread:$0]  %s5501_s1, 31360, %s34_s10, [#allocation6], %s5250_s19, %s5250_s19, %s5251_s20  }
  0x14   :  { %s5252_s23 = smov [#allocation8]   ;;  %s5131_s27 = scalar_lea.hbm %s5505_s5, 6144 }
  0x15   :  { %s61_s24 = sshll.u32 %s5252_s23, 4  ;;  %p5132_p8 = scmp.ne.s32.totalorder %s5505_s5, %s5131_s27  ;;  %s62_s24 = int_to_ptr.vmem [resolvable:$true] %s61_s24 }
  0x16   :  { %p5135_p9 = scmp.lt.u32.totalorder %s5131_s27, %s5505_s5 }
  0x18   :  { %p5137_p10 = pnand %p5135_p9, %p5132_p8 }
  0x1a   :  { %5140 = shalt.err (!%p5137_p10)
}
  0x1b   :  { %s5141_s12 = scalar_lea.vmem %s62_s24, 6144  ;;  %p5146_p12 = scmp.lt.s32.totalorder %s62_s24, %s62_s24 }
  0x1c   :  { %p5142_p11 = scmp.ne.s32.totalorder %s62_s24, %s5141_s12  ;;  %p5147_p13 = scmp.lt.s32.totalorder %s5141_s12, %s5141_s12 }
  0x1e   :  { %p5148_p0 = por %p5147_p13, %p5146_p12 }
  0x20   :  { %p5149_p1 = pnand %p5148_p0, %p5142_p11 }
  0x22   :  { %5152 = shalt.err (!%p5149_p1)
}
  0x23   :  { %s5253_s1 = smov 128   ;;  %s5254_s10 = smov 8  }
  0x24   :  { %67 = dma.hbm_to_vmem [thread:$0]  %s5505_s5, 6144, %s62_s24, [#allocation9], %s5253_s1, %s5253_s1, %s5254_s10  }
  0x25   :  { %s5255_s15 = smov [#allocation2]   ;;  %s5256_s17 = smov [#allocation7]  }
  0x26   :  { %s24_s16 = sshll.u32 %s5255_s15, 4  ;;  %s47_s18 = sshll.u32 %s5256_s17, 4  ;;  %s25_s16 = int_to_ptr.vmem [resolvable:$true] %s24_s16  ;;  %s5340_s18 = int_to_ptr.vmem [resolvable:$true] %s47_s18 }
  0x27   :  { %s5153_s21 = scalar_lea.hbm %s5500_s0, 896 }
  0x28   :  { %p5154_p2 = scmp.ne.s32.totalorder %s5500_s0, %s5153_s21  ;;  %p5157_p3 = scmp.lt.u32.totalorder %s5153_s21, %s5500_s0 }
  0x2a   :  { %p5159_p4 = pnand %p5157_p3, %p5154_p2 }
  0x2c   :  { %5162 = shalt.err (!%p5159_p4)
}
  0x2d   :  { %s5163_s5 = scalar_lea.vmem %s25_s16, 896  ;;  %p5168_p6 = scmp.lt.s32.totalorder %s25_s16, %s25_s16 }
  0x2e   :  { %p5164_p5 = scmp.ne.s32.totalorder %s25_s16, %s5163_s5  ;;  %p5169_p7 = scmp.lt.s32.totalorder %s5163_s5, %s5163_s5 }
  0x30   :  { %p5170_p8 = por %p5169_p7, %p5168_p6 }
  0x32   :  { %p5171_p9 = pnand %p5170_p8, %p5164_p5 }
  0x34   :  { %5174 = shalt.err (!%p5171_p9)
}
  0x35   :  { %27 = dma.hbm_to_vmem [thread:$0]  %s5500_s0, 896, %s25_s16, [#allocation3]  }
  0x36   :  { %s5175_s30 = scalar_lea.hbm %s5503_s3, 15360 }
  0x37   :  { %p5176_p10 = scmp.ne.s32.totalorder %s5503_s3, %s5175_s30  ;;  %p5179_p11 = scmp.lt.u32.totalorder %s5175_s30, %s5503_s3 }
  0x39   :  { %p5181_p12 = pnand %p5179_p11, %p5176_p10 }
  0x3b   :  { %5184 = shalt.err (!%p5181_p12)
}
  0x3c   :  { %s5185_s13 = scalar_lea.vmem %s5340_s18, 15360  ;;  %p5190_p0 = scmp.lt.s32.totalorder %s5340_s18, %s5340_s18 }
  0x3d   :  { %p5186_p13 = scmp.ne.s32.totalorder %s5340_s18, %s5185_s13  ;;  %p5191_p1 = scmp.lt.s32.totalorder %s5185_s13, %s5185_s13 }
  0x3f   :  { %p5192_p2 = por %p5191_p1, %p5190_p0 }
  0x41   :  { %p5193_p3 = pnand %p5192_p2, %p5186_p13 }
  0x43   :  { %5196 = shalt.err (!%p5193_p3)
}
  0x44   :  { %s5257_s0 = smov 192   ;;  %s5258_s14 = smov 12  }
  0x45   :  { %53 = dma.hbm_to_vmem [thread:$0]  %s5503_s3, 15360, %s5340_s18, [#allocation6], %s5257_s0, %s5257_s0, %s5258_s14  }
  0x46   :  { %s5259_s17 = smov [#allocation10]   ;;  %s5197_s22 = scalar_lea.hbm %s5507_s7, 2048 }
  0x47   :  { %s75_s19 = sshll.u32 %s5259_s17, 4  ;;  %p5198_p4 = scmp.ne.s32.totalorder %s5507_s7, %s5197_s22  ;;  %s76_s19 = int_to_ptr.vmem [resolvable:$true] %s75_s19 }
  0x48   :  { %p5201_p5 = scmp.lt.u32.totalorder %s5197_s22, %s5507_s7 }
  0x4a   :  { %p5203_p6 = pnand %p5201_p5, %p5198_p4 }
  0x4c   :  { %5206 = shalt.err (!%p5203_p6)
}
  0x4d   :  { %s5207_s24 = scalar_lea.vmem %s76_s19, 2048  ;;  %p5212_p8 = scmp.lt.s32.totalorder %s76_s19, %s76_s19 }
  0x4e   :  { %p5208_p7 = scmp.ne.s32.totalorder %s76_s19, %s5207_s24  ;;  %p5213_p9 = scmp.lt.s32.totalorder %s5207_s24, %s5207_s24 }
  0x50   :  { %p5214_p10 = por %p5213_p9, %p5212_p8 }
  0x52   :  { %p5215_p11 = pnand %p5214_p10, %p5208_p7 }
  0x54   :  { %5218 = shalt.err (!%p5215_p11)
}
  0x55   :  { %s5260_s3 = smov 64   ;;  %s5261_s18 = smov 4  }
  0x56   :  { %81 = dma.hbm_to_vmem [thread:$0]  %s5507_s7, 2048, %s76_s19, [#allocation9], %s5260_s3, %s5260_s3, %s5261_s18  }
  0x57   :  { %5241 = dma.done.wait [#allocation3], 896  }
  0x58   :  { %5242 = vsyncadd [#allocation3], 4294966400 }
  0x59   :  { %5243 = dma.done.wait [#allocation6], 46720  }
  0x5a   :  { %5244 = vsyncadd [#allocation6], 4294920576 }
  0x5b   :  { %5245 = dma.done.wait [#allocation9], 8192  }
  0x5c   :  { %5246 = vsyncadd [#allocation9], 4294959104  ;;  %v5262_v0 = vmov 0   ;;  %v4518_v1 = vld [vmem:[#allocation5 + $0x4] ss:$20 sps:$4 sm:$0xff]   ;;  %vm1709_vm0 = vcmask 130048  }
  0x5d   :  { %1868 = vmatprep.mubr.bf16.mxu1 %v5262_v0  ;;  %v4520_v2 = vld [vmem:[#allocation5 + $0x784] ss:$20 sps:$4 sm:$0xff]   ;;  %1713 = vmatprep.subr.bf16.mxu0 %v4518_v1  ;;  %v4522_v3 = vld [vmem:[#allocation5] ss:$20 sps:$4 sm:$0xff]   ;;  %v4526_v6 = vld [vmem:[#allocation5 + $0x8] ss:$20 sps:$4 sm:$0xff]  }
  0x5e   :  { %v4523_v4 = vld [vmem:[#allocation5 + $0x780] ss:$20 sps:$4 sm:$0xff]   ;;  %1836 = vmatprep.subr.bf16.mxu1 %v4520_v2  ;;  %1714 = vmatpush1.bf16.msra.mxu0 %v4522_v3  ;;  %v4529_v8 = vld [vmem:[#allocation5 + $0x28] ss:$20 sps:$4 sm:$0xff]   ;;  %v4532_v12 = vld [vmem:[#allocation5 + $0x30] ss:$20 sps:$4 sm:$0xff]  }
  0x5f   :  { %v4524_v5 = vld [vmem:[#allocation5 + $0x2c] ss:$20 sps:$4 sm:$0xff]   ;;  %1837 = vmatpush1.bf16.msra.mxu1 %v4523_v4  ;;  %v106_v9 = vld [vmem:[#allocation2 + $0x30] sm:$0xff]  ;;  %v4530_v11 = vld [vmem:[#allocation5 + $0x54] ss:$20 sps:$4 sm:$0xff]   ;;  %vm5264_vm1 = vmmov 0  }
  0x60   :  { %v4528_v7 = vld [vmem:[#allocation5 + $0xc] ss:$20 sps:$4 sm:$0xff]   ;;  %1715 = vmatprep.subr.bf16.mxu0 %v4524_v5  ;;  %v5384_v10 = vpack.c.bf16 %v106_v9, %v106_v9  ;;  %v4534_v13 = vld [vmem:[#allocation5 + $0x34] ss:$20 sps:$4 sm:$0xff]   ;;  %v4535_v14 = vld [vmem:[#allocation5 + $0x50] ss:$20 sps:$4 sm:$0xff]  }
  0x61   :  { %1877 = vmatprep.subr.bf16.mxu1 %v4528_v7  ;;  %v4536_v15 = vld [vmem:[#allocation5 + $0x7c] ss:$20 sps:$4 sm:$0xff]   ;;  %v4541_v17 = vld [vmem:[#allocation5 + $0x78] ss:$20 sps:$4 sm:$0xff]   ;;  %v4544_v21 = vld [vmem:[#allocation5 + $0x80] ss:$20 sps:$4 sm:$0xff]  }
  0x62   :  { %1716 = vmatpush1.bf16.msra.mxu0 %v4529_v8  ;;  %4102 = vmatmul.mubr.msk.bf16.vlgmr.msra.gmra.mrb[0].mxu1 %vm1709_vm0, %v5384_v10  ;;  %v4540_v16 = vld [vmem:[#allocation5 + $0x5c] ss:$20 sps:$4 sm:$0xff]   ;;  %v4538_v18 = vld [vmem:[#allocation5 + $0x58] ss:$20 sps:$4 sm:$0xff]   ;;  %v4547_v22 = vld [vmem:[#allocation5 + $0xa0] ss:$20 sps:$4 sm:$0xff]  }
  0x63   :  { %1878 = vmatpush1.bf16.msra.mxu1 %v4526_v6  ;;  %1717 = vmatprep.subr.bf16.mxu0 %v4530_v11  ;;  %v4542_v19 = vld [vmem:[#allocation5 + $0xa4] ss:$20 sps:$4 sm:$0xff]   ;;  %v4548_v23 = vld [vmem:[#allocation5 + $0xcc] ss:$20 sps:$4 sm:$0xff]   ;;  %v4553_v25 = vld [vmem:[#allocation5 + $0xc8] ss:$20 sps:$4 sm:$0xff]  }
  0x64   :  { %1879 = vmatprep.subr.bf16.mxu1 %v4534_v13  ;;  %v4546_v20 = vld [vmem:[#allocation5 + $0x84] ss:$20 sps:$4 sm:$0xff]   ;;  %v4552_v24 = vld [vmem:[#allocation5 + $0xac] ss:$20 sps:$4 sm:$0xff]   ;;  %v4550_v26 = vld [vmem:[#allocation5 + $0xa8] ss:$20 sps:$4 sm:$0xff]  }
  0x65   :  { %v4554_v27 = vld [vmem:[#allocation5 + $0xf4] ss:$20 sps:$4 sm:$0xff]   ;;  %v4556_v29 = vld [vmem:[#allocation5 + $0xd0] ss:$20 sps:$4 sm:$0xff]   ;;  %v4565_v33 = vld [vmem:[#allocation5 + $0x118] ss:$20 sps:$4 sm:$0xff]  }
  0x66   :  { %1718 = vmatpush1.bf16.msra.mxu0 %v4535_v14  ;;  %v4558_v28 = vld [vmem:[#allocation5 + $0xd4] ss:$20 sps:$4 sm:$0xff]   ;;  %v4559_v30 = vld [vmem:[#allocation5 + $0xf0] ss:$20 sps:$4 sm:$0xff]   ;;  %v4562_v34 = vld [vmem:[#allocation5 + $0xf8] ss:$20 sps:$4 sm:$0xff]  }
  0x67   :  { %1880 = vmatpush1.bf16.msra.mxu1 %v4532_v12  ;;  %1719 = vmatprep.subr.bf16.mxu0 %v4536_v15  ;;  %v4560_v31 = vld [vmem:[#allocation5 + $0x11c] ss:$20 sps:$4 sm:$0xff]   ;;  %v4566_v35 = vld [vmem:[#allocation5 + $0x144] ss:$20 sps:$4 sm:$0xff]   ;;  %v4568_v37 = vld [vmem:[#allocation5 + $0x120] ss:$20 sps:$4 sm:$0xff]  }
  0x68   :  { %1881 = vmatprep.subr.bf16.mxu1 %v4540_v16  ;;  %v4564_v32 = vld [vmem:[#allocation5 + $0xfc] ss:$20 sps:$4 sm:$0xff]   ;;  %v4570_v36 = vld [vmem:[#allocation5 + $0x124] ss:$20 sps:$4 sm:$0xff]   ;;  %v4571_v38 = vld [vmem:[#allocation5 + $0x140] ss:$20 sps:$4 sm:$0xff]  }
  0x69   :  { %v4572_v39 = vld [vmem:[#allocation5 + $0x16c] ss:$20 sps:$4 sm:$0xff]   ;;  %v4577_v41 = vld [vmem:[#allocation5 + $0x168] ss:$20 sps:$4 sm:$0xff]   ;;  %v4580_v45 = vld [vmem:[#allocation5 + $0x170] ss:$20 sps:$4 sm:$0xff]  }
  0x6a   :  { %1720 = vmatpush1.bf16.msra.mxu0 %v4541_v17  ;;  %v4576_v40 = vld [vmem:[#allocation5 + $0x14c] ss:$20 sps:$4 sm:$0xff]   ;;  %v4574_v42 = vld [vmem:[#allocation5 + $0x148] ss:$20 sps:$4 sm:$0xff]   ;;  %v4583_v46 = vld [vmem:[#allocation5 + $0x190] ss:$20 sps:$4 sm:$0xff]  }
  0x6b   :  { %1882 = vmatpush1.bf16.msra.mxu1 %v4538_v18  ;;  %1721 = vmatprep.subr.bf16.mxu0 %v4542_v19  ;;  %v4578_v43 = vld [vmem:[#allocation5 + $0x194] ss:$20 sps:$4 sm:$0xff]   ;;  %v4584_v47 = vld [vmem:[#allocation5 + $0x1bc] ss:$20 sps:$4 sm:$0xff]   ;;  %v4589_v50 = vld [vmem:[#allocation5 + $0x1b8] ss:$20 sps:$4 sm:$0xff]  }
  0x6c   :  { %1883 = vmatprep.subr.bf16.mxu1 %v4546_v20  ;;  %v4582_v44 = vld [vmem:[#allocation5 + $0x174] ss:$20 sps:$4 sm:$0xff]   ;;  %v4588_v48 = vld [vmem:[#allocation5 + $0x19c] ss:$20 sps:$4 sm:$0xff]   ;;  %v4586_v52 = vld [vmem:[#allocation5 + $0x198] ss:$20 sps:$4 sm:$0xff]  }
  0x6d   :  { %v101_v49 = vld [vmem:[#allocation2 + $0x8] sm:$0xff]  ;;  %v4590_v53 = vld [vmem:[#allocation5 + $0x1e4] ss:$20 sps:$4 sm:$0xff]   ;;  %v4596_v57 = vld [vmem:[#allocation5 + $0x20c] ss:$20 sps:$4 sm:$0xff]  }
  0x6e   :  { %1722 = vmatpush1.bf16.msra.mxu0 %v4547_v22  ;;  %v5388_v51 = vpack.c.bf16 %v101_v49, %v101_v49  ;;  %v4594_v54 = vld [vmem:[#allocation5 + $0x1c4] ss:$20 sps:$4 sm:$0xff]   ;;  %v4592_v55 = vld [vmem:[#allocation5 + $0x1c0] ss:$20 sps:$4 sm:$0xff]   ;;  %v4598_v59 = vld [vmem:[#allocation5 + $0x1e8] ss:$20 sps:$4 sm:$0xff]  }
  0x6f   :  { %1884 = vmatpush1.bf16.msra.mxu1 %v4544_v21  ;;  %1723 = vmatprep.subr.bf16.mxu0 %v4548_v23  ;;  %v4595_v56 = vld [vmem:[#allocation5 + $0x1e0] ss:$20 sps:$4 sm:$0xff]   ;;  %v4601_v60 = vld [vmem:[#allocation5 + $0x208] ss:$20 sps:$4 sm:$0xff]   ;;  %v4604_v63 = vld [vmem:[#allocation5 + $0x210] ss:$20 sps:$4 sm:$0xff]  }
  0x70   :  { %1885 = vmatprep.subr.bf16.mxu1 %v4552_v24  ;;  %1745 = vmatprep.mubr.bf16.mxu0 %v5388_v51  ;;  %v4600_v58 = vld [vmem:[#allocation5 + $0x1ec] ss:$20 sps:$4 sm:$0xff]   ;;  %v4602_v61 = vld [vmem:[#allocation5 + $0x234] ss:$20 sps:$4 sm:$0xff]   ;;  %v4607_v1 = vld [vmem:[#allocation5 + $0x230] ss:$20 sps:$4 sm:$0xff]  }
  0x71   :  { %1909 = vmatprep.mubr.bf16.mxu1 %v5388_v51  ;;  %v4606_v62 = vld [vmem:[#allocation5 + $0x214] ss:$20 sps:$4 sm:$0xff]   ;;  %v4608_v2 = vld [vmem:[#allocation5 + $0x25c] ss:$20 sps:$4 sm:$0xff]   ;;  %v4610_v4 = vld [vmem:[#allocation5 + $0x238] ss:$20 sps:$4 sm:$0xff]  }
  0x72   :  { %1724 = vmatpush1.bf16.msra.mxu0 %v4553_v25  ;;  %v4612_v3 = vld [vmem:[#allocation5 + $0x23c] ss:$20 sps:$4 sm:$0xff]   ;;  %v4613_v5 = vld [vmem:[#allocation5 + $0x258] ss:$20 sps:$4 sm:$0xff]   ;;  %v4614_v11 = vld [vmem:[#allocation5 + $0x280] ss:$20 sps:$4 sm:$0xff]  }
  0x73   :  { %1886 = vmatpush1.bf16.msra.mxu1 %v4550_v26  ;;  %1725 = vmatprep.subr.bf16.mxu0 %v4554_v27  ;;  %v100_v6 = vld [vmem:[#allocation2] sm:$0xff]  ;;  %v4616_v7 = vld [vmem:[#allocation5 + $0x284] ss:$20 sps:$4 sm:$0xff]   ;;  %v4617_v12 = vld [vmem:[#allocation5 + $0x260] ss:$20 sps:$4 sm:$0xff]  }
  0x74   :  { %1887 = vmatprep.subr.bf16.mxu1 %v4558_v28  ;;  %v4619_v8 = vld [vmem:[#allocation5 + $0x264] ss:$20 sps:$4 sm:$0xff]   ;;  %v5392_v9 = vpack.c.bf16 %v100_v6, %v100_v6  ;;  %v4622_v13 = vld [vmem:[#allocation5 + $0x2ac] ss:$20 sps:$4 sm:$0xff]   ;;  %v4620_v15 = vld [vmem:[#allocation5 + $0x2a8] ss:$20 sps:$4 sm:$0xff]  }
  0x75   :  { %v4625_v14 = vld [vmem:[#allocation5 + $0x28c] ss:$20 sps:$4 sm:$0xff]   ;;  %v4623_v16 = vld [vmem:[#allocation5 + $0x288] ss:$20 sps:$4 sm:$0xff]   ;;  %v4626_v19 = vld [vmem:[#allocation5 + $0x2d0] ss:$20 sps:$4 sm:$0xff]  }
  0x76   :  { %1726 = vmatpush1.bf16.msra.mxu0 %v4559_v30  ;;  %v4628_v17 = vld [vmem:[#allocation5 + $0x2d4] ss:$20 sps:$4 sm:$0xff]   ;;  %v4629_v20 = vld [vmem:[#allocation5 + $0x2b0] ss:$20 sps:$4 sm:$0xff]   ;;  %v4632_v23 = vld [vmem:[#allocation5 + $0x2f8] ss:$20 sps:$4 sm:$0xff]  }
  0x77   :  { %1888 = vmatpush1.bf16.msra.mxu1 %v4556_v29  ;;  %1727 = vmatprep.subr.bf16.mxu0 %v4560_v31  ;;  %v4631_v18 = vld [vmem:[#allocation5 + $0x2b4] ss:$20 sps:$4 sm:$0xff]   ;;  %v4634_v21 = vld [vmem:[#allocation5 + $0x2fc] ss:$20 sps:$4 sm:$0xff]   ;;  %v4635_v24 = vld [vmem:[#allocation5 + $0x2d8] ss:$20 sps:$4 sm:$0xff]  }
  0x78   :  { %1889 = vmatprep.subr.bf16.mxu1 %v4564_v32  ;;  %v4637_v22 = vld [vmem:[#allocation5 + $0x2dc] ss:$20 sps:$4 sm:$0xff]   ;;  %v4640_v25 = vld [vmem:[#allocation5 + $0x324] ss:$20 sps:$4 sm:$0xff]   ;;  %v4638_v27 = vld [vmem:[#allocation5 + $0x320] ss:$20 sps:$4 sm:$0xff]  }
  0x79   :  { %v4643_v26 = vld [vmem:[#allocation5 + $0x304] ss:$20 sps:$4 sm:$0xff]   ;;  %v4641_v28 = vld [vmem:[#allocation5 + $0x300] ss:$20 sps:$4 sm:$0xff]   ;;  %v4644_v31 = vld [vmem:[#allocation5 + $0x348] ss:$20 sps:$4 sm:$0xff]  }
  0x7a   :  { %1728 = vmatpush1.bf16.msra.mxu0 %v4565_v33  ;;  %v4646_v29 = vld [vmem:[#allocation5 + $0x34c] ss:$20 sps:$4 sm:$0xff]   ;;  %v4647_v32 = vld [vmem:[#allocation5 + $0x328] ss:$20 sps:$4 sm:$0xff]  }
  0x7b   :  { %1890 = vmatpush1.bf16.msra.mxu1 %v4562_v34  ;;  %1729 = vmatprep.subr.bf16.mxu0 %v4566_v35  ;;  %v4649_v30 = vld [vmem:[#allocation5 + $0x32c] ss:$20 sps:$4 sm:$0xff]   ;;  %v4652_v33 = vld [vmem:[#allocation5 + $0x374] ss:$20 sps:$4 sm:$0xff]  }
  0x7c   :  { %1891 = vmatprep.subr.bf16.mxu1 %v4570_v36  ;;  %v4655_v34 = vld [vmem:[#allocation5 + $0x354] ss:$20 sps:$4 sm:$0xff]   ;;  %v103_v35 = vld [vmem:[#allocation2 + $0x18] sm:$0xff] }
  0x7d   :  { %v5396_v36 = vpack.c.bf16 %v103_v35, %v103_v35  ;;  %v4668_v49 = vld [vmem:[#allocation5 + $0x3e8] ss:$20 sps:$4 sm:$0xff]   ;;  %v4736_v35 = vld [vmem:[#allocation5 + $0x5a4] ss:$20 sps:$4 sm:$0xff]  }
  0x7e   :  { %1730 = vmatpush1.bf16.msra.mxu0 %v4571_v38  ;;  %v4653_v38 = vld [vmem:[#allocation5 + $0x350] ss:$20 sps:$4 sm:$0xff]   ;;  %v4703_v6 = vld [vmem:[#allocation5 + $0x494] ss:$20 sps:$4 sm:$0xff]  }
  0x7f   :  { %1892 = vmatpush1.bf16.msra.mxu1 %v4568_v37  ;;  %1731 = vmatprep.subr.bf16.mxu0 %v4572_v39  ;;  %v4650_v37 = vld [vmem:[#allocation5 + $0x370] ss:$20 sps:$4 sm:$0xff]  }
  0x80   :  { %1893 = vmatprep.subr.bf16.mxu1 %v4576_v40  ;;  %v4658_v39 = vld [vmem:[#allocation5 + $0x39c] ss:$20 sps:$4 sm:$0xff]  }
  0x81   :  { %v4661_v40 = vld [vmem:[#allocation5 + $0x37c] ss:$20 sps:$4 sm:$0xff]  }
  0x82   :  { %1732 = vmatpush1.bf16.msra.mxu0 %v4577_v41  ;;  %v4656_v41 = vld [vmem:[#allocation5 + $0x398] ss:$20 sps:$4 sm:$0xff]  }
  0x83   :  { %1894 = vmatpush1.bf16.msra.mxu1 %v4574_v42  ;;  %1733 = vmatprep.subr.bf16.mxu0 %v4578_v43  ;;  %v4659_v42 = vld [vmem:[#allocation5 + $0x378] ss:$20 sps:$4 sm:$0xff]  }
  0x84   :  { %1895 = vmatprep.subr.bf16.mxu1 %v4582_v44  ;;  %v4664_v43 = vld [vmem:[#allocation5 + $0x3c4] ss:$20 sps:$4 sm:$0xff]  }
  0x85   :  { %v4667_v44 = vld [vmem:[#allocation5 + $0x3a4] ss:$20 sps:$4 sm:$0xff]  }
  0x86   :  { %1734 = vmatpush1.bf16.msra.mxu0 %v4583_v46  ;;  %v4665_v46 = vld [vmem:[#allocation5 + $0x3a0] ss:$20 sps:$4 sm:$0xff]  }
  0x87   :  { %1896 = vmatpush1.bf16.msra.mxu1 %v4580_v45  ;;  %1735 = vmatprep.subr.bf16.mxu0 %v4584_v47  ;;  %v4662_v45 = vld [vmem:[#allocation5 + $0x3c0] ss:$20 sps:$4 sm:$0xff]  }
  0x88   :  { %1897 = vmatprep.subr.bf16.mxu1 %v4588_v48  ;;  %v4670_v47 = vld [vmem:[#allocation5 + $0x3ec] ss:$20 sps:$4 sm:$0xff]  }
  0x89   :  { %v4673_v48 = vld [vmem:[#allocation5 + $0x3cc] ss:$20 sps:$4 sm:$0xff]  }
  0x8a   :  { %1736 = vmatpush1.bf16.msra.mxu0 %v4589_v50  ;;  %v4671_v50 = vld [vmem:[#allocation5 + $0x3c8] ss:$20 sps:$4 sm:$0xff]  }
  0x8b   :  { %1898 = vmatpush1.bf16.msra.mxu1 %v4586_v52  ;;  %1737 = vmatprep.subr.bf16.mxu0 %v4590_v53  ;;  %v4676_v52 = vld [vmem:[#allocation5 + $0x414] ss:$20 sps:$4 sm:$0xff]  }
  0x8c   :  { %1899 = vmatprep.subr.bf16.mxu1 %v4594_v54  ;;  %v4679_v53 = vld [vmem:[#allocation5 + $0x3f4] ss:$20 sps:$4 sm:$0xff]   ;;  %v4674_v54 = vld [vmem:[#allocation5 + $0x410] ss:$20 sps:$4 sm:$0xff]  }
  0x8e   :  { %1738 = vmatpush1.bf16.msra.mxu0 %v4595_v56  ;;  %v4682_v56 = vld [vmem:[#allocation5 + $0x43c] ss:$20 sps:$4 sm:$0xff]  }
  0x8f   :  { %1900 = vmatpush1.bf16.msra.mxu1 %v4592_v55  ;;  %1739 = vmatprep.subr.bf16.mxu0 %v4596_v57  ;;  %v4677_v55 = vld [vmem:[#allocation5 + $0x3f0] ss:$20 sps:$4 sm:$0xff]  }
  0x90   :  { %1901 = vmatprep.subr.bf16.mxu1 %v4600_v58  ;;  %v4685_v57 = vld [vmem:[#allocation5 + $0x41c] ss:$20 sps:$4 sm:$0xff]   ;;  %v4680_v58 = vld [vmem:[#allocation5 + $0x438] ss:$20 sps:$4 sm:$0xff]  }
  0x92   :  { %1740 = vmatpush1.bf16.msra.mxu0 %v4601_v60  ;;  %v4688_v60 = vld [vmem:[#allocation5 + $0x464] ss:$20 sps:$4 sm:$0xff]  }
  0x93   :  { %1902 = vmatpush1.bf16.msra.mxu1 %v4598_v59  ;;  %1741 = vmatprep.subr.bf16.mxu0 %v4602_v61  ;;  %v4683_v59 = vld [vmem:[#allocation5 + $0x418] ss:$20 sps:$4 sm:$0xff]  }
  0x94   :  { %1903 = vmatprep.subr.bf16.mxu1 %v4606_v62  ;;  %v4691_v61 = vld [vmem:[#allocation5 + $0x444] ss:$20 sps:$4 sm:$0xff]   ;;  %v4686_v62 = vld [vmem:[#allocation5 + $0x460] ss:$20 sps:$4 sm:$0xff]  }
  0x96   :  { %1742 = vmatpush1.bf16.msra.mxu0 %v4607_v1  ;;  %v4694_v1 = vld [vmem:[#allocation5 + $0x48c] ss:$20 sps:$4 sm:$0xff]  }
  0x97   :  { %1904 = vmatpush1.bf16.msra.mxu1 %v4604_v63  ;;  %1743 = vmatprep.subr.bf16.mxu0 %v4608_v2  ;;  %v4689_v63 = vld [vmem:[#allocation5 + $0x440] ss:$20 sps:$4 sm:$0xff]  }
  0x98   :  { %1905 = vmatprep.subr.bf16.mxu1 %v4612_v3  ;;  %v4697_v2 = vld [vmem:[#allocation5 + $0x46c] ss:$20 sps:$4 sm:$0xff]   ;;  %v4692_v3 = vld [vmem:[#allocation5 + $0x488] ss:$20 sps:$4 sm:$0xff]  }
  0x9a   :  { %1744 = vmatpush1.bf16.msra.mxu0 %v4613_v5  ;;  %v4700_v5 = vld [vmem:[#allocation5 + $0x4b4] ss:$20 sps:$4 sm:$0xff]  }
  0x9b   :  { %1906 = vmatpush1.bf16.msra.mxu1 %v4610_v4  ;;  %1754 = vmatprep.subr.bf16.mxu0 %v4616_v7  ;;  %v4695_v4 = vld [vmem:[#allocation5 + $0x468] ss:$20 sps:$4 sm:$0xff]   ;;  %v4698_v7 = vld [vmem:[#allocation5 + $0x4b0] ss:$20 sps:$4 sm:$0xff]  }
  0x9c   :  { %1907 = vmatprep.subr.bf16.mxu1 %v4619_v8  ;;  %v4701_v8 = vld [vmem:[#allocation5 + $0x490] ss:$20 sps:$4 sm:$0xff]  }
  0x9d   :  { %1746 = vmatmul.mubr.bf16.vlgmr.msra.gmra.mrb[0].mxu0 %v5392_v9 }
  0x9e   :  { %1755 = vmatpush1.bf16.msra.mxu0 %v4614_v11  ;;  %1786 = vmatprep.mubr.bf16.mxu0 %v5396_v36  ;;  %v4706_v11 = vld [vmem:[#allocation5 + $0x4dc] ss:$20 sps:$4 sm:$0xff]  }
  0x9f   :  { %1908 = vmatpush1.bf16.msra.mxu1 %v4617_v12  ;;  %1756 = vmatprep.subr.bf16.mxu0 %v4622_v13  ;;  %v4709_v12 = vld [vmem:[#allocation5 + $0x4bc] ss:$20 sps:$4 sm:$0xff]   ;;  %v4704_v13 = vld [vmem:[#allocation5 + $0x4d8] ss:$20 sps:$4 sm:$0xff]  }
  0xa0   :  { %1918 = vmatprep.subr.bf16.mxu1 %v4625_v14  ;;  %v102_v14 = vld [vmem:[#allocation2 + $0x10] sm:$0xff] }
  0xa2   :  { %1757 = vmatpush1.bf16.msra.mxu0 %v4620_v15  ;;  %1910 = vmatmul.mubr.bf16.vlgmr.msra.gmra.mrb[4].mxu1 %v5392_v9  ;;  %v4707_v15 = vld [vmem:[#allocation5 + $0x4b8] ss:$20 sps:$4 sm:$0xff]  }
  0xa3   :  { %1919 = vmatpush1.bf16.msra.mxu1 %v4623_v16  ;;  %1758 = vmatprep.subr.bf16.mxu0 %v4628_v17  ;;  %v4712_v16 = vld [vmem:[#allocation5 + $0x504] ss:$20 sps:$4 sm:$0xff]  }
  0xa4   :  { %1920 = vmatprep.subr.bf16.mxu1 %v4631_v18  ;;  %1950 = vmatprep.mubr.bf16.mxu1 %v5396_v36  ;;  %v4715_v17 = vld [vmem:[#allocation5 + $0x4e4] ss:$20 sps:$4 sm:$0xff]   ;;  %v5400_v18 = vpack.c.bf16 %v102_v14, %v102_v14  ;;  %v4788_v14 = vld [vmem:[#allocation5 + $0x708] ss:$20 sps:$4 sm:$0xff]  }
  0xa6   :  { %1759 = vmatpush1.bf16.msra.mxu0 %v4626_v19  ;;  %v4710_v19 = vld [vmem:[#allocation5 + $0x500] ss:$20 sps:$4 sm:$0xff]  }
  0xa7   :  { %1921 = vmatpush1.bf16.msra.mxu1 %v4629_v20  ;;  %1760 = vmatprep.subr.bf16.mxu0 %v4634_v21  ;;  %v4713_v20 = vld [vmem:[#allocation5 + $0x4e0] ss:$20 sps:$4 sm:$0xff]  }
  0xa8   :  { %1922 = vmatprep.subr.bf16.mxu1 %v4637_v22  ;;  %v4718_v21 = vld [vmem:[#allocation5 + $0x52c] ss:$20 sps:$4 sm:$0xff]   ;;  %v105_v22 = vld [vmem:[#allocation2 + $0x28] sm:$0xff] }
  0xaa   :  { %1761 = vmatpush1.bf16.msra.mxu0 %v4632_v23  ;;  %v4721_v23 = vld [vmem:[#allocation5 + $0x50c] ss:$20 sps:$4 sm:$0xff]  }
  0xab   :  { %1923 = vmatpush1.bf16.msra.mxu1 %v4635_v24  ;;  %1762 = vmatprep.subr.bf16.mxu0 %v4640_v25  ;;  %v5402_v24 = vpack.c.bf16 %v105_v22, %v105_v22  ;;  %v4716_v25 = vld [vmem:[#allocation5 + $0x528] ss:$20 sps:$4 sm:$0xff]  }
  0xac   :  { %1924 = vmatprep.subr.bf16.mxu1 %v4643_v26  ;;  %v4719_v26 = vld [vmem:[#allocation5 + $0x508] ss:$20 sps:$4 sm:$0xff]  }
  0xad   :  { %v4805_v22 = vld [vmem:[#allocation5 + $0x73c] ss:$20 sps:$4 sm:$0xff]  }
  0xae   :  { %1763 = vmatpush1.bf16.msra.mxu0 %v4638_v27  ;;  %v4724_v27 = vld [vmem:[#allocation5 + $0x554] ss:$20 sps:$4 sm:$0xff]  }
  0xaf   :  { %1925 = vmatpush1.bf16.msra.mxu1 %v4641_v28  ;;  %1764 = vmatprep.subr.bf16.mxu0 %v4646_v29  ;;  %v4727_v28 = vld [vmem:[#allocation5 + $0x534] ss:$20 sps:$4 sm:$0xff]   ;;  %v4722_v29 = vld [vmem:[#allocation5 + $0x550] ss:$20 sps:$4 sm:$0xff]  }
  0xb0   :  { %1926 = vmatprep.subr.bf16.mxu1 %v4649_v30  ;;  %v4725_v30 = vld [vmem:[#allocation5 + $0x530] ss:$20 sps:$4 sm:$0xff]  }
  0xb2   :  { %1765 = vmatpush1.bf16.msra.mxu0 %v4644_v31  ;;  %v4730_v31 = vld [vmem:[#allocation5 + $0x57c] ss:$20 sps:$4 sm:$0xff]  }
  0xb3   :  { %1927 = vmatpush1.bf16.msra.mxu1 %v4647_v32  ;;  %1766 = vmatprep.subr.bf16.mxu0 %v4652_v33  ;;  %v4733_v32 = vld [vmem:[#allocation5 + $0x55c] ss:$20 sps:$4 sm:$0xff]   ;;  %v4728_v33 = vld [vmem:[#allocation5 + $0x578] ss:$20 sps:$4 sm:$0xff]  }
  0xb4   :  { %1928 = vmatprep.subr.bf16.mxu1 %v4655_v34  ;;  %v4731_v34 = vld [vmem:[#allocation5 + $0x558] ss:$20 sps:$4 sm:$0xff]  }
  0xb6   :  { %1767 = vmatpush1.bf16.msra.mxu0 %v4650_v37  ;;  %v4739_v37 = vld [vmem:[#allocation5 + $0x584] ss:$20 sps:$4 sm:$0xff]  }
  0xb7   :  { %1929 = vmatpush1.bf16.msra.mxu1 %v4653_v38  ;;  %1768 = vmatprep.subr.bf16.mxu0 %v4658_v39  ;;  %v4734_v38 = vld [vmem:[#allocation5 + $0x5a0] ss:$20 sps:$4 sm:$0xff]  }
  0xb8   :  { %1930 = vmatprep.subr.bf16.mxu1 %v4661_v40  ;;  %v4737_v39 = vld [vmem:[#allocation5 + $0x580] ss:$20 sps:$4 sm:$0xff]  }
  0xb9   :  { %v4742_v40 = vld [vmem:[#allocation5 + $0x5cc] ss:$20 sps:$4 sm:$0xff]  }
  0xba   :  { %1769 = vmatpush1.bf16.msra.mxu0 %v4656_v41  ;;  %v4745_v41 = vld [vmem:[#allocation5 + $0x5ac] ss:$20 sps:$4 sm:$0xff]  }
  0xbb   :  { %1931 = vmatpush1.bf16.msra.mxu1 %v4659_v42  ;;  %1770 = vmatprep.subr.bf16.mxu0 %v4664_v43  ;;  %v4740_v42 = vld [vmem:[#allocation5 + $0x5c8] ss:$20 sps:$4 sm:$0xff]  }
  0xbc   :  { %1932 = vmatprep.subr.bf16.mxu1 %v4667_v44  ;;  %v4743_v43 = vld [vmem:[#allocation5 + $0x5a8] ss:$20 sps:$4 sm:$0xff]  }
  0xbd   :  { %v4748_v44 = vld [vmem:[#allocation5 + $0x5f4] ss:$20 sps:$4 sm:$0xff]  }
  0xbe   :  { %1771 = vmatpush1.bf16.msra.mxu0 %v4662_v45  ;;  %v4751_v45 = vld [vmem:[#allocation5 + $0x5d4] ss:$20 sps:$4 sm:$0xff]  }
  0xbf   :  { %1933 = vmatpush1.bf16.msra.mxu1 %v4665_v46  ;;  %1772 = vmatprep.subr.bf16.mxu0 %v4670_v47  ;;  %v4746_v46 = vld [vmem:[#allocation5 + $0x5f0] ss:$20 sps:$4 sm:$0xff]  }
  0xc0   :  { %1934 = vmatprep.subr.bf16.mxu1 %v4673_v48  ;;  %v4749_v47 = vld [vmem:[#allocation5 + $0x5d0] ss:$20 sps:$4 sm:$0xff]  }
  0xc1   :  { %v4754_v48 = vld [vmem:[#allocation5 + $0x61c] ss:$20 sps:$4 sm:$0xff]  }
  0xc2   :  { %1773 = vmatpush1.bf16.msra.mxu0 %v4668_v49  ;;  %v4757_v49 = vld [vmem:[#allocation5 + $0x5fc] ss:$20 sps:$4 sm:$0xff]  }
  0xc3   :  { %1935 = vmatpush1.bf16.msra.mxu1 %v4671_v50  ;;  %1774 = vmatprep.subr.bf16.mxu0 %v4676_v52  ;;  %v4752_v50 = vld [vmem:[#allocation5 + $0x618] ss:$20 sps:$4 sm:$0xff]  }
  0xc4   :  { %1936 = vmatprep.subr.bf16.mxu1 %v4679_v53  ;;  %v4755_v52 = vld [vmem:[#allocation5 + $0x5f8] ss:$20 sps:$4 sm:$0xff]  }
  0xc5   :  { %v4760_v53 = vld [vmem:[#allocation5 + $0x644] ss:$20 sps:$4 sm:$0xff]  }
  0xc6   :  { %1775 = vmatpush1.bf16.msra.mxu0 %v4674_v54  ;;  %v4763_v54 = vld [vmem:[#allocation5 + $0x624] ss:$20 sps:$4 sm:$0xff]  }
  0xc7   :  { %1937 = vmatpush1.bf16.msra.mxu1 %v4677_v55  ;;  %1776 = vmatprep.subr.bf16.mxu0 %v4682_v56  ;;  %v4758_v55 = vld [vmem:[#allocation5 + $0x640] ss:$20 sps:$4 sm:$0xff]  }
  0xc8   :  { %1938 = vmatprep.subr.bf16.mxu1 %v4685_v57  ;;  %v4761_v56 = vld [vmem:[#allocation5 + $0x620] ss:$20 sps:$4 sm:$0xff]  }
  0xc9   :  { %v4766_v57 = vld [vmem:[#allocation5 + $0x66c] ss:$20 sps:$4 sm:$0xff]  }
  0xca   :  { %1777 = vmatpush1.bf16.msra.mxu0 %v4680_v58  ;;  %v4769_v58 = vld [vmem:[#allocation5 + $0x64c] ss:$20 sps:$4 sm:$0xff]  }
  0xcb   :  { %1939 = vmatpush1.bf16.msra.mxu1 %v4683_v59  ;;  %1778 = vmatprep.subr.bf16.mxu0 %v4688_v60  ;;  %v4764_v59 = vld [vmem:[#allocation5 + $0x668] ss:$20 sps:$4 sm:$0xff]  }
  0xcc   :  { %1940 = vmatprep.subr.bf16.mxu1 %v4691_v61  ;;  %v4767_v60 = vld [vmem:[#allocation5 + $0x648] ss:$20 sps:$4 sm:$0xff]  }
  0xcd   :  { %v4772_v61 = vld [vmem:[#allocation5 + $0x694] ss:$20 sps:$4 sm:$0xff]  }
  0xce   :  { %1779 = vmatpush1.bf16.msra.mxu0 %v4686_v62  ;;  %v4775_v62 = vld [vmem:[#allocation5 + $0x674] ss:$20 sps:$4 sm:$0xff]  }
  0xcf   :  { %1941 = vmatpush1.bf16.msra.mxu1 %v4689_v63  ;;  %1780 = vmatprep.subr.bf16.mxu0 %v4694_v1  ;;  %v4770_v63 = vld [vmem:[#allocation5 + $0x690] ss:$20 sps:$4 sm:$0xff]  }
  0xd0   :  { %1942 = vmatprep.subr.bf16.mxu1 %v4697_v2  ;;  %v4773_v1 = vld [vmem:[#allocation5 + $0x670] ss:$20 sps:$4 sm:$0xff]  }
  0xd1   :  { %v4778_v2 = vld [vmem:[#allocation5 + $0x6bc] ss:$20 sps:$4 sm:$0xff]  }
  0xd2   :  { %1781 = vmatpush1.bf16.msra.mxu0 %v4692_v3  ;;  %v4781_v3 = vld [vmem:[#allocation5 + $0x69c] ss:$20 sps:$4 sm:$0xff]  }
  0xd3   :  { %1943 = vmatpush1.bf16.msra.mxu1 %v4695_v4  ;;  %1782 = vmatprep.subr.bf16.mxu0 %v4700_v5  ;;  %v4776_v4 = vld [vmem:[#allocation5 + $0x6b8] ss:$20 sps:$4 sm:$0xff]  }
  0xd4   :  { %1944 = vmatprep.subr.bf16.mxu1 %v4703_v6  ;;  %v4779_v5 = vld [vmem:[#allocation5 + $0x698] ss:$20 sps:$4 sm:$0xff]  }
  0xd5   :  { %v4784_v6 = vld [vmem:[#allocation5 + $0x6e4] ss:$20 sps:$4 sm:$0xff]  }
  0xd6   :  { %1783 = vmatpush1.bf16.msra.mxu0 %v4698_v7  ;;  %v4787_v7 = vld [vmem:[#allocation5 + $0x6c4] ss:$20 sps:$4 sm:$0xff]  }
  0xd7   :  { %1945 = vmatpush1.bf16.msra.mxu1 %v4701_v8  ;;  %1784 = vmatprep.subr.bf16.mxu0 %v4706_v11  ;;  %v4782_v8 = vld [vmem:[#allocation5 + $0x6e0] ss:$20 sps:$4 sm:$0xff]  }
  0xd8   :  { %1946 = vmatprep.subr.bf16.mxu1 %v4709_v12  ;;  %v4785_v11 = vld [vmem:[#allocation5 + $0x6c0] ss:$20 sps:$4 sm:$0xff]  }
  0xd9   :  { %v4790_v12 = vld [vmem:[#allocation5 + $0x70c] ss:$20 sps:$4 sm:$0xff]  }
  0xda   :  { %1785 = vmatpush1.bf16.msra.mxu0 %v4704_v13  ;;  %v4793_v13 = vld [vmem:[#allocation5 + $0x6ec] ss:$20 sps:$4 sm:$0xff]  }
  0xdb   :  { %1947 = vmatpush1.bf16.msra.mxu1 %v4707_v15  ;;  %1795 = vmatprep.subr.bf16.mxu0 %v4712_v16  ;;  %v4791_v15 = vld [vmem:[#allocation5 + $0x6e8] ss:$20 sps:$4 sm:$0xff]  }
  0xdc   :  { %1948 = vmatprep.subr.bf16.mxu1 %v4715_v17  ;;  %v4796_v16 = vld [vmem:[#allocation5 + $0x734] ss:$20 sps:$4 sm:$0xff]  }
  0xdd   :  { %1787 = vmatmul.mubr.bf16.vlgmr.msra.gmra.mrb[0].mxu0 %v5400_v18  ;;  %v4799_v17 = vld [vmem:[#allocation5 + $0x714] ss:$20 sps:$4 sm:$0xff]  }
  0xde   :  { %1796 = vmatpush1.bf16.msra.mxu0 %v4710_v19  ;;  %1827 = vmatprep.mubr.bf16.mxu0 %v5402_v24  ;;  %v4794_v19 = vld [vmem:[#allocation5 + $0x730] ss:$20 sps:$4 sm:$0xff]  }
  0xdf   :  { %1949 = vmatpush1.bf16.msra.mxu1 %v4713_v20  ;;  %1797 = vmatprep.subr.bf16.mxu0 %v4718_v21  ;;  %v4797_v20 = vld [vmem:[#allocation5 + $0x710] ss:$20 sps:$4 sm:$0xff]  }
  0xe0   :  { %1959 = vmatprep.subr.bf16.mxu1 %v4721_v23  ;;  %v4802_v21 = vld [vmem:[#allocation5 + $0x75c] ss:$20 sps:$4 sm:$0xff]   ;;  %v4800_v23 = vld [vmem:[#allocation5 + $0x758] ss:$20 sps:$4 sm:$0xff]  }
  0xe2   :  { %1798 = vmatpush1.bf16.msra.mxu0 %v4716_v25  ;;  %1951 = vmatmul.mubr.bf16.vlgmr.msra.gmra.mrb[4].mxu1 %v5400_v18  ;;  %v104_v25 = vld [vmem:[#allocation2 + $0x20] sm:$0xff] }
  0xe3   :  { %1960 = vmatpush1.bf16.msra.mxu1 %v4719_v26  ;;  %1799 = vmatprep.subr.bf16.mxu0 %v4724_v27  ;;  %v4803_v26 = vld [vmem:[#allocation5 + $0x738] ss:$20 sps:$4 sm:$0xff]   ;;  %v4809_v27 = vld [vmem:[#allocation5 + $0x150] ss:$20 sps:$4 sm:$0xff]  }
  0xe4   :  { %1961 = vmatprep.subr.bf16.mxu1 %v4727_v28  ;;  %1991 = vmatprep.mubr.bf16.mxu1 %v5402_v24  ;;  %v4808_v28 = vld [vmem:[#allocation5 + $0x764] ss:$20 sps:$4 sm:$0xff]  }
  0xe6   :  { %1800 = vmatpush1.bf16.msra.mxu0 %v4722_v29  ;;  %v5408_v29 = vpack.c.bf16 %v104_v25, %v104_v25  ;;  %v4861_v25 = vld [vmem:[#allocation7] ss:$12 sps:$4 sm:$0xff]  }
  0xe7   :  { %1962 = vmatpush1.bf16.msra.mxu1 %v4725_v30  ;;  %1801 = vmatprep.subr.bf16.mxu0 %v4730_v31  ;;  %v4810_v30 = vld [vmem:[#allocation5 + $0x10] ss:$20 sps:$4 sm:$0xff]   ;;  %v4806_v31 = vld [vmem:[#allocation5 + $0x760] ss:$20 sps:$4 sm:$0xff]  }
  0xe8   :  { %1963 = vmatprep.subr.bf16.mxu1 %v4733_v32  ;;  %v4811_v32 = vld [vmem:[#allocation5 + $0x178] ss:$20 sps:$4 sm:$0xff]  }
  0xea   :  { %1802 = vmatpush1.bf16.msra.mxu0 %v4728_v33  ;;  %v4817_v33 = vld [vmem:[#allocation5 + $0x78c] ss:$20 sps:$4 sm:$0xff]  }
  0xeb   :  { %1964 = vmatpush1.bf16.msra.mxu1 %v4731_v34  ;;  %1803 = vmatprep.subr.bf16.mxu0 %v4736_v35  ;;  %v4812_v34 = vld [vmem:[#allocation5 + $0x38] ss:$20 sps:$4 sm:$0xff]   ;;  %v4813_v35 = vld [vmem:[#allocation5 + $0x1a0] ss:$20 sps:$4 sm:$0xff]  }
  0xec   :  { %1965 = vmatprep.subr.bf16.mxu1 %v4739_v37  ;;  %v4815_v37 = vld [vmem:[#allocation5 + $0x788] ss:$20 sps:$4 sm:$0xff]  }
  0xee   :  { %1804 = vmatpush1.bf16.msra.mxu0 %v4734_v38  ;;  %v4828_v38 = vld [vmem:[#allocation5 + $0x3d0] ss:$20 sps:$4 sm:$0xff]  }
  0xef   :  { %1966 = vmatpush1.bf16.msra.mxu1 %v4737_v39  ;;  %1805 = vmatprep.subr.bf16.mxu0 %v4742_v40  ;;  %v4814_v39 = vld [vmem:[#allocation5 + $0x60] ss:$20 sps:$4 sm:$0xff]   ;;  %v4818_v40 = vld [vmem:[#allocation5 + $0x1c8] ss:$20 sps:$4 sm:$0xff]  }
  0xf0   :  { %1967 = vmatprep.subr.bf16.mxu1 %v4745_v41  ;;  %v4819_v41 = vld [vmem:[#allocation5 + $0x88] ss:$20 sps:$4 sm:$0xff]  }
  0xf2   :  { %1806 = vmatpush1.bf16.msra.mxu0 %v4740_v42  ;;  %v4820_v42 = vld [vmem:[#allocation5 + $0x1f0] ss:$20 sps:$4 sm:$0xff]  }
  0xf3   :  { %1968 = vmatpush1.bf16.msra.mxu1 %v4743_v43  ;;  %1807 = vmatprep.subr.bf16.mxu0 %v4748_v44  ;;  %v4822_v43 = vld [vmem:[#allocation5 + $0x218] ss:$20 sps:$4 sm:$0xff]   ;;  %v4829_v44 = vld [vmem:[#allocation5 + $0x290] ss:$20 sps:$4 sm:$0xff]  }
  0xf4   :  { %1969 = vmatprep.subr.bf16.mxu1 %v4751_v45  ;;  %v4823_v45 = vld [vmem:[#allocation5 + $0xd8] ss:$20 sps:$4 sm:$0xff]  }
  0xf6   :  { %1808 = vmatpush1.bf16.msra.mxu0 %v4746_v46  ;;  %v4831_v46 = vld [vmem:[#allocation5 + $0x3f8] ss:$20 sps:$4 sm:$0xff]  }
  0xf7   :  { %1970 = vmatpush1.bf16.msra.mxu1 %v4749_v47  ;;  %1809 = vmatprep.subr.bf16.mxu0 %v4754_v48  ;;  %v4824_v47 = vld [vmem:[#allocation5 + $0x240] ss:$20 sps:$4 sm:$0xff]   ;;  %v4833_v48 = vld [vmem:[#allocation5 + $0x2b8] ss:$20 sps:$4 sm:$0xff]  }
  0xf8   :  { %1971 = vmatprep.subr.bf16.mxu1 %v4757_v49  ;;  %v4835_v49 = vld [vmem:[#allocation5 + $0x420] ss:$20 sps:$4 sm:$0xff]  }
  0xfa   :  { %1810 = vmatpush1.bf16.msra.mxu0 %v4752_v50  ;;  %v4825_v50 = vld [vmem:[#allocation5 + $0x100] ss:$20 sps:$4 sm:$0xff]  }
  0xfb   :  { %1972 = vmatpush1.bf16.msra.mxu1 %v4755_v52  ;;  %1811 = vmatprep.subr.bf16.mxu0 %v4760_v53  ;;  %v4826_v52 = vld [vmem:[#allocation5 + $0x268] ss:$20 sps:$4 sm:$0xff]   ;;  %v4837_v53 = vld [vmem:[#allocation5 + $0x2e0] ss:$20 sps:$4 sm:$0xff]  }
  0xfc   :  { %1973 = vmatprep.subr.bf16.mxu1 %v4763_v54  ;;  %v4839_v54 = vld [vmem:[#allocation5 + $0x448] ss:$20 sps:$4 sm:$0xff]  }
  0xfe   :  { %1812 = vmatpush1.bf16.msra.mxu0 %v4758_v55  ;;  %v4827_v55 = vld [vmem:[#allocation5 + $0x128] ss:$20 sps:$4 sm:$0xff]  }
  0xff   :  { %1974 = vmatpush1.bf16.msra.mxu1 %v4761_v56  ;;  %1813 = vmatprep.subr.bf16.mxu0 %v4766_v57  ;;  %v4830_v56 = vld [vmem:[#allocation5 + $0x650] ss:$20 sps:$4 sm:$0xff]   ;;  %v4841_v57 = vld [vmem:[#allocation5 + $0x308] ss:$20 sps:$4 sm:$0xff]  }
 0x100   :  { %1975 = vmatprep.subr.bf16.mxu1 %v4769_v58 }
 0x102   :  { %1814 = vmatpush1.bf16.msra.mxu0 %v4764_v59  ;;  %v4843_v59 = vld [vmem:[#allocation5 + $0x470] ss:$20 sps:$4 sm:$0xff]  }
 0x103   :  { %1976 = vmatpush1.bf16.msra.mxu1 %v4767_v60  ;;  %1815 = vmatprep.subr.bf16.mxu0 %v4772_v61 }
 0x104   :  { %1977 = vmatprep.subr.bf16.mxu1 %v4775_v62 }
 0x106   :  { %1816 = vmatpush1.bf16.msra.mxu0 %v4770_v63  ;;  %v4834_v63 = vld [vmem:[#allocation5 + $0x678] ss:$20 sps:$4 sm:$0xff]  }
 0x107   :  { %1978 = vmatpush1.bf16.msra.mxu1 %v4773_v1  ;;  %1817 = vmatprep.subr.bf16.mxu0 %v4778_v2  ;;  %v4845_v1 = vld [vmem:[#allocation5 + $0x330] ss:$20 sps:$4 sm:$0xff]   ;;  %v4847_v2 = vld [vmem:[#allocation5 + $0x498] ss:$20 sps:$4 sm:$0xff]  }
 0x108   :  { %1979 = vmatprep.subr.bf16.mxu1 %v4781_v3  ;;  %v4836_v3 = vld [vmem:[#allocation5 + $0x538] ss:$20 sps:$4 sm:$0xff]  }
 0x10a   :  { %1818 = vmatpush1.bf16.msra.mxu0 %v4776_v4  ;;  %v4838_v4 = vld [vmem:[#allocation5 + $0x6a0] ss:$20 sps:$4 sm:$0xff]  }
 0x10b   :  { %1980 = vmatpush1.bf16.msra.mxu1 %v4779_v5  ;;  %1819 = vmatprep.subr.bf16.mxu0 %v4784_v6  ;;  %v4849_v5 = vld [vmem:[#allocation5 + $0x358] ss:$20 sps:$4 sm:$0xff]   ;;  %v4851_v6 = vld [vmem:[#allocation5 + $0x4c0] ss:$20 sps:$4 sm:$0xff]  }
 0x10c   :  { %1981 = vmatprep.subr.bf16.mxu1 %v4787_v7  ;;  %v4840_v7 = vld [vmem:[#allocation5 + $0x560] ss:$20 sps:$4 sm:$0xff]  }
 0x10e   :  { %1820 = vmatpush1.bf16.msra.mxu0 %v4782_v8  ;;  %v4842_v8 = vld [vmem:[#allocation5 + $0x6c8] ss:$20 sps:$4 sm:$0xff]  }
 0x10f   :  { %1982 = vmatpush1.bf16.msra.mxu1 %v4785_v11  ;;  %1821 = vmatprep.subr.bf16.mxu0 %v4790_v12  ;;  %v4853_v11 = vld [vmem:[#allocation5 + $0x380] ss:$20 sps:$4 sm:$0xff]   ;;  %v4855_v12 = vld [vmem:[#allocation5 + $0x4e8] ss:$20 sps:$4 sm:$0xff]  }
 0x110   :  { %1983 = vmatprep.subr.bf16.mxu1 %v4793_v13  ;;  %v4844_v13 = vld [vmem:[#allocation5 + $0x588] ss:$20 sps:$4 sm:$0xff]  }
 0x112   :  { %1822 = vmatpush1.bf16.msra.mxu0 %v4788_v14  ;;  %v4846_v14 = vld [vmem:[#allocation5 + $0x6f0] ss:$20 sps:$4 sm:$0xff]  }
 0x113   :  { %1984 = vmatpush1.bf16.msra.mxu1 %v4791_v15  ;;  %1823 = vmatprep.subr.bf16.mxu0 %v4796_v16  ;;  %v4848_v15 = vld [vmem:[#allocation5 + $0x5b0] ss:$20 sps:$4 sm:$0xff]  }
 0x114   :  { %1985 = vmatprep.subr.bf16.mxu1 %v4799_v17  ;;  %v4860_v16 = vld [vmem:[#allocation5 + $0x790] ss:$20 sps:$4 sm:$0xff]   ;;  %v4863_v17 = vld [vmem:[#allocation7 + $0x4] ss:$12 sps:$4 sm:$0xff]  }
 0x116   :  { %1824 = vmatpush1.bf16.msra.mxu0 %v4794_v19  ;;  %v4852_v19 = vld [vmem:[#allocation5 + $0x5d8] ss:$20 sps:$4 sm:$0xff]  }
 0x117   :  { %1986 = vmatpush1.bf16.msra.mxu1 %v4797_v20  ;;  %1825 = vmatprep.subr.bf16.mxu0 %v4802_v21  ;;  %v5263_v20 = vmov 0.0   ;;  %v4854_v21 = vld [vmem:[#allocation5 + $0x740] ss:$20 sps:$4 sm:$0xff]  }
 0x118   :  { %1987 = vmatprep.subr.bf16.mxu1 %v4805_v22  ;;  %v4856_v22 = vld [vmem:[#allocation5 + $0x600] ss:$20 sps:$4 sm:$0xff]  }
 0x11a   :  { %1826 = vmatpush1.bf16.msra.mxu0 %v4800_v23  ;;  %v4858_v23 = vld [vmem:[#allocation5 + $0x768] ss:$20 sps:$4 sm:$0xff]  }
 0x11b   :  { %1988 = vmatpush1.bf16.msra.mxu1 %v4803_v26  ;;  %4290 = vmatprep.subr.bf16.mxu0 %v4809_v27  ;;  %v4866_v26 = vld [vmem:[#allocation7 + $0x1c] ss:$12 sps:$4 sm:$0xff]   ;;  %v4859_v27 = vld [vmem:[#allocation5 + $0x628] ss:$20 sps:$4 sm:$0xff]  }
 0x11c   :  { %1989 = vmatprep.subr.bf16.mxu1 %v4808_v28  ;;  %v4864_v28 = vld [vmem:[#allocation7 + $0x18] ss:$12 sps:$4 sm:$0xff]  }
 0x11d   :  { %1828 = vmatmul.mubr.bf16.vlgmr.msra.gmra.mrb[0].mxu0 %v5408_v29 }
 0x11e   :  { %4291 = vmatpush3.bf16.msra.mxu0 %v4810_v30  ;;  %2073 = vmatprep.mubr.bf16.mxu0 %v5388_v51  ;;  %v4821_v51 = vld [vmem:[#allocation5 + $0xb0] ss:$20 sps:$4 sm:$0xff]  }
 0x11f   :  { %1990 = vmatpush1.bf16.msra.mxu1 %v4806_v31  ;;  %4292 = vmatprep.subr.bf16.mxu0 %v4811_v32  ;;  %v4888_v30 = vld [vmem:[#allocation7 + $0xc8] ss:$12 sps:$4 sm:$0xff]   ;;  %v4867_v32 = vld [vmem:[#allocation7 + $0x30] ss:$12 sps:$4 sm:$0xff]  }
 0x120   :  { %2000 = vmatprep.subr.bf16.mxu1 %v4817_v33  ;;  %v4889_v31 = vld [vmem:[#allocation7 + $0x8] ss:$12 sps:$4 sm:$0xff]   ;;  %v4893_v33 = vld [vmem:[#allocation7 + $0xe0] ss:$12 sps:$4 sm:$0xff]  }
 0x122   :  { %1992 = vmatmul.mubr.bf16.vlgmr.msra.gmra.mrb[4].mxu1 %v5408_v29  ;;  %4293 = vmatpush3.bf16.msra.mxu0 %v4812_v34  ;;  %v4872_v34 = vld [vmem:[#allocation7 + $0x4c] ss:$12 sps:$4 sm:$0xff]  }
 0x123   :  { %4294 = vmatprep.subr.bf16.mxu0 %v4813_v35  ;;  %2001 = vmatpush1.bf16.msra.mxu1 %v4815_v37  ;;  %v4894_v35 = vld [vmem:[#allocation7 + $0x20] ss:$12 sps:$4 sm:$0xff]   ;;  %v4870_v37 = vld [vmem:[#allocation7 + $0x48] ss:$12 sps:$4 sm:$0xff]  }
 0x124   :  { %2032 = vmatprep.mubr.bf16.mxu1 %v5262_v0  ;;  %4312 = vmatprep.subr.bf16.mxu1 %v4828_v38  ;;  %v4898_v38 = vld [vmem:[#allocation7 + $0xf8] ss:$12 sps:$4 sm:$0xff]  }
 0x126   :  { %4295 = vmatpush3.bf16.msra.mxu0 %v4814_v39  ;;  %v4875_v39 = vld [vmem:[#allocation7 + $0x64] ss:$12 sps:$4 sm:$0xff]  }
 0x127   :  { %4296 = vmatprep.subr.bf16.mxu0 %v4818_v40  ;;  %v4873_v40 = vld [vmem:[#allocation7 + $0x60] ss:$12 sps:$4 sm:$0xff]  }
 0x12a   :  { %4297 = vmatpush3.bf16.msra.mxu0 %v4819_v41  ;;  %v4903_v41 = vld [vmem:[#allocation7 + $0x110] ss:$12 sps:$4 sm:$0xff]  }
 0x12b   :  { %4298 = vmatprep.subr.bf16.mxu0 %v4820_v42  ;;  %v4878_v42 = vld [vmem:[#allocation7 + $0x7c] ss:$12 sps:$4 sm:$0xff]  }
 0x12e   :  { %4103 = vmatmul.mubr.msk.bf16.vlgmr.msra.gmra.mrb[4].mxu1 %vm1709_vm0, %v5384_v10  ;;  %4299 = vmatpush3.bf16.msra.mxu0 %v4821_v51  ;;  %v4904_v51 = vld [vmem:[#allocation7 + $0x50] ss:$12 sps:$4 sm:$0xff]  }
 0x12f   :  { %4300 = vmatprep.subr.bf16.mxu0 %v4822_v43  ;;  %4313 = vmatpush3.bf16.msra.mxu1 %v4829_v44  ;;  %v4876_v43 = vld [vmem:[#allocation7 + $0x78] ss:$12 sps:$4 sm:$0xff]   ;;  %v4908_v44 = vld [vmem:[#allocation7 + $0x128] ss:$12 sps:$4 sm:$0xff]  }
 0x130   :  { %4314 = vmatprep.subr.bf16.mxu1 %v4831_v46  ;;  %2113 = vmatprep.mubr.bf16.mxu1 %v5396_v36  ;;  %v4832_v36 = vld [vmem:[#allocation5 + $0x510] ss:$20 sps:$4 sm:$0xff]  }
 0x131   :  { %v4879_v46 = vld [vmem:[#allocation7 + $0x90] ss:$12 sps:$4 sm:$0xff]  }
 0x132   :  { %4301 = vmatpush3.bf16.msra.mxu0 %v4823_v45  ;;  %v4881_v45 = vld [vmem:[#allocation7 + $0x94] ss:$12 sps:$4 sm:$0xff]  }
 0x133   :  { %4302 = vmatprep.subr.bf16.mxu0 %v4824_v47  ;;  %4315 = vmatpush3.bf16.msra.mxu1 %v4833_v48  ;;  %v4913_v47 = vld [vmem:[#allocation7 + $0x140] ss:$12 sps:$4 sm:$0xff]  }
 0x134   :  { %4316 = vmatprep.subr.bf16.mxu1 %v4835_v49  ;;  %v4884_v48 = vld [vmem:[#allocation7 + $0xac] ss:$12 sps:$4 sm:$0xff]  }
 0x135   :  { %v5417_v58 = vpop.f32.mrb[0].mxu1  ;;  %v4914_v49 = vld [vmem:[#allocation7 + $0x80] ss:$12 sps:$4 sm:$0xff]  }
 0x136   :  { %4303 = vmatpush3.bf16.msra.mxu0 %v4825_v50  ;;  %v5419_v60 = vpop.f32.mrb[1].mxu1  ;;  %v4882_v50 = vld [vmem:[#allocation7 + $0xa8] ss:$12 sps:$4 sm:$0xff]  }
 0x137   :  { %4304 = vmatprep.subr.bf16.mxu0 %v4826_v52  ;;  %4317 = vmatpush3.bf16.msra.mxu1 %v4837_v53  ;;  %v1874_v61 = vpop.f32.mrb[2].mxu1  ;;  %v4887_v52 = vld [vmem:[#allocation7 + $0xc4] ss:$12 sps:$4 sm:$0xff]  }
 0x138   :  { %4318 = vmatprep.subr.bf16.mxu1 %v4839_v54  ;;  %v1875_v62 = vpop.f32.mrb[3].mxu1  ;;  %v4918_v53 = vld [vmem:[#allocation7 + $0x158] ss:$12 sps:$4 sm:$0xff]  }
 0x139   :  { %v4919_v54 = vld [vmem:[#allocation7 + $0x98] ss:$12 sps:$4 sm:$0xff]   ;;  %v4928_v62 = vld [vmem:[#allocation7 + $0x248] ss:$12 sps:$4 sm:$0xff]  }
 0x13a   :  { %4305 = vmatpush3.bf16.msra.mxu0 %v4827_v55  ;;  %v4885_v55 = vld [vmem:[#allocation7 + $0xc0] ss:$12 sps:$4 sm:$0xff]   ;;  %v4890_v61 = vld [vmem:[#allocation7 + $0xd8] ss:$12 sps:$4 sm:$0xff]  }
 0x13b   :  { %4334 = vmatprep.subr.bf16.mxu0 %v4830_v56  ;;  %4319 = vmatpush3.bf16.msra.mxu1 %v4841_v57  ;;  %v4892_v56 = vld [vmem:[#allocation7 + $0xdc] ss:$12 sps:$4 sm:$0xff]  }
 0x13c   :  { %4320 = vmatprep.subr.bf16.mxu1 %v4843_v59  ;;  %v4923_v57 = vld [vmem:[#allocation7 + $0x170] ss:$12 sps:$4 sm:$0xff]  }
 0x13d   :  { %2074 = vmatmul.mubr.bf16.vlgmr.msra.gmra.mrb[4].mxu0 %v5392_v9  ;;  %v4857_v9 = vld [vmem:[#allocation5 + $0x3a8] ss:$20 sps:$4 sm:$0xff]   ;;  %v4924_v59 = vld [vmem:[#allocation7 + $0xb0] ss:$12 sps:$4 sm:$0xff]  }
 0x13e   :  { %4335 = vmatpush3.bf16.msra.mxu0 %v4832_v36  ;;  %2153 = vmatprep.mubr.bf16.mxu0 %v5402_v24  ;;  %v4850_v24 = vld [vmem:[#allocation5 + $0x718] ss:$20 sps:$4 sm:$0xff]   ;;  %v4897_v36 = vld [vmem:[#allocation7 + $0xf4] ss:$12 sps:$4 sm:$0xff]  }
 0x13f   :  { %4336 = vmatprep.subr.bf16.mxu0 %v4834_v63  ;;  %4321 = vmatpush3.bf16.msra.mxu1 %v4845_v1  ;;  %v4895_v63 = vld [vmem:[#allocation7 + $0xf0] ss:$12 sps:$4 sm:$0xff]   ;;  %v4902_v1 = vld [vmem:[#allocation7 + $0x10c] ss:$12 sps:$4 sm:$0xff]  }
 0x140   :  { %4322 = vmatprep.subr.bf16.mxu1 %v4847_v2  ;;  %v4900_v2 = vld [vmem:[#allocation7 + $0x108] ss:$12 sps:$4 sm:$0xff]  }
 0x142   :  { %4337 = vmatpush3.bf16.msra.mxu0 %v4836_v3  ;;  %v4907_v3 = vld [vmem:[#allocation7 + $0x124] ss:$12 sps:$4 sm:$0xff]  }
 0x143   :  { %4338 = vmatprep.subr.bf16.mxu0 %v4838_v4  ;;  %4323 = vmatpush3.bf16.msra.mxu1 %v4849_v5  ;;  %v4905_v4 = vld [vmem:[#allocation7 + $0x120] ss:$12 sps:$4 sm:$0xff]   ;;  %v4912_v5 = vld [vmem:[#allocation7 + $0x13c] ss:$12 sps:$4 sm:$0xff]  }
 0x144   :  { %4324 = vmatprep.subr.bf16.mxu1 %v4851_v6  ;;  %v4910_v6 = vld [vmem:[#allocation7 + $0x138] ss:$12 sps:$4 sm:$0xff]  }
 0x146   :  { %4339 = vmatpush3.bf16.msra.mxu0 %v4840_v7  ;;  %v4917_v7 = vld [vmem:[#allocation7 + $0x154] ss:$12 sps:$4 sm:$0xff]  }
 0x147   :  { %4340 = vmatprep.subr.bf16.mxu0 %v4842_v8  ;;  %4325 = vmatpush3.bf16.msra.mxu1 %v4853_v11  ;;  %v4915_v8 = vld [vmem:[#allocation7 + $0x150] ss:$12 sps:$4 sm:$0xff]   ;;  %v4922_v11 = vld [vmem:[#allocation7 + $0x16c] ss:$12 sps:$4 sm:$0xff]  }
 0x148   :  { %4326 = vmatprep.subr.bf16.mxu1 %v4855_v12  ;;  %v4920_v12 = vld [vmem:[#allocation7 + $0x168] ss:$12 sps:$4 sm:$0xff]  }
 0x14a   :  { %4341 = vmatpush3.bf16.msra.mxu0 %v4844_v13  ;;  %v4927_v13 = vld [vmem:[#allocation7 + $0x184] ss:$12 sps:$4 sm:$0xff]  }
 0x14b   :  { %4342 = vmatprep.subr.bf16.mxu0 %v4846_v14  ;;  %4327 = vmatpush3.bf16.msra.mxu1 %v4857_v9  ;;  %v410_v14 = vlaneseq }
 0x14c   :  { %4433 = vmatprep.subr.bf16.mxu1 %v5263_v20 }
 0x14d   :  { %v5430_v9 = vshrl.u32 %v410_v14, 7 }
 0x14e   :  { %4343 = vmatpush3.bf16.msra.mxu0 %v4848_v15  ;;  %2114 = vmatmul.mubr.bf16.vlgmr.msra.gmra.mrb[8].mxu1 %v5400_v18  ;;  %v4869_v18 = vld [vmem:[#allocation7 + $0x34] ss:$12 sps:$4 sm:$0xff]  }
 0x14f   :  { %4344 = vmatprep.subr.bf16.mxu0 %v4850_v24  ;;  %4434 = vmatpush3.bf16.msra.mxu1 %v4860_v16  ;;  %v5433_v15 = vsub.s32 0, %v5430_v9  ;;  %v5438_v24 = vld [vmem:[%s5502_s2] sm:$0x1f]  ;;  %v5441_v16 = vsub.s32 1, %v5430_v9 }
 0x150   :  { %4435 = vmatprep.mubr.msk.bf16.mxu1 %vm5264_vm1, %v5263_v20  ;;  %3028 = vmatprep.subr.bf16.mxu1 %v4863_v17 }
 0x151   :  { %v413_v17 = vrot.slane %v5438_v24, %v5433_v15 }
 0x152   :  { %4345 = vmatpush3.bf16.msra.mxu0 %v4852_v19  ;;  %v417_v19 = vrot.slane %v5438_v24, %v5441_v16 }
 0x153   :  { %4346 = vmatprep.subr.bf16.mxu0 %v4854_v21 }
 0x156   :  { %4347 = vmatpush3.bf16.msra.mxu0 %v4856_v22  ;;  %4436 = vmatmul.mubr.msk.bf16.vlgmr.msra.gmra.mrb[12].mxu1 %vm1709_vm0, %v5384_v10  ;;  %v4899_v10 = vld [vmem:[#allocation7 + $0x38] ss:$12 sps:$4 sm:$0xff]  }
 0x157   :  { %4348 = vmatprep.subr.bf16.mxu0 %v4858_v23  ;;  %3029 = vmatpush1.bf16.msra.mxu1 %v4861_v25 }
 0x158   :  { %3030 = vmatprep.subr.bf16.mxu1 %v4866_v26 }
 0x15a   :  { %4349 = vmatpush3.bf16.msra.mxu0 %v4859_v27 }
 0x15b   :  { %3031 = vmatpush1.bf16.msra.mxu1 %v4864_v28  ;;  %4358 = vmatprep.subr.bf16.mxu0 %v4888_v30 }
 0x15c   :  { %3032 = vmatprep.subr.bf16.mxu1 %v4869_v18 }
 0x15d   :  { %2154 = vmatmul.mubr.bf16.vlgmr.msra.gmra.mrb[8].mxu0 %v5408_v29  ;;  %v4909_v29 = vld [vmem:[#allocation7 + $0x68] ss:$12 sps:$4 sm:$0xff]  }
 0x15e   :  { %4359 = vmatpush3.bf16.msra.mxu0 %v4889_v31 }
 0x15f   :  { %3033 = vmatpush1.bf16.msra.mxu1 %v4867_v32  ;;  %4360 = vmatprep.subr.bf16.mxu0 %v4893_v33  ;;  %v4925_v33 = vld [vmem:[#allocation7 + $0x180] ss:$12 sps:$4 sm:$0xff]  }
 0x160   :  { %3034 = vmatprep.subr.bf16.mxu1 %v4872_v34  ;;  %v4929_v34 = vld [vmem:[#allocation7 + $0x188] ss:$12 sps:$4 sm:$0xff]  }
 0x162   :  { %4361 = vmatpush3.bf16.msra.mxu0 %v4894_v35 }
 0x163   :  { %3035 = vmatpush1.bf16.msra.mxu1 %v4870_v37  ;;  %4362 = vmatprep.subr.bf16.mxu0 %v4898_v38  ;;  %v4932_v37 = vld [vmem:[#allocation7 + $0x19c] ss:$12 sps:$4 sm:$0xff]   ;;  %v4933_v38 = vld [vmem:[#allocation7 + $0x260] ss:$12 sps:$4 sm:$0xff]  }
 0x164   :  { %3036 = vmatprep.subr.bf16.mxu1 %v4875_v39  ;;  %v424_v39 = vsub.s32 3, %v5430_v9 }
 0x166   :  { %4363 = vmatpush3.bf16.msra.mxu0 %v4899_v10  ;;  %v4934_v10 = vld [vmem:[#allocation7 + $0x1a0] ss:$12 sps:$4 sm:$0xff]  }
 0x167   :  { %3037 = vmatpush1.bf16.msra.mxu1 %v4873_v40  ;;  %4364 = vmatprep.subr.bf16.mxu0 %v4903_v41  ;;  %v4938_v40 = vld [vmem:[#allocation7 + $0x278] ss:$12 sps:$4 sm:$0xff]   ;;  %v425_v41 = vrot.slane %v5438_v24, %v424_v39 }
 0x168   :  { %3038 = vmatprep.subr.bf16.mxu1 %v4878_v42  ;;  %v4935_v42 = vld [vmem:[#allocation7 + $0x1b0] ss:$12 sps:$4 sm:$0xff]  }
 0x16a   :  { %4365 = vmatpush3.bf16.msra.mxu0 %v4904_v51  ;;  %v4939_v51 = vld [vmem:[#allocation7 + $0x1b8] ss:$12 sps:$4 sm:$0xff]  }
 0x16b   :  { %3039 = vmatpush1.bf16.msra.mxu1 %v4876_v43  ;;  %4366 = vmatprep.subr.bf16.mxu0 %v4908_v44  ;;  %v4942_v44 = vld [vmem:[#allocation7 + $0x1cc] ss:$12 sps:$4 sm:$0xff]  }
 0x16c   :  { %3040 = vmatprep.subr.bf16.mxu1 %v4881_v45  ;;  %v4943_v45 = vld [vmem:[#allocation7 + $0x290] ss:$12 sps:$4 sm:$0xff]  }
 0x16e   :  { %4367 = vmatpush3.bf16.msra.mxu0 %v4909_v29 }
 0x16f   :  { %3041 = vmatpush1.bf16.msra.mxu1 %v4879_v46  ;;  %4368 = vmatprep.subr.bf16.mxu0 %v4913_v47 }
 0x170   :  { %3042 = vmatprep.subr.bf16.mxu1 %v4884_v48 }
 0x172   :  { %4369 = vmatpush3.bf16.msra.mxu0 %v4914_v49  ;;  %v4940_v49 = vld [vmem:[#allocation7 + $0x1c8] ss:$12 sps:$4 sm:$0xff]  }
 0x173   :  { %3043 = vmatpush1.bf16.msra.mxu1 %v4882_v50  ;;  %4370 = vmatprep.subr.bf16.mxu0 %v4918_v53  ;;  %v4944_v50 = vld [vmem:[#allocation7 + $0x1d0] ss:$12 sps:$4 sm:$0xff]  }
 0x174   :  { %3044 = vmatprep.subr.bf16.mxu1 %v4887_v52  ;;  %v4947_v53 = vld [vmem:[#allocation7 + $0x1e4] ss:$12 sps:$4 sm:$0xff]  }
 0x176   :  { %4371 = vmatpush3.bf16.msra.mxu0 %v4919_v54  ;;  %v4948_v54 = vld [vmem:[#allocation7 + $0x2a8] ss:$12 sps:$4 sm:$0xff]  }
 0x177   :  { %3045 = vmatpush1.bf16.msra.mxu1 %v4885_v55  ;;  %4372 = vmatprep.subr.bf16.mxu0 %v4923_v57  ;;  %v4949_v57 = vld [vmem:[#allocation7 + $0x1e8] ss:$12 sps:$4 sm:$0xff]  }
 0x178   :  { %3046 = vmatprep.subr.bf16.mxu1 %v4892_v56  ;;  %v4945_v56 = vld [vmem:[#allocation7 + $0x1e0] ss:$12 sps:$4 sm:$0xff]  }
 0x17a   :  { %4373 = vmatpush3.bf16.msra.mxu0 %v4924_v59  ;;  %v420_v59 = vsub.s32 2, %v5430_v9 }
 0x17b   :  { %3047 = vmatpush1.bf16.msra.mxu1 %v4890_v61  ;;  %4380 = vmatprep.subr.bf16.mxu0 %v4928_v62  ;;  %v4952_v61 = vld [vmem:[#allocation7 + $0x1fc] ss:$12 sps:$4 sm:$0xff]   ;;  %v4950_v62 = vld [vmem:[#allocation7 + $0x1f8] ss:$12 sps:$4 sm:$0xff]  }
 0x17c   :  { %3048 = vmatprep.subr.bf16.mxu1 %v4897_v36  ;;  %v4953_v36 = vld [vmem:[#allocation7 + $0x2c0] ss:$12 sps:$4 sm:$0xff]  }
 0x17f   :  { %3049 = vmatpush1.bf16.msra.mxu1 %v4895_v63  ;;  %v4954_v63 = vld [vmem:[#allocation7 + $0x200] ss:$12 sps:$4 sm:$0xff]  }
 0x180   :  { %3050 = vmatprep.subr.bf16.mxu1 %v4902_v1  ;;  %v421_v1 = vrot.slane %v5438_v24, %v420_v59 }
 0x183   :  { %3051 = vmatpush1.bf16.msra.mxu1 %v4900_v2  ;;  %v4957_v2 = vld [vmem:[#allocation7 + $0x214] ss:$12 sps:$4 sm:$0xff]  }
 0x184   :  { %3052 = vmatprep.subr.bf16.mxu1 %v4907_v3  ;;  %v4958_v3 = vld [vmem:[#allocation7 + $0x2d8] ss:$12 sps:$4 sm:$0xff]  }
 0x187   :  { %3053 = vmatpush1.bf16.msra.mxu1 %v4905_v4  ;;  %v4955_v4 = vld [vmem:[#allocation7 + $0x210] ss:$12 sps:$4 sm:$0xff]  }
 0x188   :  { %3054 = vmatprep.subr.bf16.mxu1 %v4912_v5  ;;  %v4959_v5 = vld [vmem:[#allocation7 + $0x218] ss:$12 sps:$4 sm:$0xff]  }
 0x18b   :  { %3055 = vmatpush1.bf16.msra.mxu1 %v4910_v6 }
 0x18c   :  { %3056 = vmatprep.subr.bf16.mxu1 %v4917_v7 }
 0x18f   :  { %3057 = vmatpush1.bf16.msra.mxu1 %v4915_v8  ;;  %v4962_v8 = vld [vmem:[#allocation7 + $0x22c] ss:$12 sps:$4 sm:$0xff]  }
 0x190   :  { %3058 = vmatprep.subr.bf16.mxu1 %v4922_v11  ;;  %v4963_v11 = vld [vmem:[#allocation7 + $0x2f0] ss:$12 sps:$4 sm:$0xff]  }
 0x193   :  { %3059 = vmatpush1.bf16.msra.mxu1 %v4920_v12 }
 0x194   :  { %3069 = vmatprep.subr.bf16.mxu1 %v4927_v13 }
 0x1f0   :  { %v1829_v21 = vpop.f32.mrb[0].mxu0 }
 0x1f1   :  { %v4459_v22 = vadd.f32 %v1829_v21, %v413_v17  ;;  %v1831_v23 = vpop.f32.mrb[1].mxu0  ;;  %v4964_v21 = vld [vmem:[#allocation7 + $0x230] ss:$12 sps:$4 sm:$0xff]  }
 0x1f2   :  { %v4461_v25 = vadd.f32 %v1831_v23, %v417_v19  ;;  %v1833_v26 = vpop.f32.mrb[2].mxu0  ;;  %v4960_v19 = vld [vmem:[#allocation7 + $0x228] ss:$12 sps:$4 sm:$0xff]   ;;  %v4967_v23 = vld [vmem:[#allocation7 + $0x244] ss:$12 sps:$4 sm:$0xff]  }
 0x1f3   :  { %v4460_v27 = vadd.f32 %v4459_v22, %v5417_v58  ;;  %v1834_v28 = vpop.f32.mrb[3].mxu0  ;;  %v4930_v58 = vld [vmem:[#allocation7 + $0x198] ss:$12 sps:$4 sm:$0xff]   ;;  %v4968_v26 = vld [vmem:[#allocation7 + $0x308] ss:$12 sps:$4 sm:$0xff]  }
 0x1f4   :  { %v4462_v30 = vadd.f32 %v4461_v25, %v5419_v60  ;;  %v4937_v60 = vld [vmem:[#allocation7 + $0x1b4] ss:$12 sps:$4 sm:$0xff]   ;;  %v4971_v28 = vld [vmem:[#allocation7 + $0x25c] ss:$12 sps:$4 sm:$0xff]  }
 0x1f5   :  { %v2201_v18 = vmax.f32 %v4460_v27, 0.0  ;;  %v4965_v25 = vld [vmem:[#allocation7 + $0x240] ss:$12 sps:$4 sm:$0xff]  }
 0x1f6   :  { %v2202_v31 = vmax.f32 %v4462_v30, 0.0  ;;  %v428_v30 = vsub.s32 4, %v5430_v9 }
 0x1f7   :  { %v2206_v35 = vpack.c.bf16 %v2201_v18, %v2201_v18  ;;  %v4969_v18 = vld [vmem:[#allocation7 + $0x258] ss:$12 sps:$4 sm:$0xff]  }
 0x1f8   :  { %v2207_v32 = vpack.c.bf16 %v2202_v31, %v2202_v31  ;;  %v4972_v31 = vld [vmem:[#allocation7 + $0x320] ss:$12 sps:$4 sm:$0xff]  }
 0x1fa   :  { %3060 = vmatprep.mubr.bf16.mxu1 %v2207_v32  ;;  %3183 = vmatprep.mubr.bf16.mxu0 %v2207_v32  ;;  %v4975_v32 = vld [vmem:[#allocation7 + $0x274] ss:$12 sps:$4 sm:$0xff]  }
 0x1fb   :  { %3061 = vmatmul.mubr.bf16.vlgmr.msra.gmra.mrb[16].mxu1 %v2206_v35  ;;  %3184 = vmatmul.mubr.bf16.vlgmr.msra.gmra.mrb[12].mxu0 %v2206_v35  ;;  %v4976_v35 = vld [vmem:[#allocation7 + $0x338] ss:$12 sps:$4 sm:$0xff]  }
 0x1fc   :  { %3070 = vmatpush1.bf16.msra.mxu1 %v4925_v33  ;;  %4381 = vmatpush3.bf16.msra.mxu0 %v4929_v34  ;;  %v429_v33 = vrot.slane %v5438_v24, %v428_v30  ;;  %v4973_v34 = vld [vmem:[#allocation7 + $0x270] ss:$12 sps:$4 sm:$0xff]   ;;  %v5023_v30 = vld [vmem:[#allocation8 + $0x4] ss:$8 sps:$4 sm:$0xff]  }
 0x1fd   :  { %3071 = vmatprep.subr.bf16.mxu1 %v4932_v37  ;;  %4382 = vmatprep.subr.bf16.mxu0 %v4933_v38  ;;  %v4979_v37 = vld [vmem:[#allocation7 + $0x28c] ss:$12 sps:$4 sm:$0xff]   ;;  %v4980_v24 = vld [vmem:[#allocation7 + $0x350] ss:$12 sps:$4 sm:$0xff]  }
 0x200   :  { %3072 = vmatpush1.bf16.msra.mxu1 %v4930_v58  ;;  %4383 = vmatpush3.bf16.msra.mxu0 %v4934_v10 }
 0x201   :  { %v2034_v43 = vpop.f32.mrb[4].mxu1  ;;  %3073 = vmatprep.subr.bf16.mxu1 %v4937_v60  ;;  %4384 = vmatprep.subr.bf16.mxu0 %v4938_v40  ;;  %v4977_v40 = vld [vmem:[#allocation7 + $0x288] ss:$12 sps:$4 sm:$0xff]  }
 0x202   :  { %v2036_v29 = vpop.f32.mrb[5].mxu1  ;;  %v4463_v7 = vadd.f32 %v2034_v43, %v421_v1  ;;  %v4981_v43 = vld [vmem:[#allocation7 + $0x2a0] ss:$12 sps:$4 sm:$0xff]   ;;  %v4993_v1 = vld [vmem:[#allocation7 + $0x2e8] ss:$12 sps:$4 sm:$0xff]  }
 0x203   :  { %v4464_v46 = vadd.f32 %v2036_v29, %v425_v41  ;;  %v2038_v47 = vpop.f32.mrb[6].mxu1 }
 0x204   :  { %v2039_v48 = vpop.f32.mrb[7].mxu1  ;;  %3074 = vmatpush1.bf16.msra.mxu1 %v4935_v42  ;;  %4385 = vmatpush3.bf16.msra.mxu0 %v4939_v51  ;;  %v2203_v22 = vmax.f32 %v4463_v7, 0.0  ;;  %v4983_v42 = vld [vmem:[#allocation7 + $0x2a4] ss:$12 sps:$4 sm:$0xff]   ;;  %v5002_v7 = vld [vmem:[#allocation7 + $0x31c] ss:$12 sps:$4 sm:$0xff]  }
 0x205   :  { %v2204_v52 = vmax.f32 %v4464_v46, 0.0  ;;  %3075 = vmatprep.subr.bf16.mxu1 %v4942_v44  ;;  %4386 = vmatprep.subr.bf16.mxu0 %v4943_v45  ;;  %v4984_v44 = vld [vmem:[#allocation7 + $0x368] ss:$12 sps:$4 sm:$0xff]   ;;  %v4985_v48 = vld [vmem:[#allocation7 + $0x2b8] ss:$12 sps:$4 sm:$0xff]  }
 0x206   :  { %v5455_v27 = vpack.c.bf16 %v2203_v22, %v2203_v22  ;;  %v4987_v45 = vld [vmem:[#allocation7 + $0x2bc] ss:$12 sps:$4 sm:$0xff]   ;;  %v5012_v22 = vld [vmem:[#allocation7 + $0x378] ss:$12 sps:$4 sm:$0xff]  }
 0x207   :  { %v2209_v55 = vpack.c.bf16 %v2204_v52, %v2204_v52  ;;  %v4991_v52 = vld [vmem:[#allocation7 + $0x2d4] ss:$12 sps:$4 sm:$0xff]  }
 0x208   :  { %3076 = vmatpush1.bf16.msra.mxu1 %v4940_v49  ;;  %4387 = vmatpush3.bf16.msra.mxu0 %v4944_v50  ;;  %v4988_v49 = vld [vmem:[#allocation7 + $0x380] ss:$12 sps:$4 sm:$0xff]  }
 0x209   :  { %3101 = vmatprep.mubr.bf16.mxu1 %v2209_v55  ;;  %3223 = vmatprep.mubr.bf16.mxu0 %v2209_v55  ;;  %v4992_v55 = vld [vmem:[#allocation7 + $0x398] ss:$12 sps:$4 sm:$0xff]  }
 0x20a   :  { %3077 = vmatprep.subr.bf16.mxu1 %v4947_v53  ;;  %4388 = vmatprep.subr.bf16.mxu0 %v4948_v54  ;;  %v4989_v54 = vld [vmem:[#allocation7 + $0x2d0] ss:$12 sps:$4 sm:$0xff]  }
 0x20c   :  { %3078 = vmatpush1.bf16.msra.mxu1 %v4945_v56  ;;  %4389 = vmatpush3.bf16.msra.mxu0 %v4949_v57  ;;  %v4995_v57 = vld [vmem:[#allocation7 + $0x2ec] ss:$12 sps:$4 sm:$0xff]  }
 0x20d   :  { %3079 = vmatprep.subr.bf16.mxu1 %v4952_v61  ;;  %4390 = vmatprep.subr.bf16.mxu0 %v4953_v36 }
 0x210   :  { %3080 = vmatpush1.bf16.msra.mxu1 %v4950_v62  ;;  %4391 = vmatpush3.bf16.msra.mxu0 %v4954_v63  ;;  %v4306_v6 = vpop.f32.mrb[4].mxu0 }
 0x211   :  { %3081 = vmatprep.subr.bf16.mxu1 %v4957_v2  ;;  %4392 = vmatprep.subr.bf16.mxu0 %v4958_v3  ;;  %v4307_v12 = vpop.f32.mrb[5].mxu0  ;;  %v4996_v2 = vld [vmem:[#allocation7 + $0x3b0] ss:$12 sps:$4 sm:$0xff]  }
 0x212   :  { %v4308_v13 = vadd.f32 %v4307_v12, %v4306_v6  ;;  %v4309_v14 = vpop.f32.mrb[6].mxu0  ;;  %v4999_v3 = vld [vmem:[#allocation7 + $0x304] ss:$12 sps:$4 sm:$0xff]   ;;  %v4997_v6 = vld [vmem:[#allocation7 + $0x300] ss:$12 sps:$4 sm:$0xff]  }
 0x213   :  { %v4310_v17 = vpop.f32.mrb[7].mxu0  ;;  %v5005_v12 = vld [vmem:[#allocation7 + $0x334] ss:$12 sps:$4 sm:$0xff]  }
 0x214   :  { %3082 = vmatpush1.bf16.msra.mxu1 %v4955_v4  ;;  %4393 = vmatpush3.bf16.msra.mxu0 %v4959_v5  ;;  %v2076_v38 = vadd.f32 %v4308_v13, %v429_v33  ;;  %v5008_v13 = vld [vmem:[#allocation7 + $0x34c] ss:$12 sps:$4 sm:$0xff]   ;;  %v5006_v14 = vld [vmem:[#allocation7 + $0x348] ss:$12 sps:$4 sm:$0xff]   ;;  %v5011_v17 = vld [vmem:[#allocation7 + $0x364] ss:$12 sps:$4 sm:$0xff]  }
 0x215   :  { %3083 = vmatprep.subr.bf16.mxu1 %v4962_v8  ;;  %4394 = vmatprep.subr.bf16.mxu0 %v4963_v11  ;;  %v5000_v11 = vld [vmem:[#allocation7 + $0x318] ss:$12 sps:$4 sm:$0xff]   ;;  %v5027_v33 = vld [vmem:[#allocation8 + $0x20] ss:$8 sps:$4 sm:$0xff]  }
 0x218   :  { %3084 = vmatpush1.bf16.msra.mxu1 %v4960_v19  ;;  %4395 = vmatpush3.bf16.msra.mxu0 %v4964_v21  ;;  %v5009_v19 = vld [vmem:[#allocation7 + $0x360] ss:$12 sps:$4 sm:$0xff]   ;;  %v5014_v21 = vld [vmem:[#allocation7 + $0x37c] ss:$12 sps:$4 sm:$0xff]  }
 0x219   :  { %3085 = vmatprep.subr.bf16.mxu1 %v4967_v23  ;;  %4439 = vmatprep.subr.bf16.mxu0 %v5263_v20  ;;  %v5017_v23 = vld [vmem:[#allocation7 + $0x394] ss:$12 sps:$4 sm:$0xff]  }
 0x21b   :  { %3224 = vmatmul.mubr.bf16.vlgmr.msra.gmra.mrb[16].mxu0 %v5455_v27 }
 0x21c   :  { %3086 = vmatpush1.bf16.msra.mxu1 %v4965_v25  ;;  %4440 = vmatpush3.bf16.msra.mxu0 %v4968_v26  ;;  %v5015_v25 = vld [vmem:[#allocation7 + $0x390] ss:$12 sps:$4 sm:$0xff]   ;;  %v5020_v26 = vld [vmem:[#allocation7 + $0x3ac] ss:$12 sps:$4 sm:$0xff]  }
 0x21d   :  { %3087 = vmatprep.subr.bf16.mxu1 %v4971_v28  ;;  %4441 = vmatprep.subr.bf16.mxu0 %v5263_v20  ;;  %v5021_v28 = vld [vmem:[#allocation8] ss:$8 sps:$4 sm:$0xff]  }
 0x21e   :  { %4455 = vmatprep.mubr.msk.bf16.mxu0 %vm5264_vm1, %v5263_v20 }
 0x220   :  { %3088 = vmatpush1.bf16.msra.mxu1 %v4969_v18  ;;  %4442 = vmatpush3.bf16.msra.mxu0 %v4972_v31  ;;  %v5026_v18 = vld [vmem:[#allocation8 + $0x14] ss:$8 sps:$4 sm:$0xff]   ;;  %v5024_v31 = vld [vmem:[#allocation8 + $0x10] ss:$8 sps:$4 sm:$0xff]  }
 0x221   :  { %3089 = vmatprep.subr.bf16.mxu1 %v4975_v32  ;;  %4443 = vmatprep.subr.bf16.mxu0 %v5263_v20  ;;  %v4328_v39 = vpop.f32.mrb[8].mxu1  ;;  %v5029_v32 = vld [vmem:[#allocation8 + $0x24] ss:$8 sps:$4 sm:$0xff]  }
 0x222   :  { %v4329_v58 = vpop.f32.mrb[9].mxu1 }
 0x223   :  { %v4330_v10 = vadd.f32 %v4329_v58, %v4328_v39  ;;  %v4331_v60 = vpop.f32.mrb[10].mxu1  ;;  %v5038_v39 = vld [vmem:[#allocation8 + $0x54] ss:$8 sps:$4 sm:$0xff]   ;;  %v5036_v58 = vld [vmem:[#allocation8 + $0x50] ss:$8 sps:$4 sm:$0xff]  }
 0x224   :  { %3090 = vmatpush1.bf16.msra.mxu1 %v4973_v34  ;;  %4444 = vmatpush3.bf16.msra.mxu0 %v4976_v35  ;;  %v4332_v41 = vpop.f32.mrb[11].mxu1  ;;  %v5032_v34 = vld [vmem:[#allocation8 + $0x34] ss:$8 sps:$4 sm:$0xff]   ;;  %v5030_v35 = vld [vmem:[#allocation8 + $0x30] ss:$8 sps:$4 sm:$0xff]  }
 0x225   :  { %3091 = vmatprep.subr.bf16.mxu1 %v4979_v37  ;;  %4445 = vmatprep.subr.bf16.mxu0 %v5263_v20  ;;  %v2116_v51 = vadd.f32 %v4330_v10, %v2076_v38  ;;  %v5035_v37 = vld [vmem:[#allocation8 + $0x44] ss:$8 sps:$4 sm:$0xff]   ;;  %v5033_v38 = vld [vmem:[#allocation8 + $0x40] ss:$8 sps:$4 sm:$0xff]  }
 0x226   :  { %v5041_v10 = vld [vmem:[#allocation8 + $0x64] ss:$8 sps:$4 sm:$0xff]   ;;  %v5039_v60 = vld [vmem:[#allocation8 + $0x60] ss:$8 sps:$4 sm:$0xff]  }
 0x227   :  { %v5045_v41 = vld [vmem:[#allocation8 + $0x80] ss:$8 sps:$4 sm:$0xff]  }
 0x228   :  { %3092 = vmatpush1.bf16.msra.mxu1 %v4977_v40  ;;  %4446 = vmatpush3.bf16.msra.mxu0 %v4980_v24  ;;  %v5044_v40 = vld [vmem:[#allocation8 + $0x74] ss:$8 sps:$4 sm:$0xff]   ;;  %v5042_v24 = vld [vmem:[#allocation8 + $0x70] ss:$8 sps:$4 sm:$0xff]  }
 0x229   :  { %3093 = vmatprep.subr.bf16.mxu1 %v4983_v42  ;;  %4447 = vmatprep.subr.bf16.mxu0 %v5263_v20  ;;  %v2195_v29 = vpop.f32.mrb[12].mxu1  ;;  %v5047_v42 = vld [vmem:[#allocation8 + $0x84] ss:$8 sps:$4 sm:$0xff]  }
 0x22a   :  { %v4437_v46 = vpop.f32.mrb[13].mxu1 }
 0x22b   :  { %v2198_v47 = vpop.f32.mrb[14].mxu1  ;;  %v5054_v46 = vld [vmem:[#allocation8 + $0xb0] ss:$8 sps:$4 sm:$0xff]  }
 0x22c   :  { %3094 = vmatpush1.bf16.msra.mxu1 %v4981_v43  ;;  %4448 = vmatpush3.bf16.msra.mxu0 %v4984_v44  ;;  %v4438_v50 = vpop.f32.mrb[15].mxu1  ;;  %v5048_v43 = vld [vmem:[#allocation8 + $0x90] ss:$8 sps:$4 sm:$0xff]   ;;  %v5053_v44 = vld [vmem:[#allocation8 + $0xa4] ss:$8 sps:$4 sm:$0xff]  }
 0x22d   :  { %3095 = vmatprep.subr.bf16.mxu1 %v4987_v45  ;;  %4449 = vmatprep.subr.bf16.mxu0 %v5263_v20  ;;  %v5051_v45 = vld [vmem:[#allocation8 + $0xa0] ss:$8 sps:$4 sm:$0xff]   ;;  %v5059_v47 = vld [vmem:[#allocation8 + $0xc4] ss:$8 sps:$4 sm:$0xff]   ;;  %v5060_v50 = vld [vmem:[#allocation8 + $0xd0] ss:$8 sps:$4 sm:$0xff]  }
 0x230   :  { %3096 = vmatpush1.bf16.msra.mxu1 %v4985_v48  ;;  %v4350_v53 = vpop.f32.mrb[8].mxu0  ;;  %4450 = vmatpush3.bf16.msra.mxu0 %v4988_v49  ;;  %v5057_v48 = vld [vmem:[#allocation8 + $0xc0] ss:$8 sps:$4 sm:$0xff]   ;;  %v5062_v49 = vld [vmem:[#allocation8 + $0xd4] ss:$8 sps:$4 sm:$0xff]  }
 0x231   :  { %v4351_v56 = vpop.f32.mrb[9].mxu0  ;;  %3097 = vmatprep.subr.bf16.mxu1 %v4991_v52  ;;  %4451 = vmatprep.subr.bf16.mxu0 %v5263_v20  ;;  %v5065_v52 = vld [vmem:[#allocation8 + $0xe4] ss:$8 sps:$4 sm:$0xff]  }
 0x232   :  { %v4352_v61 = vadd.f32 %v4351_v56, %v4350_v53  ;;  %v4353_v36 = vpop.f32.mrb[10].mxu0  ;;  %v5063_v53 = vld [vmem:[#allocation8 + $0xe0] ss:$8 sps:$4 sm:$0xff]   ;;  %v5071_v56 = vld [vmem:[#allocation8 + $0x104] ss:$8 sps:$4 sm:$0xff]  }
 0x233   :  { %v4354_v62 = vpop.f32.mrb[11].mxu0 }
 0x234   :  { %3098 = vmatpush1.bf16.msra.mxu1 %v4989_v54  ;;  %v2156_v63 = vadd.f32 %v4352_v61, %v2116_v51  ;;  %4452 = vmatpush3.bf16.msra.mxu0 %v4992_v55  ;;  %v5050_v51 = vld [vmem:[#allocation8 + $0x94] ss:$8 sps:$4 sm:$0xff]   ;;  %v5066_v55 = vld [vmem:[#allocation8 + $0xf0] ss:$8 sps:$4 sm:$0xff]  }
 0x235   :  { %3099 = vmatprep.subr.bf16.mxu1 %v4995_v57  ;;  %4453 = vmatprep.subr.bf16.mxu0 %v5263_v20  ;;  %v5003_v20 = vld [vmem:[#allocation7 + $0x330] ss:$12 sps:$4 sm:$0xff]  }
 0x236   :  { %v2196_v4 = vadd.f32 %v2195_v29, %v2156_v63  ;;  %v5056_v29 = vld [vmem:[#allocation8 + $0xb4] ss:$8 sps:$4 sm:$0xff]  }
 0x237   :  { %v5068_v54 = vld [vmem:[#allocation8 + $0xf4] ss:$8 sps:$4 sm:$0xff]  }
 0x238   :  { %v2205_v5 = vmax.f32 %v2196_v4, 0.0  ;;  %3100 = vmatpush1.bf16.msra.mxu1 %v4993_v1  ;;  %4454 = vmatpush3.bf16.msra.mxu0 %v4996_v2  ;;  %v5093_v1 = vld [vmem:[#allocation10 + $0x40] sm:$0xff]   ;;  %v5096_v4 = vld [vmem:[#allocation10 + $0x8] sm:$0xff]  }
 0x239   :  { %3110 = vmatprep.subr.bf16.mxu1 %v4999_v3  ;;  %3577 = vmatprep.subr.bf16.mxu0 %v5023_v30  ;;  %v5094_v2 = vld [vmem:[#allocation10] sm:$0xff]   ;;  %v5095_v3 = vld [vmem:[#allocation10 + $0x48] sm:$0xff]  }
 0x23a   :  { %v2210_v8 = vpack.c.bf16 %v2205_v5, %v2205_v5  ;;  %v5097_v5 = vld [vmem:[#allocation10 + $0x50] sm:$0xff]  }
 0x23b   :  { %3102 = vmatmul.mubr.bf16.vlgmr.msra.gmra.mrb[16].mxu1 %v5455_v27  ;;  %v5018_v27 = vld [vmem:[#allocation7 + $0x3a8] ss:$12 sps:$4 sm:$0xff]  }
 0x23c   :  { %3111 = vmatpush1.bf16.msra.mxu1 %v4997_v6  ;;  %4456 = vmatmul.mubr.bf16.vlgmr.msra.gmra.mrb[20].mxu0 %v2210_v8  ;;  %v5098_v6 = vld [vmem:[#allocation10 + $0x10] sm:$0xff]  }
 0x23d   :  { %3112 = vmatprep.subr.bf16.mxu1 %v5002_v7  ;;  %3142 = vmatprep.mubr.bf16.mxu1 %v5262_v0  ;;  %v5099_v7 = vld [vmem:[#allocation10 + $0x58] sm:$0xff]  }
 0x23e   :  { %3578 = vmatpush1.bf16.msra.mxu0 %v5021_v28 }
 0x23f   :  { %3579 = vmatprep.subr.bf16.mxu0 %v5026_v18 }
 0x240   :  { %3113 = vmatpush1.bf16.msra.mxu1 %v5000_v11  ;;  %v5101_v11 = vld [vmem:[#allocation10 + $0x60] sm:$0xff]  }
 0x241   :  { %3114 = vmatprep.subr.bf16.mxu1 %v5005_v12  ;;  %v5102_v12 = vld [vmem:[#allocation10 + $0x20] sm:$0xff]  }
 0x242   :  { %3580 = vmatpush1.bf16.msra.mxu0 %v5024_v31 }
 0x243   :  { %3581 = vmatprep.subr.bf16.mxu0 %v5029_v32 }
 0x244   :  { %3115 = vmatpush1.bf16.msra.mxu1 %v5003_v20  ;;  %v5103_v20 = vld [vmem:[#allocation10 + $0x68] sm:$0xff]  }
 0x245   :  { %3116 = vmatprep.subr.bf16.mxu1 %v5008_v13  ;;  %v2371_v13 = vld [vmem:[%s5504_s4] sm:$0x7] }
 0x246   :  { %3582 = vmatpush1.bf16.msra.mxu0 %v5027_v33  ;;  %v2376_v33 = vrot.slane %v2371_v13, %v5433_v15 }
 0x247   :  { %3583 = vmatprep.subr.bf16.mxu0 %v5032_v34  ;;  %v2380_v34 = vrot.slane %v2371_v13, %v5441_v16 }
 0x248   :  { %3117 = vmatpush1.bf16.msra.mxu1 %v5006_v14  ;;  %v5104_v14 = vld [vmem:[#allocation10 + $0x28] sm:$0xff]  }
 0x249   :  { %3118 = vmatprep.subr.bf16.mxu1 %v5011_v17  ;;  %v2384_v17 = vrot.slane %v2371_v13, %v420_v59  ;;  %v4273_v13 = vld [vmem:[%s5508_s8] ss:$0 sm:$0xff] }
 0x24a   :  { %3584 = vmatpush1.bf16.msra.mxu0 %v5030_v35 }
 0x24b   :  { %3585 = vmatprep.subr.bf16.mxu0 %v5035_v37 }
 0x24c   :  { %3119 = vmatpush1.bf16.msra.mxu1 %v5009_v19 }
 0x24d   :  { %3120 = vmatprep.subr.bf16.mxu1 %v5014_v21 }
 0x24e   :  { %3586 = vmatpush1.bf16.msra.mxu0 %v5033_v38 }
 0x24f   :  { %3587 = vmatprep.subr.bf16.mxu0 %v5038_v39 }
 0x250   :  { %3121 = vmatpush1.bf16.msra.mxu1 %v5012_v22 }
 0x251   :  { %3122 = vmatprep.subr.bf16.mxu1 %v5017_v23 }
 0x252   :  { %3588 = vmatpush1.bf16.msra.mxu0 %v5036_v58 }
 0x253   :  { %3589 = vmatprep.subr.bf16.mxu0 %v5041_v10 }
 0x254   :  { %3123 = vmatpush1.bf16.msra.mxu1 %v5015_v25 }
 0x255   :  { %3124 = vmatprep.subr.bf16.mxu1 %v5020_v26 }
 0x256   :  { %3590 = vmatpush1.bf16.msra.mxu0 %v5039_v60 }
 0x257   :  { %3591 = vmatprep.subr.bf16.mxu0 %v5044_v40  ;;  %v5069_v40 = vld [vmem:[#allocation8 + $0x100] ss:$8 sps:$4 sm:$0xff]  }
 0x258   :  { %3125 = vmatpush1.bf16.msra.mxu1 %v5018_v27 }
 0x259   :  { %4411 = vmatprep.subr.bf16.mxu1 %v5093_v1 }
 0x25a   :  { %3592 = vmatpush1.bf16.msra.mxu0 %v5042_v24 }
 0x25b   :  { %3143 = vmatmul.mubr.bf16.vlgmr.msra.gmra.mrb[16].mxu1 %v2210_v8  ;;  %3593 = vmatprep.subr.bf16.mxu0 %v5047_v42  ;;  %v5100_v8 = vld [vmem:[#allocation10 + $0x18] sm:$0xff]  }
 0x25c   :  { %4412 = vmatpush3.bf16.msra.mxu1 %v5094_v2  ;;  %v5072_v42 = vld [vmem:[#allocation8 + $0x110] ss:$8 sps:$4 sm:$0xff]  }
 0x25d   :  { %4413 = vmatprep.subr.bf16.mxu1 %v5095_v3 }
 0x25e   :  { %3594 = vmatpush1.bf16.msra.mxu0 %v5045_v41  ;;  %v5074_v41 = vld [vmem:[#allocation8 + $0x114] ss:$8 sps:$4 sm:$0xff]  }
 0x25f   :  { %3595 = vmatprep.subr.bf16.mxu0 %v5050_v51  ;;  %v5077_v51 = vld [vmem:[#allocation8 + $0x124] ss:$8 sps:$4 sm:$0xff]  }
 0x260   :  { %4414 = vmatpush3.bf16.msra.mxu1 %v5096_v4 }
 0x261   :  { %4415 = vmatprep.subr.bf16.mxu1 %v5097_v5 }
 0x262   :  { %3596 = vmatpush1.bf16.msra.mxu0 %v5048_v43  ;;  %v5075_v43 = vld [vmem:[#allocation8 + $0x120] ss:$8 sps:$4 sm:$0xff]  }
 0x263   :  { %3597 = vmatprep.subr.bf16.mxu0 %v5053_v44  ;;  %v5080_v44 = vld [vmem:[#allocation8 + $0x134] ss:$8 sps:$4 sm:$0xff]  }
 0x264   :  { %4416 = vmatpush3.bf16.msra.mxu1 %v5098_v6 }
 0x265   :  { %4417 = vmatprep.subr.bf16.mxu1 %v5099_v7 }
 0x266   :  { %3598 = vmatpush1.bf16.msra.mxu0 %v5051_v45  ;;  %v5078_v45 = vld [vmem:[#allocation8 + $0x130] ss:$8 sps:$4 sm:$0xff]  }
 0x267   :  { %3599 = vmatprep.subr.bf16.mxu0 %v5056_v29  ;;  %v5083_v29 = vld [vmem:[#allocation8 + $0x144] ss:$8 sps:$4 sm:$0xff]  }
 0x268   :  { %4418 = vmatpush3.bf16.msra.mxu1 %v5100_v8 }
 0x269   :  { %4419 = vmatprep.subr.bf16.mxu1 %v5101_v11 }
 0x26a   :  { %3600 = vmatpush1.bf16.msra.mxu0 %v5054_v46  ;;  %v5081_v46 = vld [vmem:[#allocation8 + $0x140] ss:$8 sps:$4 sm:$0xff]  }
 0x26b   :  { %3601 = vmatprep.subr.bf16.mxu0 %v5059_v47  ;;  %v5086_v47 = vld [vmem:[#allocation8 + $0x154] ss:$8 sps:$4 sm:$0xff]  }
 0x26c   :  { %4420 = vmatpush3.bf16.msra.mxu1 %v5102_v12 }
 0x26d   :  { %4421 = vmatprep.subr.bf16.mxu1 %v5103_v20 }
 0x26e   :  { %3602 = vmatpush1.bf16.msra.mxu0 %v5057_v48  ;;  %v5084_v48 = vld [vmem:[#allocation8 + $0x150] ss:$8 sps:$4 sm:$0xff]  }
 0x26f   :  { %3603 = vmatprep.subr.bf16.mxu0 %v5062_v49  ;;  %v5089_v49 = vld [vmem:[#allocation8 + $0x164] ss:$8 sps:$4 sm:$0xff]  }
 0x270   :  { %4422 = vmatpush3.bf16.msra.mxu1 %v5104_v14 }
 0x272   :  { %3604 = vmatpush1.bf16.msra.mxu0 %v5060_v50  ;;  %v5092_v50 = vld [vmem:[#allocation8 + $0x174] ss:$8 sps:$4 sm:$0xff]  }
 0x273   :  { %3605 = vmatprep.subr.bf16.mxu0 %v5065_v52  ;;  %v5090_v52 = vld [vmem:[#allocation8 + $0x170] ss:$8 sps:$4 sm:$0xff]  }
 0x276   :  { %3606 = vmatpush1.bf16.msra.mxu0 %v5063_v53 }
 0x277   :  { %3607 = vmatprep.subr.bf16.mxu0 %v5068_v54 }
 0x27a   :  { %3608 = vmatpush1.bf16.msra.mxu0 %v5066_v55  ;;  %v5105_v55 = vld [vmem:[#allocation10 + $0x70] sm:$0xff]  }
 0x27b   :  { %3618 = vmatprep.subr.bf16.mxu0 %v5071_v56  ;;  %v5106_v56 = vld [vmem:[#allocation10 + $0x30] sm:$0xff]   ;;  %4423 = vmatprep.subr.bf16.mxu1 %v5105_v55 }
 0x27c   :  { %4424 = vmatpush3.bf16.msra.mxu1 %v5106_v56 }
 0x2ce   :  { %v4374_v57 = vpop.f32.mrb[12].mxu0 }
 0x2cf   :  { %v4375_v61 = vpop.f32.mrb[13].mxu0 }
 0x2d0   :  { %v4376_v36 = vadd.f32 %v4375_v61, %v4374_v57  ;;  %v4377_v62 = vpop.f32.mrb[14].mxu0  ;;  %v5107_v57 = vld [vmem:[#allocation10 + $0x78] sm:$0xff]  }
 0x2d1   :  { %v4378_v63 = vpop.f32.mrb[15].mxu0  ;;  %v5108_v61 = vld [vmem:[#allocation10 + $0x38] sm:$0xff]   ;;  %4425 = vmatprep.subr.bf16.mxu1 %v5107_v57 }
 0x2d2   :  { %v3186_v22 = vadd.f32 %v4376_v36, %v2384_v17  ;;  %4426 = vmatpush3.bf16.msra.mxu1 %v5108_v61  ;;  %v3325_v36 = vld [vmem:[%s5506_s6] sm:$0x3]  ;;  %s5265_s6 = smov [#allocation11]  }
 0x2d3   :  { %v3330_v62 = vrot.slane %v3325_v36, %v5433_v15  ;;  %v3334_v63 = vrot.slane %v3325_v36, %v5441_v16  ;;  %s3846_s10 = sshll.u32 %s5265_s6, 4  ;;  %s3847_s10 = int_to_ptr.vmem [resolvable:$true] %s3846_s10 }
 0x2d4   :  { %s5219_s13 = scalar_lea.vmem %s3847_s10, 128  ;;  %p5224_p13 = scmp.lt.s32.totalorder %s3847_s10, %s3847_s10 }
 0x2d5   :  { %p5220_p12 = scmp.ne.s32.totalorder %s3847_s10, %s5219_s13  ;;  %p5225_p0 = scmp.lt.s32.totalorder %s5219_s13, %s5219_s13 }
 0x2d7   :  { %p5226_p1 = por %p5225_p0, %p5224_p13 }
 0x2d9   :  { %p5227_p2 = pnand %p5226_p1, %p5220_p12 }
 0x2ee   :  { %v4396_v19 = vpop.f32.mrb[16].mxu0 }
 0x2ef   :  { %v4397_v21 = vpop.f32.mrb[17].mxu0 }
 0x2f0   :  { %v4398_v23 = vadd.f32 %v4397_v21, %v4396_v19  ;;  %v4399_v25 = vpop.f32.mrb[18].mxu0 }
 0x2f1   :  { %v4400_v26 = vpop.f32.mrb[19].mxu0 }
 0x2f2   :  { %v3226_v27 = vadd.f32 %v4398_v23, %v3186_v22 }
 0x30f   :  { %v3265_v28 = vpop.f32.mrb[20].mxu0 }
 0x310   :  { %v3266_v30 = vadd.f32 %v3265_v28, %v3226_v27  ;;  %v4457_v18 = vpop.f32.mrb[21].mxu0 }
 0x311   :  { %v3268_v31 = vpop.f32.mrb[22].mxu0 }
 0x312   :  { %v4458_v32 = vpop.f32.mrb[23].mxu0  ;;  %v3273_v53 = vmax.f32 %v3266_v30, 0.0 }
 0x314   :  { %v3276_v54 = vpack.c.bf16 %v3273_v53, %v3273_v53 }
 0x32e   :  { %v3144_v35 = vpop.f32.mrb[16].mxu1 }
 0x32f   :  { %v4465_v9 = vadd.f32 %v3144_v35, %v2376_v33  ;;  %v3146_v59 = vpop.f32.mrb[17].mxu1 }
 0x330   :  { %v4466_v37 = vadd.f32 %v3146_v59, %v2380_v34  ;;  %v3148_v38 = vpop.f32.mrb[18].mxu1 }
 0x331   :  { %v3271_v39 = vmax.f32 %v4465_v9, 0.0  ;;  %v3149_v58 = vpop.f32.mrb[19].mxu1 }
 0x332   :  { %v3272_v10 = vmax.f32 %v4466_v37, 0.0 }
 0x333   :  { %v3274_v24 = vpack.c.bf16 %v3271_v39, %v3271_v39 }
 0x334   :  { %v3275_v60 = vpack.c.bf16 %v3272_v10, %v3272_v10 }
 0x336   :  { %3609 = vmatprep.mubr.bf16.mxu0 %v3275_v60 }
 0x337   :  { %3610 = vmatmul.mubr.bf16.vlgmr.msra.gmra.mrb[24].mxu0 %v3274_v24 }
 0x338   :  { %3619 = vmatpush1.bf16.msra.mxu0 %v5069_v40  ;;  %3650 = vmatprep.mubr.bf16.mxu0 %v5262_v0  ;;  %v5087_v0 = vld [vmem:[#allocation8 + $0x160] ss:$8 sps:$4 sm:$0xff]  }
 0x339   :  { %3620 = vmatprep.subr.bf16.mxu0 %v5074_v41 }
 0x33c   :  { %3621 = vmatpush1.bf16.msra.mxu0 %v5072_v42 }
 0x33d   :  { %3622 = vmatprep.subr.bf16.mxu0 %v5077_v51 }
 0x340   :  { %3623 = vmatpush1.bf16.msra.mxu0 %v5075_v43 }
 0x341   :  { %3624 = vmatprep.subr.bf16.mxu0 %v5080_v44 }
 0x344   :  { %3625 = vmatpush1.bf16.msra.mxu0 %v5078_v45 }
 0x345   :  { %3626 = vmatprep.subr.bf16.mxu0 %v5083_v29 }
 0x348   :  { %3627 = vmatpush1.bf16.msra.mxu0 %v5081_v46 }
 0x349   :  { %3628 = vmatprep.subr.bf16.mxu0 %v5086_v47 }
 0x34c   :  { %3629 = vmatpush1.bf16.msra.mxu0 %v5084_v48 }
 0x34d   :  { %3630 = vmatprep.subr.bf16.mxu0 %v5089_v49 }
 0x350   :  { %3631 = vmatpush1.bf16.msra.mxu0 %v5087_v0 }
 0x351   :  { %3632 = vmatprep.subr.bf16.mxu0 %v5092_v50 }
 0x354   :  { %3633 = vmatpush1.bf16.msra.mxu0 %v5090_v52 }
 0x357   :  { %3651 = vmatmul.mubr.bf16.vlgmr.msra.gmra.mrb[24].mxu0 %v3276_v54 }
 0x42a   :  { %v3652_v1 = vpop.f32.mrb[24].mxu0 }
 0x42b   :  { %v4467_v2 = vadd.f32 %v3652_v1, %v3330_v62  ;;  %v3654_v3 = vpop.f32.mrb[25].mxu0 }
 0x42c   :  { %v4468_v4 = vadd.f32 %v3654_v3, %v3334_v63  ;;  %v3656_v5 = vpop.f32.mrb[26].mxu0 }
 0x42d   :  { %v3659_v6 = vmax.f32 %v4467_v2, 0.0  ;;  %v3657_v7 = vpop.f32.mrb[27].mxu0 }
 0x42e   :  { %v3660_v8 = vmax.f32 %v4468_v4, 0.0 }
 0x42f   :  { %v3661_v12 = vpack.c.bf16 %v3659_v6, %v3659_v6 }
 0x430   :  { %v3662_v11 = vpack.c.bf16 %v3660_v8, %v3660_v8 }
 0x432   :  { %3830 = vmatprep.mubr.bf16.mxu1 %v3662_v11 }
 0x433   :  { %3831 = vmatmul.mubr.bf16.vlgmr.msra.gmra.mrb[20].mxu1 %v3661_v12 }
 0x506   :  { %v4427_v20 = vpop.f32.mrb[20].mxu1 }
 0x507   :  { %v4428_v15 = vpop.f32.mrb[21].mxu1 }
 0x508   :  { %v4429_v14 = vadd.f32 %v4428_v15, %v4427_v20  ;;  %v4430_v16 = vpop.f32.mrb[22].mxu1 }
 0x509   :  { %v4431_v17 = vpop.f32.mrb[23].mxu1 }
 0x50a   :  { %v3833_v19 = vadd.f32 %v4429_v14, %v4273_v13 }
 0x50c   :  { %v3838_v21 = vmax.f32 %v3833_v19, 0.0 }
 0x50e   :  { %3839 = vst [vmem:[#allocation11] sm:$0xff] %v3838_v21 }
 0x50f   :  { %5230 = shalt.err (!%p5227_p2)
}
 0x510   :  { %s5231_s8 = scalar_lea.hbm %s5509_s9, 128 }
 0x511   :  { %p5232_p3 = scmp.ne.s32.totalorder %s5509_s9, %s5231_s8  ;;  %p5235_p4 = scmp.lt.u32.totalorder %s5231_s8, %s5509_s9 }
 0x513   :  { %p5237_p5 = pnand %p5235_p4, %p5232_p3 }
 0x515   :  { %5240 = shalt.err (!%p5237_p5)
}
 0x516   :  { %3849 = dma.vmem_to_hbm [thread:$0]  %s3847_s10, 128, %s5509_s9, [#allocation4]  }
 0x517   :  { %5247 = dma.done.wait [#allocation4], 128  }
 0x518   :  { %5248 = vsyncadd [#allocation4], 4294967168 }
 0x519   :  { %3853 = vsyncpa [#allocation3], 1 }
 0x51a   :  { %3854 = vsyncpa [#allocation6], 1 }
 0x51b   :  { %3855 = vsyncpa [#allocation9], 1 }
 0x51c   :  { %3856 = vsyncpa [#allocation4], 1 }

</bundles_post_ra>
